<compile_context>
chip_gen: v7x
topology: tpu7x:2x2x1
jax: 0.10.0
libtpu: 0.0.40
codegen_flags: <defaults>
</compile_context>

<pallas_src>
import functools

import jax
import jax.numpy as jnp
from jax.experimental import pallas as pl
from jax.experimental.pallas import tpu as pltpu

_TM_MAX = 512                       # rows per tile; double-buffered tiles stay
                                    # well under scoped VMEM on v5e/v6e/v7x
_VMEM_LIMIT = 64 * 1024 * 1024
_SLOPE = 0.2
_EPS = 1e-5

# layer config: (kernel, stride, pad, use_bn, use_lrelu)
_LAYER_CFG = [
    (4, 2, 1, False, True),
    (4, 2, 1, True, True),
    (4, 2, 1, True, True),
    (4, 2, 1, True, True),
    (4, 1, 0, False, False),
]


# -----------------------------------------------------------------------------
# Pallas kernels
# -----------------------------------------------------------------------------
def conv_act_kernel(p_ref, w_ref, b_ref, o_ref, *, use_lrelu):
    """One M-tile: (TM,K)bf16 @ (K,C)bf16 -> f32, + bias, optional LeakyReLU."""
    y = jnp.dot(p_ref[...], w_ref[...], preferred_element_type=jnp.float32)
    y = y + b_ref[...]
    if use_lrelu:
        y = jnp.where(y > 0, y, _SLOPE * y)
    o_ref[...] = y


def conv_stats_kernel(p_ref, w_ref, y_ref, s_ref, ss_ref):
    """BN pass A: matmul (bias skipped, BN cancels it), write pre-activation,
    and accumulate per-channel sum / sum-of-squares across the (arbitrary)
    M grid axis into VMEM-resident (1, C) accumulator outputs."""
    @pl.when(pl.program_id(0) == 0)
    def _():
        s_ref[...] = jnp.zeros_like(s_ref)
        ss_ref[...] = jnp.zeros_like(ss_ref)

    y = jnp.dot(p_ref[...], w_ref[...], preferred_element_type=jnp.float32)
    y_ref[...] = y
    s_ref[...] += jnp.sum(y, axis=0, keepdims=True)
    ss_ref[...] += jnp.sum(y * y, axis=0, keepdims=True)


def bn_act_kernel(y_ref, scale_ref, shift_ref, o_ref):
    """BN pass B: fused per-channel scale/shift + LeakyReLU(0.2)."""
    y = y_ref[...] * scale_ref[...] + shift_ref[...]
    o_ref[...] = jnp.where(y > 0, y, _SLOPE * y)


# -----------------------------------------------------------------------------
# Glue (host-side im2col on NHWC, per-layer wrapper, full forward)
# -----------------------------------------------------------------------------
def _round_up(x, m):
    return (x + m - 1) // m * m


def _im2col_nhwc(x, k, stride, pad):
    """(N,H,W,C) -> (N*Ho*Wo, k*k*C); K flattening order is (kh, kw, C_in),
    matching the (kh, kw, C_in, C_out)-reshaped conv weight."""
    n, h, w, c = x.shape
    xp = jnp.pad(x, ((0, 0), (pad, pad), (pad, pad), (0, 0)))
    ho = (h + 2 * pad - k) // stride + 1
    wo = (w + 2 * pad - k) // stride + 1
    cols = []
    for i in range(k):
        for j in range(k):
            cols.append(xp[:, i:i + stride * ho:stride, j:j + stride * wo:stride, :])
    col = jnp.stack(cols, axis=3)                      # (N, Ho, Wo, k*k, C)
    col = col.reshape(n * ho * wo, k * k * c)
    return col, ho, wo


def conv_block(x_nhwc, p, *, k, stride, pad, use_bn, use_lrelu):
    n = x_nhwc.shape[0]
    c_out = p["w"].shape[1]
    patches, ho, wo = _im2col_nhwc(x_nhwc, k, stride, pad)
    m, kdim = patches.shape

    tm = min(_TM_MAX, _round_up(m, 8))
    mp = _round_up(m, tm)
    if mp != m:                                        # zero rows: no effect on
        patches = jnp.pad(patches, ((0, mp - m), (0, 0)))   # sums, sliced later
    patches = patches.astype(jnp.bfloat16)
    grid = (mp // tm,)

    patch_spec = pl.BlockSpec((tm, kdim), lambda i: (i, 0))
    weight_spec = pl.BlockSpec((kdim, c_out), lambda i: (0, 0))
    chan_spec = pl.BlockSpec((1, c_out), lambda i: (0, 0))
    row_spec = pl.BlockSpec((tm, c_out), lambda i: (i, 0))

    if use_bn:
        # Pass A: matmul + per-channel sum / sum-sq accumulation.
        y, s, ss = pl.pallas_call(
            conv_stats_kernel,
            out_shape=(jax.ShapeDtypeStruct((mp, c_out), jnp.float32),
                       jax.ShapeDtypeStruct((1, c_out), jnp.float32),
                       jax.ShapeDtypeStruct((1, c_out), jnp.float32)),
            grid=grid,
            in_specs=[patch_spec, weight_spec],
            out_specs=(row_spec, chan_spec, chan_spec),
            compiler_params=pltpu.CompilerParams(
                dimension_semantics=("arbitrary",),
                vmem_limit_bytes=_VMEM_LIMIT),
        )(patches, p["w"])

        # Tiny f32 reduction -> fused scale/shift (training-mode, biased var).
        mean = s / m
        var = jnp.maximum(ss / m - mean * mean, 0.0)
        scale = p["gamma"] * jax.lax.rsqrt(var + _EPS)
        shift = p["beta"] - mean * scale

        # Pass B: normalize + LeakyReLU, independent tiles -> parallel.
        y = pl.pallas_call(
            bn_act_kernel,
            out_shape=jax.ShapeDtypeStruct((mp, c_out), jnp.float32),
            grid=grid,
            in_specs=[row_spec, chan_spec, chan_spec],
            out_specs=row_spec,
            compiler_params=pltpu.CompilerParams(
                dimension_semantics=("parallel",),
                vmem_limit_bytes=_VMEM_LIMIT),
        )(y, scale, shift)
    else:
        y = pl.pallas_call(
            functools.partial(conv_act_kernel, use_lrelu=use_lrelu),
            out_shape=jax.ShapeDtypeStruct((mp, c_out), jnp.float32),
            grid=grid,
            in_specs=[patch_spec, weight_spec, chan_spec],
            out_specs=row_spec,
            compiler_params=pltpu.CompilerParams(
                dimension_semantics=("parallel",),
                vmem_limit_bytes=_VMEM_LIMIT),
        )(patches, p["w"], p["b"])

    if mp != m:
        y = y[:m]
    return y.reshape(n, ho, wo, c_out)                 # stay NHWC between layers


def discriminator_dc_forward(params, x_nchw):
    x = jnp.transpose(x_nchw, (0, 2, 3, 1))            # one NCHW -> NHWC total
    for p, (k, stride, pad, use_bn, use_lrelu) in zip(params, _LAYER_CFG):
        x = conv_block(x, p, k=k, stride=stride, pad=pad,
                       use_bn=use_bn, use_lrelu=use_lrelu)
    return jnp.squeeze(x)                              # (N,1,1,1) -> (N,)


# -----------------------------------------------------------------------------
# Parameters
# -----------------------------------------------------------------------------
def init_params(key, in_channel=3, d=8, mean=0.0, std=0.02):
    chans = [(in_channel, d), (d, 2 * d), (2 * d, 4 * d), (4 * d, 8 * d), (8 * d, 1)]
    params = []
    for (ci, co) in chans:
        key, kw, kb = jax.random.split(key, 3)
        w = mean + std * jax.random.normal(kw, (co, ci, 4, 4), jnp.float32)
        b = std * jax.random.normal(kb, (co,), jnp.float32)
        params.append(dict(w=w, b=b,
                           gamma=jnp.ones((co,), jnp.float32),
                           beta=jnp.zeros((co,), jnp.float32)))
    return params


def prepare_params(raw_params):
    """One-time prep: PyTorch (C_out,C_in,kh,kw) weight -> (kh*kw*C_in, C_out)
    bf16 matmul operand; bias/gamma/beta as (1, C) f32."""
    prepped = []
    for p in raw_params:
        co, ci, kh, kw = p["w"].shape
        w2 = (p["w"].transpose(2, 3, 1, 0)
                    .reshape(kh * kw * ci, co)
                    .astype(jnp.bfloat16))
        prepped.append(dict(
            w=w2,
            b=p["b"].reshape(1, co).astype(jnp.float32),
            gamma=p["gamma"].reshape(1, co).astype(jnp.float32),
            beta=p["beta"].reshape(1, co).astype(jnp.float32)))
    return prepped


# -----------------------------------------------------------------------------
# Pure-JAX reference (same math; mirrors the kernels' bf16-operand /
# f32-accumulate matmul quantization so the check is apples-to-apples)
# -----------------------------------------------------------------------------
def _ref_forward(raw_params, x):
    for p, (k, stride, pad, use_bn, use_lrelu) in zip(raw_params, _LAYER_CFG):
        y = jax.lax.conv_general_dilated(
            x.astype(jnp.bfloat16), p["w"].astype(jnp.bfloat16),
            (stride, stride), [(pad, pad), (pad, pad)],
            dimension_numbers=("NCHW", "OIHW", "NCHW"),
            preferred_element_type=jnp.float32)
        y = y + p["b"].reshape(1, -1, 1, 1)
        if use_bn:
            mu = y.mean(axis=(0, 2, 3), keepdims=True)
            var = ((y - mu) ** 2).mean(axis=(0, 2, 3), keepdims=True)
            y = (y - mu) / jnp.sqrt(var + _EPS)
            y = y * p["gamma"].reshape(1, -1, 1, 1) + p["beta"].reshape(1, -1, 1, 1)
        if use_lrelu:
            y = jnp.where(y > 0, y, _SLOPE * y)
        x = y
    return jnp.squeeze(x)


if __name__ == "__main__":
    key = jax.random.PRNGKey(0)
    key, kx = jax.random.split(key)

    # Architecture needs 64x64 spatial input so the final 4x4 valid conv
    # reduces to 1x1; keep channel width small (d=8) and batch=2 for the demo.
    N, IN_CH, D, H = 2, 3, 8, 64
    x = jax.random.normal(kx, (N, IN_CH, H, H), jnp.float32)
    raw_params = init_params(key, in_channel=IN_CH, d=D)
    params = prepare_params(raw_params)

    fwd = jax.jit(discriminator_dc_forward)
    out = jax.block_until_ready(fwd(params, x))
    assert out.shape == (N,), out.shape

    ref = jax.block_until_ready(_ref_forward(raw_params, x))
    assert jnp.allclose(out, ref, rtol=1e-2, atol=1e-2), (out, ref)

    print("KERNEL_OK")
</pallas_src>

<mosaic_0001>
module attributes {stable_mosaic.version = 11 : i64} {
  func.func @conv_act_kernel(%arg0: i32, %arg1: memref<512x48xbf16, #tpu.memory_space<vmem>>, %arg2: memref<48x8xbf16, #tpu.memory_space<vmem>>, %arg3: memref<1x8xf32, #tpu.memory_space<vmem>>, %arg4: memref<512x8xf32, #tpu.memory_space<vmem>>) attributes {dimension_semantics = [#tpu.dimension_semantics<parallel>], iteration_bounds = array<i64: 4>, scalar_prefetch = 0 : i64, scratch_operands = 0 : i64, tpu.core_type = #tpu.core_type<tc>, window_params = [{transform_indices = @transform_0, window_bounds = array<i64: 512, 48>}, {pipeline_mode = #tpu.pipeline_mode<synchronous>, transform_indices = @transform_1, window_bounds = array<i64: 48, 8>}, {pipeline_mode = #tpu.pipeline_mode<synchronous>, transform_indices = @transform_2, window_bounds = array<i64: 1, 8>}, {transform_indices = @transform_3, window_bounds = array<i64: 512, 8>}]} {
    %c0 = arith.constant 0 : index
    %c0_0 = arith.constant 0 : index
    %0 = vector.load %arg1[%c0, %c0_0] : memref<512x48xbf16, #tpu.memory_space<vmem>>, vector<512x48xbf16>
    %c0_1 = arith.constant 0 : index
    %c0_2 = arith.constant 0 : index
    %1 = vector.load %arg2[%c0_1, %c0_2] : memref<48x8xbf16, #tpu.memory_space<vmem>>, vector<48x8xbf16>
    %cst = arith.constant dense<0.000000e+00> : vector<512x8xf32>
    %2 = tpu.matmul %0, %1, %cst {dimension_numbers = #tpu.dot_dimension_numbers<[1], [0], [0], [1], [0, 0, 1, 1], [], []>} : vector<512x48xbf16>, vector<48x8xbf16>, vector<512x8xf32> -> vector<512x8xf32>
    %c0_3 = arith.constant 0 : index
    %c0_4 = arith.constant 0 : index
    %3 = vector.load %arg3[%c0_3, %c0_4] : memref<1x8xf32, #tpu.memory_space<vmem>>, vector<1x8xf32>
    %4 = vector.broadcast %3 : vector<1x8xf32> to vector<512x8xf32>
    %5 = arith.addf %2, %4 : vector<512x8xf32>
    %cst_5 = arith.constant 0.000000e+00 : f32
    %6 = vector.broadcast %cst_5 : f32 to vector<512x8xf32>
    %7 = arith.cmpf ogt, %5, %6 : vector<512x8xf32>
    %cst_6 = arith.constant 2.000000e-01 : f32
    %8 = vector.broadcast %cst_6 : f32 to vector<512x8xf32>
    %9 = arith.mulf %8, %5 : vector<512x8xf32>
    %10 = arith.select %7, %5, %9 : vector<512x8xi1>, vector<512x8xf32>
    %c0_7 = arith.constant 0 : index
    %c0_8 = arith.constant 0 : index
    %11 = vector.load %arg4[%c0_7, %c0_8] : memref<512x8xf32, #tpu.memory_space<vmem>>, vector<512x8xf32>
    tpu.vector_store %arg4[%c0_7, %c0_8], %10 {strides = array<i32>} : memref<512x8xf32, #tpu.memory_space<vmem>>, vector<512x8xf32>,
    return
  }
  func.func @transform_0(%arg0: i32) -> (i32, i32) {
    %c0_i32 = arith.constant 0 : i32
    %c0_i32_0 = arith.constant 0 : i32
    return %arg0, %c0_i32 : i32, i32
  }
  func.func @transform_1(%arg0: i32) -> (i32, i32) {
    %c0_i32 = arith.constant 0 : i32
    %c0_i32_0 = arith.constant 0 : i32
    %c0_i32_1 = arith.constant 0 : i32
    return %c0_i32, %c0_i32_0 : i32, i32
  }
  func.func @transform_2(%arg0: i32) -> (i32, i32) {
    %c0_i32 = arith.constant 0 : i32
    %c0_i32_0 = arith.constant 0 : i32
    %c0_i32_1 = arith.constant 0 : i32
    return %c0_i32, %c0_i32_0 : i32, i32
  }
  func.func @transform_3(%arg0: i32) -> (i32, i32) {
    %c0_i32 = arith.constant 0 : i32
    %c0_i32_0 = arith.constant 0 : i32
    return %arg0, %c0_i32 : i32, i32
  }
}

module attributes {stable_mosaic.version = 11 : i64} {
  func.func @conv_stats_kernel(%arg0: i32, %arg1: memref<512x128xbf16, #tpu.memory_space<vmem>>, %arg2: memref<128x16xbf16, #tpu.memory_space<vmem>>, %arg3: memref<512x16xf32, #tpu.memory_space<vmem>>, %arg4: memref<1x16xf32, #tpu.memory_space<vmem>>, %arg5: memref<1x16xf32, #tpu.memory_space<vmem>>) attributes {dimension_semantics = [#tpu.dimension_semantics<arbitrary>], iteration_bounds = array<i64: 1>, scalar_prefetch = 0 : i64, scratch_operands = 0 : i64, tpu.core_type = #tpu.core_type<tc>, window_params = [{transform_indices = @transform_0, window_bounds = array<i64: 512, 128>}, {pipeline_mode = #tpu.pipeline_mode<synchronous>, transform_indices = @transform_1, window_bounds = array<i64: 128, 16>}, {transform_indices = @transform_2, window_bounds = array<i64: 512, 16>}, {pipeline_mode = #tpu.pipeline_mode<synchronous>, transform_indices = @transform_3, window_bounds = array<i64: 1, 16>}, {pipeline_mode = #tpu.pipeline_mode<synchronous>, transform_indices = @transform_4, window_bounds = array<i64: 1, 16>}]} {
    %c0_i32 = arith.constant 0 : i32
    %0 = arith.cmpi eq, %arg0, %c0_i32 : i32
    %1 = arith.extui %0 : i1 to i32
    %c0_i32_0 = arith.constant 0 : i32
    %2 = arith.cmpi ne, %1, %c0_i32_0 : i32
    scf.if %2 {
      %cst_16 = arith.constant 0.000000e+00 : f32
      %18 = vector.broadcast %cst_16 : f32 to vector<1x16xf32>
      %c0_17 = arith.constant 0 : index
      %c0_18 = arith.constant 0 : index
      %19 = vector.load %arg4[%c0_17, %c0_18] : memref<1x16xf32, #tpu.memory_space<vmem>>, vector<1x16xf32>
      tpu.vector_store %arg4[%c0_17, %c0_18], %18 {strides = array<i32>} : memref<1x16xf32, #tpu.memory_space<vmem>>, vector<1x16xf32>,
      %cst_19 = arith.constant 0.000000e+00 : f32
      %20 = vector.broadcast %cst_19 : f32 to vector<1x16xf32>
      %c0_20 = arith.constant 0 : index
      %c0_21 = arith.constant 0 : index
      %21 = vector.load %arg5[%c0_20, %c0_21] : memref<1x16xf32, #tpu.memory_space<vmem>>, vector<1x16xf32>
      tpu.vector_store %arg5[%c0_20, %c0_21], %20 {strides = array<i32>} : memref<1x16xf32, #tpu.memory_space<vmem>>, vector<1x16xf32>,
    } else {
    }
    %c0 = arith.constant 0 : index
    %c0_1 = arith.constant 0 : index
    %3 = vector.load %arg1[%c0, %c0_1] : memref<512x128xbf16, #tpu.memory_space<vmem>>, vector<512x128xbf16>
    %c0_2 = arith.constant 0 : index
    %c0_3 = arith.constant 0 : index
    %4 = vector.load %arg2[%c0_2, %c0_3] : memref<128x16xbf16, #tpu.memory_space<vmem>>, vector<128x16xbf16>
    %cst = arith.constant dense<0.000000e+00> : vector<512x16xf32>
    %5 = tpu.matmul %3, %4, %cst {dimension_numbers = #tpu.dot_dimension_numbers<[1], [0], [0], [1], [0, 0, 1, 1], [], []>} : vector<512x128xbf16>, vector<128x16xbf16>, vector<512x16xf32> -> vector<512x16xf32>
    %c0_4 = arith.constant 0 : index
    %c0_5 = arith.constant 0 : index
    %6 = vector.load %arg3[%c0_4, %c0_5] : memref<512x16xf32, #tpu.memory_space<vmem>>, vector<512x16xf32>
    tpu.vector_store %arg3[%c0_4, %c0_5], %5 {strides = array<i32>} : memref<512x16xf32, #tpu.memory_space<vmem>>, vector<512x16xf32>,
    %c0_6 = arith.constant 0 : index
    %c0_7 = arith.constant 0 : index
    %7 = vector.load %arg4[%c0_6, %c0_7] : memref<1x16xf32, #tpu.memory_space<vmem>>, vector<1x16xf32>
    %cst_8 = arith.constant dense<0.000000e+00> : vector<16xf32>
    %8 = vector.multi_reduction <add>, %5, %cst_8 [0] : vector<512x16xf32> to vector<16xf32>
    %9 = vector.shape_cast %8 : vector<16xf32> to vector<1x16xf32>
    %10 = arith.addf %7, %9 : vector<1x16xf32>
    %c0_9 = arith.constant 0 : index
    %c0_10 = arith.constant 0 : index
    %11 = vector.load %arg4[%c0_9, %c0_10] : memref<1x16xf32, #tpu.memory_space<vmem>>, vector<1x16xf32>
    tpu.vector_store %arg4[%c0_9, %c0_10], %10 {strides = array<i32>} : memref<1x16xf32, #tpu.memory_space<vmem>>, vector<1x16xf32>,
    %c0_11 = arith.constant 0 : index
    %c0_12 = arith.constant 0 : index
    %12 = vector.load %arg5[%c0_11, %c0_12] : memref<1x16xf32, #tpu.memory_space<vmem>>, vector<1x16xf32>
    %13 = arith.mulf %5, %5 : vector<512x16xf32>
    %cst_13 = arith.constant dense<0.000000e+00> : vector<16xf32>
    %14 = vector.multi_reduction <add>, %13, %cst_13 [0] : vector<512x16xf32> to vector<16xf32>
    %15 = vector.shape_cast %14 : vector<16xf32> to vector<1x16xf32>
    %16 = arith.addf %12, %15 : vector<1x16xf32>
    %c0_14 = arith.constant 0 : index
    %c0_15 = arith.constant 0 : index
    %17 = vector.load %arg5[%c0_14, %c0_15] : memref<1x16xf32, #tpu.memory_space<vmem>>, vector<1x16xf32>
    tpu.vector_store %arg5[%c0_14, %c0_15], %16 {strides = array<i32>} : memref<1x16xf32, #tpu.memory_space<vmem>>, vector<1x16xf32>,
    return
  }
  func.func @transform_0(%arg0: i32) -> (i32, i32) {
    %c0_i32 = arith.constant 0 : i32
    %c0_i32_0 = arith.constant 0 : i32
    return %arg0, %c0_i32 : i32, i32
  }
  func.func @transform_1(%arg0: i32) -> (i32, i32) {
    %c0_i32 = arith.constant 0 : i32
    %c0_i32_0 = arith.constant 0 : i32
    %c0_i32_1 = arith.constant 0 : i32
    return %c0_i32, %c0_i32_0 : i32, i32
  }
  func.func @transform_2(%arg0: i32) -> (i32, i32) {
    %c0_i32 = arith.constant 0 : i32
    %c0_i32_0 = arith.constant 0 : i32
    return %arg0, %c0_i32 : i32, i32
  }
  func.func @transform_3(%arg0: i32) -> (i32, i32) {
    %c0_i32 = arith.constant 0 : i32
    %c0_i32_0 = arith.constant 0 : i32
    %c0_i32_1 = arith.constant 0 : i32
    return %c0_i32, %c0_i32_0 : i32, i32
  }
  func.func @transform_4(%arg0: i32) -> (i32, i32) {
    %c0_i32 = arith.constant 0 : i32
    %c0_i32_0 = arith.constant 0 : i32
    %c0_i32_1 = arith.constant 0 : i32
    return %c0_i32, %c0_i32_0 : i32, i32
  }
}

module attributes {stable_mosaic.version = 11 : i64} {
  func.func @bn_act_kernel(%arg0: i32, %arg1: memref<512x16xf32, #tpu.memory_space<vmem>>, %arg2: memref<1x16xf32, #tpu.memory_space<vmem>>, %arg3: memref<1x16xf32, #tpu.memory_space<vmem>>, %arg4: memref<512x16xf32, #tpu.memory_space<vmem>>) attributes {dimension_semantics = [#tpu.dimension_semantics<parallel>], iteration_bounds = array<i64: 1>, scalar_prefetch = 0 : i64, scratch_operands = 0 : i64, tpu.core_type = #tpu.core_type<tc>, window_params = [{transform_indices = @transform_0, window_bounds = array<i64: 512, 16>}, {pipeline_mode = #tpu.pipeline_mode<synchronous>, transform_indices = @transform_1, window_bounds = array<i64: 1, 16>}, {pipeline_mode = #tpu.pipeline_mode<synchronous>, transform_indices = @transform_2, window_bounds = array<i64: 1, 16>}, {transform_indices = @transform_3, window_bounds = array<i64: 512, 16>}]} {
    %c0 = arith.constant 0 : index
    %c0_0 = arith.constant 0 : index
    %0 = vector.load %arg1[%c0, %c0_0] : memref<512x16xf32, #tpu.memory_space<vmem>>, vector<512x16xf32>
    %c0_1 = arith.constant 0 : index
    %c0_2 = arith.constant 0 : index
    %1 = vector.load %arg2[%c0_1, %c0_2] : memref<1x16xf32, #tpu.memory_space<vmem>>, vector<1x16xf32>
    %2 = vector.broadcast %1 : vector<1x16xf32> to vector<512x16xf32>
    %3 = arith.mulf %0, %2 : vector<512x16xf32>
    %c0_3 = arith.constant 0 : index
    %c0_4 = arith.constant 0 : index
    %4 = vector.load %arg3[%c0_3, %c0_4] : memref<1x16xf32, #tpu.memory_space<vmem>>, vector<1x16xf32>
    %5 = vector.broadcast %4 : vector<1x16xf32> to vector<512x16xf32>
    %6 = arith.addf %3, %5 : vector<512x16xf32>
    %cst = arith.constant 0.000000e+00 : f32
    %7 = vector.broadcast %cst : f32 to vector<512x16xf32>
    %8 = arith.cmpf ogt, %6, %7 : vector<512x16xf32>
    %cst_5 = arith.constant 2.000000e-01 : f32
    %9 = vector.broadcast %cst_5 : f32 to vector<512x16xf32>
    %10 = arith.mulf %9, %6 : vector<512x16xf32>
    %11 = arith.select %8, %6, %10 : vector<512x16xi1>, vector<512x16xf32>
    %c0_6 = arith.constant 0 : index
    %c0_7 = arith.constant 0 : index
    %12 = vector.load %arg4[%c0_6, %c0_7] : memref<512x16xf32, #tpu.memory_space<vmem>>, vector<512x16xf32>
    tpu.vector_store %arg4[%c0_6, %c0_7], %11 {strides = array<i32>} : memref<512x16xf32, #tpu.memory_space<vmem>>, vector<512x16xf32>,
    return
  }
  func.func @transform_0(%arg0: i32) -> (i32, i32) {
    %c0_i32 = arith.constant 0 : i32
    %c0_i32_0 = arith.constant 0 : i32
    return %arg0, %c0_i32 : i32, i32
  }
  func.func @transform_1(%arg0: i32) -> (i32, i32) {
    %c0_i32 = arith.constant 0 : i32
    %c0_i32_0 = arith.constant 0 : i32
    %c0_i32_1 = arith.constant 0 : i32
    return %c0_i32, %c0_i32_0 : i32, i32
  }
  func.func @transform_2(%arg0: i32) -> (i32, i32) {
    %c0_i32 = arith.constant 0 : i32
    %c0_i32_0 = arith.constant 0 : i32
    %c0_i32_1 = arith.constant 0 : i32
    return %c0_i32, %c0_i32_0 : i32, i32
  }
  func.func @transform_3(%arg0: i32) -> (i32, i32) {
    %c0_i32 = arith.constant 0 : i32
    %c0_i32_0 = arith.constant 0 : i32
    return %arg0, %c0_i32 : i32, i32
  }
}

module attributes {stable_mosaic.version = 11 : i64} {
  func.func @conv_stats_kernel(%arg0: i32, %arg1: memref<128x256xbf16, #tpu.memory_space<vmem>>, %arg2: memref<256x32xbf16, #tpu.memory_space<vmem>>, %arg3: memref<128x32xf32, #tpu.memory_space<vmem>>, %arg4: memref<1x32xf32, #tpu.memory_space<vmem>>, %arg5: memref<1x32xf32, #tpu.memory_space<vmem>>) attributes {dimension_semantics = [#tpu.dimension_semantics<arbitrary>], iteration_bounds = array<i64: 1>, scalar_prefetch = 0 : i64, scratch_operands = 0 : i64, tpu.core_type = #tpu.core_type<tc>, window_params = [{transform_indices = @transform_0, window_bounds = array<i64: 128, 256>}, {pipeline_mode = #tpu.pipeline_mode<synchronous>, transform_indices = @transform_1, window_bounds = array<i64: 256, 32>}, {transform_indices = @transform_2, window_bounds = array<i64: 128, 32>}, {pipeline_mode = #tpu.pipeline_mode<synchronous>, transform_indices = @transform_3, window_bounds = array<i64: 1, 32>}, {pipeline_mode = #tpu.pipeline_mode<synchronous>, transform_indices = @transform_4, window_bounds = array<i64: 1, 32>}]} {
    %c0_i32 = arith.constant 0 : i32
    %0 = arith.cmpi eq, %arg0, %c0_i32 : i32
    %1 = arith.extui %0 : i1 to i32
    %c0_i32_0 = arith.constant 0 : i32
    %2 = arith.cmpi ne, %1, %c0_i32_0 : i32
    scf.if %2 {
      %cst_16 = arith.constant 0.000000e+00 : f32
      %18 = vector.broadcast %cst_16 : f32 to vector<1x32xf32>
      %c0_17 = arith.constant 0 : index
      %c0_18 = arith.constant 0 : index
      %19 = vector.load %arg4[%c0_17, %c0_18] : memref<1x32xf32, #tpu.memory_space<vmem>>, vector<1x32xf32>
      tpu.vector_store %arg4[%c0_17, %c0_18], %18 {strides = array<i32>} : memref<1x32xf32, #tpu.memory_space<vmem>>, vector<1x32xf32>,
      %cst_19 = arith.constant 0.000000e+00 : f32
      %20 = vector.broadcast %cst_19 : f32 to vector<1x32xf32>
      %c0_20 = arith.constant 0 : index
      %c0_21 = arith.constant 0 : index
      %21 = vector.load %arg5[%c0_20, %c0_21] : memref<1x32xf32, #tpu.memory_space<vmem>>, vector<1x32xf32>
      tpu.vector_store %arg5[%c0_20, %c0_21], %20 {strides = array<i32>} : memref<1x32xf32, #tpu.memory_space<vmem>>, vector<1x32xf32>,
    } else {
    }
    %c0 = arith.constant 0 : index
    %c0_1 = arith.constant 0 : index
    %3 = vector.load %arg1[%c0, %c0_1] : memref<128x256xbf16, #tpu.memory_space<vmem>>, vector<128x256xbf16>
    %c0_2 = arith.constant 0 : index
    %c0_3 = arith.constant 0 : index
    %4 = vector.load %arg2[%c0_2, %c0_3] : memref<256x32xbf16, #tpu.memory_space<vmem>>, vector<256x32xbf16>
    %cst = arith.constant dense<0.000000e+00> : vector<128x32xf32>
    %5 = tpu.matmul %3, %4, %cst {dimension_numbers = #tpu.dot_dimension_numbers<[1], [0], [0], [1], [0, 0, 1, 1], [], []>} : vector<128x256xbf16>, vector<256x32xbf16>, vector<128x32xf32> -> vector<128x32xf32>
    %c0_4 = arith.constant 0 : index
    %c0_5 = arith.constant 0 : index
    %6 = vector.load %arg3[%c0_4, %c0_5] : memref<128x32xf32, #tpu.memory_space<vmem>>, vector<128x32xf32>
    tpu.vector_store %arg3[%c0_4, %c0_5], %5 {strides = array<i32>} : memref<128x32xf32, #tpu.memory_space<vmem>>, vector<128x32xf32>,
    %c0_6 = arith.constant 0 : index
    %c0_7 = arith.constant 0 : index
    %7 = vector.load %arg4[%c0_6, %c0_7] : memref<1x32xf32, #tpu.memory_space<vmem>>, vector<1x32xf32>
    %cst_8 = arith.constant dense<0.000000e+00> : vector<32xf32>
    %8 = vector.multi_reduction <add>, %5, %cst_8 [0] : vector<128x32xf32> to vector<32xf32>
    %9 = vector.shape_cast %8 : vector<32xf32> to vector<1x32xf32>
    %10 = arith.addf %7, %9 : vector<1x32xf32>
    %c0_9 = arith.constant 0 : index
    %c0_10 = arith.constant 0 : index
    %11 = vector.load %arg4[%c0_9, %c0_10] : memref<1x32xf32, #tpu.memory_space<vmem>>, vector<1x32xf32>
    tpu.vector_store %arg4[%c0_9, %c0_10], %10 {strides = array<i32>} : memref<1x32xf32, #tpu.memory_space<vmem>>, vector<1x32xf32>,
    %c0_11 = arith.constant 0 : index
    %c0_12 = arith.constant 0 : index
    %12 = vector.load %arg5[%c0_11, %c0_12] : memref<1x32xf32, #tpu.memory_space<vmem>>, vector<1x32xf32>
    %13 = arith.mulf %5, %5 : vector<128x32xf32>
    %cst_13 = arith.constant dense<0.000000e+00> : vector<32xf32>
    %14 = vector.multi_reduction <add>, %13, %cst_13 [0] : vector<128x32xf32> to vector<32xf32>
    %15 = vector.shape_cast %14 : vector<32xf32> to vector<1x32xf32>
    %16 = arith.addf %12, %15 : vector<1x32xf32>
    %c0_14 = arith.constant 0 : index
    %c0_15 = arith.constant 0 : index
    %17 = vector.load %arg5[%c0_14, %c0_15] : memref<1x32xf32, #tpu.memory_space<vmem>>, vector<1x32xf32>
    tpu.vector_store %arg5[%c0_14, %c0_15], %16 {strides = array<i32>} : memref<1x32xf32, #tpu.memory_space<vmem>>, vector<1x32xf32>,
    return
  }
  func.func @transform_0(%arg0: i32) -> (i32, i32) {
    %c0_i32 = arith.constant 0 : i32
    %c0_i32_0 = arith.constant 0 : i32
    return %arg0, %c0_i32 : i32, i32
  }
  func.func @transform_1(%arg0: i32) -> (i32, i32) {
    %c0_i32 = arith.constant 0 : i32
    %c0_i32_0 = arith.constant 0 : i32
    %c0_i32_1 = arith.constant 0 : i32
    return %c0_i32, %c0_i32_0 : i32, i32
  }
  func.func @transform_2(%arg0: i32) -> (i32, i32) {
    %c0_i32 = arith.constant 0 : i32
    %c0_i32_0 = arith.constant 0 : i32
    return %arg0, %c0_i32 : i32, i32
  }
  func.func @transform_3(%arg0: i32) -> (i32, i32) {
    %c0_i32 = arith.constant 0 : i32
    %c0_i32_0 = arith.constant 0 : i32
    %c0_i32_1 = arith.constant 0 : i32
    return %c0_i32, %c0_i32_0 : i32, i32
  }
  func.func @transform_4(%arg0: i32) -> (i32, i32) {
    %c0_i32 = arith.constant 0 : i32
    %c0_i32_0 = arith.constant 0 : i32
    %c0_i32_1 = arith.constant 0 : i32
    return %c0_i32, %c0_i32_0 : i32, i32
  }
}

module attributes {stable_mosaic.version = 11 : i64} {
  func.func @bn_act_kernel(%arg0: i32, %arg1: memref<128x32xf32, #tpu.memory_space<vmem>>, %arg2: memref<1x32xf32, #tpu.memory_space<vmem>>, %arg3: memref<1x32xf32, #tpu.memory_space<vmem>>, %arg4: memref<128x32xf32, #tpu.memory_space<vmem>>) attributes {dimension_semantics = [#tpu.dimension_semantics<parallel>], iteration_bounds = array<i64: 1>, scalar_prefetch = 0 : i64, scratch_operands = 0 : i64, tpu.core_type = #tpu.core_type<tc>, window_params = [{transform_indices = @transform_0, window_bounds = array<i64: 128, 32>}, {pipeline_mode = #tpu.pipeline_mode<synchronous>, transform_indices = @transform_1, window_bounds = array<i64: 1, 32>}, {pipeline_mode = #tpu.pipeline_mode<synchronous>, transform_indices = @transform_2, window_bounds = array<i64: 1, 32>}, {transform_indices = @transform_3, window_bounds = array<i64: 128, 32>}]} {
    %c0 = arith.constant 0 : index
    %c0_0 = arith.constant 0 : index
    %0 = vector.load %arg1[%c0, %c0_0] : memref<128x32xf32, #tpu.memory_space<vmem>>, vector<128x32xf32>
    %c0_1 = arith.constant 0 : index
    %c0_2 = arith.constant 0 : index
    %1 = vector.load %arg2[%c0_1, %c0_2] : memref<1x32xf32, #tpu.memory_space<vmem>>, vector<1x32xf32>
    %2 = vector.broadcast %1 : vector<1x32xf32> to vector<128x32xf32>
    %3 = arith.mulf %0, %2 : vector<128x32xf32>
    %c0_3 = arith.constant 0 : index
    %c0_4 = arith.constant 0 : index
    %4 = vector.load %arg3[%c0_3, %c0_4] : memref<1x32xf32, #tpu.memory_space<vmem>>, vector<1x32xf32>
    %5 = vector.broadcast %4 : vector<1x32xf32> to vector<128x32xf32>
    %6 = arith.addf %3, %5 : vector<128x32xf32>
    %cst = arith.constant 0.000000e+00 : f32
    %7 = vector.broadcast %cst : f32 to vector<128x32xf32>
    %8 = arith.cmpf ogt, %6, %7 : vector<128x32xf32>
    %cst_5 = arith.constant 2.000000e-01 : f32
    %9 = vector.broadcast %cst_5 : f32 to vector<128x32xf32>
    %10 = arith.mulf %9, %6 : vector<128x32xf32>
    %11 = arith.select %8, %6, %10 : vector<128x32xi1>, vector<128x32xf32>
    %c0_6 = arith.constant 0 : index
    %c0_7 = arith.constant 0 : index
    %12 = vector.load %arg4[%c0_6, %c0_7] : memref<128x32xf32, #tpu.memory_space<vmem>>, vector<128x32xf32>
    tpu.vector_store %arg4[%c0_6, %c0_7], %11 {strides = array<i32>} : memref<128x32xf32, #tpu.memory_space<vmem>>, vector<128x32xf32>,
    return
  }
  func.func @transform_0(%arg0: i32) -> (i32, i32) {
    %c0_i32 = arith.constant 0 : i32
    %c0_i32_0 = arith.constant 0 : i32
    return %arg0, %c0_i32 : i32, i32
  }
  func.func @transform_1(%arg0: i32) -> (i32, i32) {
    %c0_i32 = arith.constant 0 : i32
    %c0_i32_0 = arith.constant 0 : i32
    %c0_i32_1 = arith.constant 0 : i32
    return %c0_i32, %c0_i32_0 : i32, i32
  }
  func.func @transform_2(%arg0: i32) -> (i32, i32) {
    %c0_i32 = arith.constant 0 : i32
    %c0_i32_0 = arith.constant 0 : i32
    %c0_i32_1 = arith.constant 0 : i32
    return %c0_i32, %c0_i32_0 : i32, i32
  }
  func.func @transform_3(%arg0: i32) -> (i32, i32) {
    %c0_i32 = arith.constant 0 : i32
    %c0_i32_0 = arith.constant 0 : i32
    return %arg0, %c0_i32 : i32, i32
  }
}

module attributes {stable_mosaic.version = 11 : i64} {
  func.func @conv_stats_kernel(%arg0: i32, %arg1: memref<32x512xbf16, #tpu.memory_space<vmem>>, %arg2: memref<512x64xbf16, #tpu.memory_space<vmem>>, %arg3: memref<32x64xf32, #tpu.memory_space<vmem>>, %arg4: memref<1x64xf32, #tpu.memory_space<vmem>>, %arg5: memref<1x64xf32, #tpu.memory_space<vmem>>) attributes {dimension_semantics = [#tpu.dimension_semantics<arbitrary>], iteration_bounds = array<i64: 1>, scalar_prefetch = 0 : i64, scratch_operands = 0 : i64, tpu.core_type = #tpu.core_type<tc>, window_params = [{transform_indices = @transform_0, window_bounds = array<i64: 32, 512>}, {pipeline_mode = #tpu.pipeline_mode<synchronous>, transform_indices = @transform_1, window_bounds = array<i64: 512, 64>}, {transform_indices = @transform_2, window_bounds = array<i64: 32, 64>}, {pipeline_mode = #tpu.pipeline_mode<synchronous>, transform_indices = @transform_3, window_bounds = array<i64: 1, 64>}, {pipeline_mode = #tpu.pipeline_mode<synchronous>, transform_indices = @transform_4, window_bounds = array<i64: 1, 64>}]} {
    %c0_i32 = arith.constant 0 : i32
    %0 = arith.cmpi eq, %arg0, %c0_i32 : i32
    %1 = arith.extui %0 : i1 to i32
    %c0_i32_0 = arith.constant 0 : i32
    %2 = arith.cmpi ne, %1, %c0_i32_0 : i32
    scf.if %2 {
      %cst_16 = arith.constant 0.000000e+00 : f32
      %18 = vector.broadcast %cst_16 : f32 to vector<1x64xf32>
      %c0_17 = arith.constant 0 : index
      %c0_18 = arith.constant 0 : index
      %19 = vector.load %arg4[%c0_17, %c0_18] : memref<1x64xf32, #tpu.memory_space<vmem>>, vector<1x64xf32>
      tpu.vector_store %arg4[%c0_17, %c0_18], %18 {strides = array<i32>} : memref<1x64xf32, #tpu.memory_space<vmem>>, vector<1x64xf32>,
      %cst_19 = arith.constant 0.000000e+00 : f32
      %20 = vector.broadcast %cst_19 : f32 to vector<1x64xf32>
      %c0_20 = arith.constant 0 : index
      %c0_21 = arith.constant 0 : index
      %21 = vector.load %arg5[%c0_20, %c0_21] : memref<1x64xf32, #tpu.memory_space<vmem>>, vector<1x64xf32>
      tpu.vector_store %arg5[%c0_20, %c0_21], %20 {strides = array<i32>} : memref<1x64xf32, #tpu.memory_space<vmem>>, vector<1x64xf32>,
    } else {
    }
    %c0 = arith.constant 0 : index
    %c0_1 = arith.constant 0 : index
    %3 = vector.load %arg1[%c0, %c0_1] : memref<32x512xbf16, #tpu.memory_space<vmem>>, vector<32x512xbf16>
    %c0_2 = arith.constant 0 : index
    %c0_3 = arith.constant 0 : index
    %4 = vector.load %arg2[%c0_2, %c0_3] : memref<512x64xbf16, #tpu.memory_space<vmem>>, vector<512x64xbf16>
    %cst = arith.constant dense<0.000000e+00> : vector<32x64xf32>
    %5 = tpu.matmul %3, %4, %cst {dimension_numbers = #tpu.dot_dimension_numbers<[1], [0], [0], [1], [0, 0, 1, 1], [], []>} : vector<32x512xbf16>, vector<512x64xbf16>, vector<32x64xf32> -> vector<32x64xf32>
    %c0_4 = arith.constant 0 : index
    %c0_5 = arith.constant 0 : index
    %6 = vector.load %arg3[%c0_4, %c0_5] : memref<32x64xf32, #tpu.memory_space<vmem>>, vector<32x64xf32>
    tpu.vector_store %arg3[%c0_4, %c0_5], %5 {strides = array<i32>} : memref<32x64xf32, #tpu.memory_space<vmem>>, vector<32x64xf32>,
    %c0_6 = arith.constant 0 : index
    %c0_7 = arith.constant 0 : index
    %7 = vector.load %arg4[%c0_6, %c0_7] : memref<1x64xf32, #tpu.memory_space<vmem>>, vector<1x64xf32>
    %cst_8 = arith.constant dense<0.000000e+00> : vector<64xf32>
    %8 = vector.multi_reduction <add>, %5, %cst_8 [0] : vector<32x64xf32> to vector<64xf32>
    %9 = vector.shape_cast %8 : vector<64xf32> to vector<1x64xf32>
    %10 = arith.addf %7, %9 : vector<1x64xf32>
    %c0_9 = arith.constant 0 : index
    %c0_10 = arith.constant 0 : index
    %11 = vector.load %arg4[%c0_9, %c0_10] : memref<1x64xf32, #tpu.memory_space<vmem>>, vector<1x64xf32>
    tpu.vector_store %arg4[%c0_9, %c0_10], %10 {strides = array<i32>} : memref<1x64xf32, #tpu.memory_space<vmem>>, vector<1x64xf32>,
    %c0_11 = arith.constant 0 : index
    %c0_12 = arith.constant 0 : index
    %12 = vector.load %arg5[%c0_11, %c0_12] : memref<1x64xf32, #tpu.memory_space<vmem>>, vector<1x64xf32>
    %13 = arith.mulf %5, %5 : vector<32x64xf32>
    %cst_13 = arith.constant dense<0.000000e+00> : vector<64xf32>
    %14 = vector.multi_reduction <add>, %13, %cst_13 [0] : vector<32x64xf32> to vector<64xf32>
    %15 = vector.shape_cast %14 : vector<64xf32> to vector<1x64xf32>
    %16 = arith.addf %12, %15 : vector<1x64xf32>
    %c0_14 = arith.constant 0 : index
    %c0_15 = arith.constant 0 : index
    %17 = vector.load %arg5[%c0_14, %c0_15] : memref<1x64xf32, #tpu.memory_space<vmem>>, vector<1x64xf32>
    tpu.vector_store %arg5[%c0_14, %c0_15], %16 {strides = array<i32>} : memref<1x64xf32, #tpu.memory_space<vmem>>, vector<1x64xf32>,
    return
  }
  func.func @transform_0(%arg0: i32) -> (i32, i32) {
    %c0_i32 = arith.constant 0 : i32
    %c0_i32_0 = arith.constant 0 : i32
    return %arg0, %c0_i32 : i32, i32
  }
  func.func @transform_1(%arg0: i32) -> (i32, i32) {
    %c0_i32 = arith.constant 0 : i32
    %c0_i32_0 = arith.constant 0 : i32
    %c0_i32_1 = arith.constant 0 : i32
    return %c0_i32, %c0_i32_0 : i32, i32
  }
  func.func @transform_2(%arg0: i32) -> (i32, i32) {
    %c0_i32 = arith.constant 0 : i32
    %c0_i32_0 = arith.constant 0 : i32
    return %arg0, %c0_i32 : i32, i32
  }
  func.func @transform_3(%arg0: i32) -> (i32, i32) {
    %c0_i32 = arith.constant 0 : i32
    %c0_i32_0 = arith.constant 0 : i32
    %c0_i32_1 = arith.constant 0 : i32
    return %c0_i32, %c0_i32_0 : i32, i32
  }
  func.func @transform_4(%arg0: i32) -> (i32, i32) {
    %c0_i32 = arith.constant 0 : i32
    %c0_i32_0 = arith.constant 0 : i32
    %c0_i32_1 = arith.constant 0 : i32
    return %c0_i32, %c0_i32_0 : i32, i32
  }
}

module attributes {stable_mosaic.version = 11 : i64} {
  func.func @bn_act_kernel(%arg0: i32, %arg1: memref<32x64xf32, #tpu.memory_space<vmem>>, %arg2: memref<1x64xf32, #tpu.memory_space<vmem>>, %arg3: memref<1x64xf32, #tpu.memory_space<vmem>>, %arg4: memref<32x64xf32, #tpu.memory_space<vmem>>) attributes {dimension_semantics = [#tpu.dimension_semantics<parallel>], iteration_bounds = array<i64: 1>, scalar_prefetch = 0 : i64, scratch_operands = 0 : i64, tpu.core_type = #tpu.core_type<tc>, window_params = [{transform_indices = @transform_0, window_bounds = array<i64: 32, 64>}, {pipeline_mode = #tpu.pipeline_mode<synchronous>, transform_indices = @transform_1, window_bounds = array<i64: 1, 64>}, {pipeline_mode = #tpu.pipeline_mode<synchronous>, transform_indices = @transform_2, window_bounds = array<i64: 1, 64>}, {transform_indices = @transform_3, window_bounds = array<i64: 32, 64>}]} {
    %c0 = arith.constant 0 : index
    %c0_0 = arith.constant 0 : index
    %0 = vector.load %arg1[%c0, %c0_0] : memref<32x64xf32, #tpu.memory_space<vmem>>, vector<32x64xf32>
    %c0_1 = arith.constant 0 : index
    %c0_2 = arith.constant 0 : index
    %1 = vector.load %arg2[%c0_1, %c0_2] : memref<1x64xf32, #tpu.memory_space<vmem>>, vector<1x64xf32>
    %2 = vector.broadcast %1 : vector<1x64xf32> to vector<32x64xf32>
    %3 = arith.mulf %0, %2 : vector<32x64xf32>
    %c0_3 = arith.constant 0 : index
    %c0_4 = arith.constant 0 : index
    %4 = vector.load %arg3[%c0_3, %c0_4] : memref<1x64xf32, #tpu.memory_space<vmem>>, vector<1x64xf32>
    %5 = vector.broadcast %4 : vector<1x64xf32> to vector<32x64xf32>
    %6 = arith.addf %3, %5 : vector<32x64xf32>
    %cst = arith.constant 0.000000e+00 : f32
    %7 = vector.broadcast %cst : f32 to vector<32x64xf32>
    %8 = arith.cmpf ogt, %6, %7 : vector<32x64xf32>
    %cst_5 = arith.constant 2.000000e-01 : f32
    %9 = vector.broadcast %cst_5 : f32 to vector<32x64xf32>
    %10 = arith.mulf %9, %6 : vector<32x64xf32>
    %11 = arith.select %8, %6, %10 : vector<32x64xi1>, vector<32x64xf32>
    %c0_6 = arith.constant 0 : index
    %c0_7 = arith.constant 0 : index
    %12 = vector.load %arg4[%c0_6, %c0_7] : memref<32x64xf32, #tpu.memory_space<vmem>>, vector<32x64xf32>
    tpu.vector_store %arg4[%c0_6, %c0_7], %11 {strides = array<i32>} : memref<32x64xf32, #tpu.memory_space<vmem>>, vector<32x64xf32>,
    return
  }
  func.func @transform_0(%arg0: i32) -> (i32, i32) {
    %c0_i32 = arith.constant 0 : i32
    %c0_i32_0 = arith.constant 0 : i32
    return %arg0, %c0_i32 : i32, i32
  }
  func.func @transform_1(%arg0: i32) -> (i32, i32) {
    %c0_i32 = arith.constant 0 : i32
    %c0_i32_0 = arith.constant 0 : i32
    %c0_i32_1 = arith.constant 0 : i32
    return %c0_i32, %c0_i32_0 : i32, i32
  }
  func.func @transform_2(%arg0: i32) -> (i32, i32) {
    %c0_i32 = arith.constant 0 : i32
    %c0_i32_0 = arith.constant 0 : i32
    %c0_i32_1 = arith.constant 0 : i32
    return %c0_i32, %c0_i32_0 : i32, i32
  }
  func.func @transform_3(%arg0: i32) -> (i32, i32) {
    %c0_i32 = arith.constant 0 : i32
    %c0_i32_0 = arith.constant 0 : i32
    return %arg0, %c0_i32 : i32, i32
  }
}

module attributes {stable_mosaic.version = 11 : i64} {
  func.func @conv_act_kernel(%arg0: i32, %arg1: memref<8x1024xbf16, #tpu.memory_space<vmem>>, %arg2: memref<1024x1xbf16, #tpu.memory_space<vmem>>, %arg3: memref<1x1xf32, #tpu.memory_space<vmem>>, %arg4: memref<8x1xf32, #tpu.memory_space<vmem>>) attributes {dimension_semantics = [#tpu.dimension_semantics<parallel>], iteration_bounds = array<i64: 1>, scalar_prefetch = 0 : i64, scratch_operands = 0 : i64, tpu.core_type = #tpu.core_type<tc>, window_params = [{transform_indices = @transform_0, window_bounds = array<i64: 8, 1024>}, {pipeline_mode = #tpu.pipeline_mode<synchronous>, transform_indices = @transform_1, window_bounds = array<i64: 1024, 1>}, {pipeline_mode = #tpu.pipeline_mode<synchronous>, transform_indices = @transform_2, window_bounds = array<i64: 1, 1>}, {transform_indices = @transform_3, window_bounds = array<i64: 8, 1>}]} {
    %c0 = arith.constant 0 : index
    %c0_0 = arith.constant 0 : index
    %0 = vector.load %arg1[%c0, %c0_0] : memref<8x1024xbf16, #tpu.memory_space<vmem>>, vector<8x1024xbf16>
    %c0_1 = arith.constant 0 : index
    %c0_2 = arith.constant 0 : index
    %1 = vector.load %arg2[%c0_1, %c0_2] : memref<1024x1xbf16, #tpu.memory_space<vmem>>, vector<1024x1xbf16>
    %cst = arith.constant dense<0.000000e+00> : vector<8x1xf32>
    %2 = tpu.matmul %0, %1, %cst {dimension_numbers = #tpu.dot_dimension_numbers<[1], [0], [0], [1], [0, 0, 1, 1], [], []>} : vector<8x1024xbf16>, vector<1024x1xbf16>, vector<8x1xf32> -> vector<8x1xf32>
    %c0_3 = arith.constant 0 : index
    %c0_4 = arith.constant 0 : index
    %3 = vector.load %arg3[%c0_3, %c0_4] : memref<1x1xf32, #tpu.memory_space<vmem>>, vector<1x1xf32>
    %4 = vector.broadcast %3 : vector<1x1xf32> to vector<8x1xf32>
    %5 = arith.addf %2, %4 : vector<8x1xf32>
    %c0_5 = arith.constant 0 : index
    %c0_6 = arith.constant 0 : index
    %6 = vector.load %arg4[%c0_5, %c0_6] : memref<8x1xf32, #tpu.memory_space<vmem>>, vector<8x1xf32>
    tpu.vector_store %arg4[%c0_5, %c0_6], %5 {strides = array<i32>} : memref<8x1xf32, #tpu.memory_space<vmem>>, vector<8x1xf32>,
    return
  }
  func.func @transform_0(%arg0: i32) -> (i32, i32) {
    %c0_i32 = arith.constant 0 : i32
    %c0_i32_0 = arith.constant 0 : i32
    return %arg0, %c0_i32 : i32, i32
  }
  func.func @transform_1(%arg0: i32) -> (i32, i32) {
    %c0_i32 = arith.constant 0 : i32
    %c0_i32_0 = arith.constant 0 : i32
    %c0_i32_1 = arith.constant 0 : i32
    return %c0_i32, %c0_i32_0 : i32, i32
  }
  func.func @transform_2(%arg0: i32) -> (i32, i32) {
    %c0_i32 = arith.constant 0 : i32
    %c0_i32_0 = arith.constant 0 : i32
    %c0_i32_1 = arith.constant 0 : i32
    return %c0_i32, %c0_i32_0 : i32, i32
  }
  func.func @transform_3(%arg0: i32) -> (i32, i32) {
    %c0_i32 = arith.constant 0 : i32
    %c0_i32_0 = arith.constant 0 : i32
    return %arg0, %c0_i32 : i32, i32
  }
}

</mosaic_0001>

<bundles_post_ra>
// kernel: discriminator_dc_forward.8
= control target key start
LH: loop header
LB: loop body
LE: loop exit
PB: predicated region body
PF: predicated region fallthrough
CT: control target
= control target key end

     0   :  { %8 = vsyncpa [#allocation3], 0  ;;  %s2210_s0 = inlined_call_operand.hbm [shape: bf16[2048,48], index: 0, kind: input, shape index: {}]   ;;  %s2211_s1 = inlined_call_operand.hbm [shape: bf16[48,8], index: 1, kind: input, shape index: {}]   ;;  %s2212_s2 = inlined_call_operand.hbm [shape: f32[1,8], index: 2, kind: input, shape index: {}]   ;;  %s2213_s3 = inlined_call_operand.hbm [shape: f32[2048,8], index: 3, kind: output, shape index: {}]  }
   0x1   :  { %10 = vsyncpa [#allocation3 + $0x1], 0 }
   0x2   :  { %11 = vsyncpa [#allocation6], 0 }
   0x3   :  { %12 = vsyncpa [#allocation4], 0 }
   0x4   :  { %14 = vsyncpa [#allocation4 + $0x1], 0  ;;  %s1714_s12 = smov 0   ;;  %s1716_s13 = smov 0  }
   0x5   :  { %s1718_s14 = smov 0   ;;  %s1720_s15 = smov 0  }
   0x6 LB: > { %s1735_s16 = sadd.s32 4294967295, %s1684_s15   ;;  %s1223_s17 = sadd.s32 4294967294, %s1684_s15   ;;  %s1684_s15 = sphi %s1720_s15, %s2232_s15   ;;  %s1680_s14 = sphi %s1718_s14, %s2231_s14   ;;  %s1676_s13 = sphi %s1716_s13, %s2230_s13   ;;  %s1672_s12 = sphi %s1714_s12, %s2229_s12  }
   0x7   : > { %p40_p0 = scmp.ne.s32.totalorder %s1676_s13, %s1672_s12  ;;  %p2214_p1 = scmp.eq.s32.totalorder %s1735_s16, 0 }
   0x8   : > { %p112_p3 = scmp.eq.s32.totalorder %s1223_s17, 3  ;;  %p1224_p5 = scmp.ge.s32.totalorder %s1684_s15, 1 }
   0x9   : > { %p1744_p4 = por %p2214_p1, %p40_p0  ;;  %p119_p7 = scmp.lt.s32.totalorder %s1684_s15, 5 }
   0xa   : > { %p1749_p6 = por %p112_p3, %p40_p0  ;;  %s1686_s21 = smov [#allocation5]  }
   0xb   : > { %s2217_s18 = scalar_select %p1744_p4, 1, 0 }
   0xc   : > { %s2218_s19 = scalar_select %p1749_p6, 1, 0 }
   0xd   : > { %p1754_p8 = pnand %p1224_p5, %p119_p7  ;;  %s131_s22 = sshll.u32 %s1686_s21, 4  ;;  %s132_s22 = int_to_ptr.vmem [resolvable:$true] %s131_s22 }
   0xe   : > { %s1687_s24 = smov [#allocation7]   ;;  %s1528_s28 = scalar_lea.hbm %s2211_s1, 384 }
   0xf   : > { %s2219_s20 = scalar_select %p1754_p8, 1, 0 }
  0x10   : > { %p1434_p9 = pneg %p1754_p8  ;;  %s145_s25 = sshll.u32 %s1687_s24, 4  ;;  %s1766_s25 = int_to_ptr.vmem [resolvable:$true] %s145_s25 }
  0x11   : > { %p1529_p11 = scmp.ne.s32.totalorder %s2211_s1, %s1528_s28  ;;  %p1535_p3 = scmp.lt.u32.totalorder %s1528_s28, %s2211_s1 }
  0x12   : > { %p1762_p10 = pnand %p1434_p9, %p2214_p1 }
  0x14   : > { %p1530_p12 = pneg %p1762_p10 }
  0x16   : > { %p1531_p13 = pnand %p1530_p12, %p1529_p11 }
  0x18   : > { %p1532_p0 = pneg %p1531_p13 }
  0x1a   : > { %p1537_p5 = pnand %p1535_p3, %p1532_p0 }
  0x1c   : > { %1540 = shalt.err (!%p1537_p5)
}
  0x1d   : > { %s1541_s6 = scalar_lea.vmem %s132_s22, 384  ;;  %p1549_p2 = scmp.lt.s32.totalorder %s132_s22, %s132_s22 }
  0x1e   : > { %p1542_p7 = scmp.ne.s32.totalorder %s132_s22, %s1541_s6  ;;  %p1550_p6 = scmp.lt.s32.totalorder %s1541_s6, %s1541_s6 }
  0x20   : > { %p1544_p9 = pnand %p1542_p7, %p1530_p12  ;;  %p1551_p4 = por %p1550_p6, %p1549_p2 }
  0x22   : > { %p1545_p1 = pneg %p1544_p9 }
  0x24   : > { %p1552_p8 = pnand %p1551_p4, %p1545_p1 }
  0x26   : > { %1555 = shalt.err (!%p1552_p8)
}
  0x27   : > { %s1688_s7 = smov 64   ;;  %s1689_s8 = smov 4  }
  0x28   : > { %1437 = dma.hbm_to_vmem [thread:$0]  (!%p1762_p10), %s2211_s1, 384, %s132_s22, [#allocation6], %s1688_s7, %s1688_s7, %s1689_s8  }
  0x29   : > { %s1556_s21 = scalar_lea.hbm %s2212_s2, 16 }
  0x2a   : > { %p1557_p1 = scmp.ne.s32.totalorder %s2212_s2, %s1556_s21  ;;  %p1563_p6 = scmp.lt.u32.totalorder %s1556_s21, %s2212_s2 }
  0x2c   : > { %p1559_p2 = pnand %p1557_p1, %p1530_p12 }
  0x2e   : > { %p1560_p4 = pneg %p1559_p2 }
  0x30   : > { %p1565_p8 = pnand %p1563_p6, %p1560_p4 }
  0x32   : > { %1568 = shalt.err (!%p1565_p8)
}
  0x33   : > { %s1569_s22 = scalar_lea.vmem %s1766_s25, 16  ;;  %s1576_s29 = scalar_lea.vmem %s1766_s25, 32 }
  0x34   : > { %p1570_p11 = scmp.ne.s32.totalorder %s1766_s25, %s1569_s22  ;;  %p1577_p3 = scmp.lt.s32.totalorder %s1766_s25, %s1766_s25 }
  0x35   : > { %p1578_p5 = scmp.lt.s32.totalorder %s1576_s29, %s1569_s22 }
  0x36   : > { %p1572_p13 = pnand %p1570_p11, %p1530_p12 }
  0x37   : > { %p1579_p7 = por %p1578_p5, %p1577_p3 }
  0x38   : > { %p1573_p0 = pneg %p1572_p13 }
  0x3a   : > { %p1580_p9 = pnand %p1579_p7, %p1573_p0 }
  0x3c   : > { %1583 = shalt.err (!%p1580_p9)
}
  0x3d   : > { %1440 = dma.hbm_to_vmem [thread:$0]  (!%p1762_p10), %s2212_s2, 16, %s1766_s25, [#allocation6]  }
  0x3e   : > { %s1820_s5 = sadd.s32 1, %s1684_s15   ;;  %s27_s23 = sadd.s32 1, %s1680_s14 }
  0x3f   : > { %s24_s6 = ssub.s32 %s1684_s15, %s1820_s5  ;;  %p34_p12 = scmp.ne.s32.totalorder %s1680_s14, %s1676_s13 }
  0x40   : > { %p25_p1 = scmp.eq.s32.totalorder %s24_s6, 0  ;;  %p35_p2 = scmp.eq.s32.totalorder %s1684_s15, 0 }
  0x41   : > { %p2221_p4 = scmp.eq.s32.totalorder %s1735_s16, 3  ;;  %p1451_p8 = scmp.lt.s32.totalorder %s1684_s15, 4 }
  0x42   : > { %s1836_s10 = scalar_select %p25_p1, %s1680_s14, %s27_s23  }
  0x43   : > { %p1830_p6 = por %p2221_p4, %p34_p12  ;;  %p36_p11 = por %p35_p2, %p34_p12 }
  0x44   : > { %s156_s11 = sand.u32 1, %s1680_s14   ;;  %s1309_s25 = sshll.u32 %s1684_s15, 12 }
  0x45   : > { %s1228_s17 = sshll.u32 %s156_s11, 8  ;;  %s1843_s26 = scalar_lea.hbm %s2210_s0, %s1309_s25 }
  0x46   : > { %s160_s27 = scalar_lea.vmem [#allocation2], %s1228_s17  ;;  %p1847_p10 = pnand %p1451_p8, %p36_p11 }
  0x47   : > { %s167_s28 = sshll.u32 %s160_s27, 4  ;;  %s1851_s29 = scalar_lea.sflag [#allocation3], %s156_s11  ;;  %s1845_s28 = int_to_ptr.vmem [resolvable:$true] %s167_s28 }
  0x48   : > { %s1584_s30 = scalar_lea.hbm %s1843_s26, 4096  ;;  %p1586_p0 = pneg %p1847_p10 }
  0x49   : > { %p1585_p13 = scmp.ne.s32.totalorder %s1843_s26, %s1584_s30  ;;  %s1589_s6 = scalar_lea.hbm %s2210_s0, 16384 }
  0x4a   : > { %p1590_p7 = scmp.lt.u32.totalorder %s1843_s26, %s2210_s0  ;;  %p1591_p9 = scmp.lt.u32.totalorder %s1589_s6, %s1584_s30 }
  0x4b   : > { %p1587_p3 = pnand %p1586_p0, %p1585_p13  ;;  %p1593_p1 = scmp.lt.u32.totalorder %s1584_s30, %s1843_s26 }
  0x4c   : > { %p1592_p12 = por %p1591_p9, %p1590_p7 }
  0x4d   : > { %p1588_p5 = pneg %p1587_p3 }
  0x4e   : > { %p1594_p2 = por %p1593_p1, %p1592_p12 }
  0x50   : > { %p1595_p4 = pnand %p1594_p2, %p1588_p5 }
  0x52   : > { %1598 = shalt.err (!%p1595_p4)
}
  0x53   : > { %s1599_s11 = scalar_lea.vmem %s1845_s28, 4096  ;;  %s1690_s21 = smov [#allocation2]  }
  0x54   : > { %p1600_p8 = scmp.ne.s32.totalorder %s1845_s28, %s1599_s11  ;;  %s1604_s24 = sshll.u32 %s1690_s21, 4  ;;  %s1605_s24 = int_to_ptr.vmem [resolvable:$false] %s1604_s24 }
  0x55   : > { %s1606_s27 = scalar_lea.vmem %s1605_s24, 8192  ;;  %p1607_p3 = scmp.lt.s32.totalorder %s1845_s28, %s1605_s24 }
  0x56   : > { %p1602_p11 = pnand %p1600_p8, %p1586_p0  ;;  %p1608_p7 = scmp.lt.s32.totalorder %s1606_s27, %s1599_s11 }
  0x58   : > { %p1603_p13 = pneg %p1602_p11  ;;  %p1609_p9 = por %p1608_p7, %p1607_p3 }
  0x5a   : > { %p1610_p12 = pnand %p1609_p9, %p1603_p13 }
  0x5c   : > { %1613 = shalt.err (!%p1610_p12)
}
  0x5d   : > { %1444 = dma.hbm_to_vmem [thread:$0]  (!%p1847_p10), %s1843_s26, 4096, %s1845_s28, %s1851_s29, %s1688_s7, %s1688_s7, %s1689_s8  }
  0x5e   : > { %p2224_p0 = scmp.ne.s32.totalorder %s2219_s20, 0 }
  0x5f   : > { %s1885_s30 = sand.u32 (!%p2224_p0), 1, %s1676_s13   ;;  %p2225_p5 = scmp.ne.s32.totalorder (!%p2224_p0), %s2217_s18, 0 }
  0x60   : > { %179 = sbr.rel (%p2224_p0) target bundleno = 415 (0x19f), region = 32  ;;  %s1232_s4 = sshll.u32 (!%p2224_p0), %s1885_s30, 8 }
  0x61   : > { %s182_s23 = scalar_lea.sflag (!%p2224_p0), [#allocation3], %s1885_s30  ;;  %s1889_s6 = scalar_lea.vmem (!%p2224_p0), [#allocation2], %s1232_s4 }
  0x67   : > { %1659 = dma.done.wait (%p2225_p5), %s182_s23, 4096  }
  0x68   : > { %1661 = vsyncadd (%p2225_p5), %s182_s23, 4294963200  ;;  %p2226_p10 = scmp.eq.s32.totalorder %s1735_s16, 0 }
  0x6a   : > { %1663 = dma.done.wait (%p2226_p10), [#allocation6], 400   ;;  %p2227_p1 = pmov %p2226_p10 }
  0x6b   : > { %v1493_v0 = vld [vmem:[#allocation5] sm:$0xff]   ;;  %v1494_v1 = vld [vmem:[#allocation5 + $0x8] sm:$0xff]   ;;  %v1495_v2 = vld [vmem:[#allocation5 + $0x10] sm:$0xff]   ;;  %vm474_vm0 = vcmask 392192   ;;  %s1235_s18 = sshll.u32 %s1885_s30, 9  ;;  %vm1052_vm1 = vcmask 64512  }
  0x6c   : > { %1665 = vsyncadd (%p2227_p1), [#allocation6], 4294966896  ;;  %1346 = vmatprep.subr.bf16.mxu0 %v1493_v0  ;;  %1416 = vmatprep.subr.bf16.mxu1 %v1493_v0  ;;  %v1496_v3 = vld [vmem:[%s1889_s6] sm:$0xff]   ;;  %v1498_v5 = vld [vmem:[%s1889_s6 + $0x8] sm:$0xff]   ;;  %s1972_s20 = scalar_lea.vmem [#allocation8], %s1235_s18  ;;  %s1310_s7 = sshll.u32 %s1735_s16, 13 }
  0x6d   : > { %1347 = vmatpush3.bf16.msra.mxu0 %v1493_v0  ;;  %1419 = vmatpush3.bf16.msra.mxu1 %v1493_v0  ;;  %v1497_v4 = vld [vmem:[%s1889_s6 + $0x80] sm:$0xff]   ;;  %v1499_v6 = vld [vmem:[%s1889_s6 + $0x88] sm:$0xff]   ;;  %v1500_v7 = vld [vmem:[%s1889_s6 + $0x10] sm:$0xff]   ;;  %s1131_s8 = sshll.u32 %s1972_s20, 4  ;;  %s2157_s28 = scalar_lea.hbm %s2213_s3, %s1310_s7  ;;  %s2159_s8 = int_to_ptr.vmem [resolvable:$true] %s1131_s8 }
  0x6e   : > { %1348 = vmatprep.subr.bf16.mxu0 %v1494_v1  ;;  %1417 = vmatprep.subr.bf16.mxu1 %v1494_v1  ;;  %v1501_v8 = vld [vmem:[%s1889_s6 + $0x90] sm:$0xff]   ;;  %v1502_v9 = vld [vmem:[%s1889_s6 + $0x18] sm:$0xff]   ;;  %v1504_v11 = vld [vmem:[%s1889_s6 + $0x20] sm:$0xff]   ;;  %s1118_s22 = scalar_lea.sflag [#allocation4], %s1885_s30  ;;  %s1614_s29 = scalar_lea.vmem %s2159_s8, 8192 }
  0x6f   : > { %1352 = vmatprep.mubr.msk.bf16.mxu0 %vm474_vm0, %v1496_v3  ;;  %1384 = vmatprep.mubr.msk.bf16.mxu1 %vm474_vm0, %v1497_v4  ;;  %v1503_v10 = vld [vmem:[%s1889_s6 + $0x98] sm:$0xff]   ;;  %v1505_v12 = vld [vmem:[%s1889_s6 + $0xa0] sm:$0xff]   ;;  %v1506_v13 = vld [vmem:[%s1889_s6 + $0x28] sm:$0xff]   ;;  %p1615_p2 = scmp.ne.s32.totalorder %s2159_s8, %s1614_s29  ;;  %s1691_s17 = smov [#allocation8]  }
  0x70   : > { %v1507_v14 = vld [vmem:[%s1889_s6 + $0xa8] sm:$0xff]   ;;  %v1508_v15 = vld [vmem:[%s1889_s6 + $0x30] sm:$0xff]   ;;  %v1510_v17 = vld [vmem:[%s1889_s6 + $0x38] sm:$0xff]   ;;  %s1618_s25 = sshll.u32 %s1691_s17, 4  ;;  %s1619_s25 = int_to_ptr.vmem [resolvable:$false] %s1618_s25 }
  0x71   : > { %1349 = vmatpush3.bf16.msra.mxu0 %v1494_v1  ;;  %1420 = vmatpush3.bf16.msra.mxu1 %v1494_v1  ;;  %v1509_v16 = vld [vmem:[%s1889_s6 + $0xb0] sm:$0xff]   ;;  %v1511_v18 = vld [vmem:[%s1889_s6 + $0xb8] sm:$0xff]   ;;  %v1512_v19 = vld [vmem:[%s1889_s6 + $0x40] sm:$0xff]   ;;  %p1616_p4 = pnand %p1615_p2, %p1830_p6  ;;  %s1620_s11 = scalar_lea.vmem %s1619_s25, 16384 }
  0x72   : > { %1350 = vmatprep.subr.bf16.mxu0 %v1495_v2  ;;  %1418 = vmatprep.subr.bf16.mxu1 %v1495_v2  ;;  %v1513_v20 = vld [vmem:[%s1889_s6 + $0xc0] sm:$0xff]   ;;  %v1514_v21 = vld [vmem:[%s1889_s6 + $0x48] sm:$0xff]   ;;  %v1516_v23 = vld [vmem:[%s1889_s6 + $0x50] sm:$0xff]   ;;  %p1621_p11 = scmp.lt.s32.totalorder %s2159_s8, %s1619_s25  ;;  %p1622_p13 = scmp.lt.s32.totalorder %s1620_s11, %s1614_s29 }
  0x73   : > { %v1515_v22 = vld [vmem:[%s1889_s6 + $0xc8] sm:$0xff]   ;;  %v1517_v24 = vld [vmem:[%s1889_s6 + $0xd0] sm:$0xff]   ;;  %v1518_v25 = vld [vmem:[%s1889_s6 + $0x58] sm:$0xff]   ;;  %p1617_p8 = pneg %p1616_p4 }
  0x74   : > { %v1519_v26 = vld [vmem:[%s1889_s6 + $0xd8] sm:$0xff]   ;;  %v1520_v27 = vld [vmem:[%s1889_s6 + $0x60] sm:$0xff]   ;;  %v1522_v29 = vld [vmem:[%s1889_s6 + $0x68] sm:$0xff]   ;;  %p1623_p3 = por %p1622_p13, %p1621_p11 }
  0x75   : > { %1351 = vmatpush3.bf16.msra.mxu0 %v1495_v2  ;;  %1421 = vmatpush3.bf16.msra.mxu1 %v1495_v2  ;;  %v1521_v28 = vld [vmem:[%s1889_s6 + $0xe0] sm:$0xff]   ;;  %v1523_v30 = vld [vmem:[%s1889_s6 + $0xe8] sm:$0xff]   ;;  %v1524_v31 = vld [vmem:[%s1889_s6 + $0x70] sm:$0xff]  }
  0x76   : > { %v1525_v32 = vld [vmem:[%s1889_s6 + $0xf0] sm:$0xff]   ;;  %v1526_v33 = vld [vmem:[%s1889_s6 + $0x78] sm:$0xff]   ;;  %p1624_p7 = pnand %p1623_p3, %p1617_p8 }
  0x77   : > { %v1527_v34 = vld [vmem:[%s1889_s6 + $0xf8] sm:$0xff]  }
  0x78   : > { %1353 = vmatmul.mubr.msk.bf16.vlgmr.msra.gmra.mrb[0].mxu0 %vm474_vm0, %v1498_v5  ;;  %1385 = vmatmul.mubr.msk.bf16.vlgmr.msra.gmra.mrb[0].mxu1 %vm474_vm0, %v1499_v6  ;;  %v1963_v35 = vld [vmem:[#allocation7] ss:$0 sm:$0xff] }
  0x79   : > { %1356 = vmatprep.mubr.msk.bf16.mxu0 %vm474_vm0, %v1500_v7  ;;  %1388 = vmatprep.mubr.msk.bf16.mxu1 %vm474_vm0, %v1501_v8 }
  0x80   : > { %1357 = vmatmul.mubr.msk.bf16.gmra.mrb[4].mxu0 %vm474_vm0, %v1502_v9  ;;  %1389 = vmatmul.mubr.msk.bf16.gmra.mrb[4].mxu1 %vm474_vm0, %v1503_v10 }
  0x81   : > { %1360 = vmatprep.mubr.msk.bf16.mxu0 %vm474_vm0, %v1504_v11  ;;  %1392 = vmatprep.mubr.msk.bf16.mxu1 %vm474_vm0, %v1505_v12 }
  0x88   : > { %1361 = vmatmul.mubr.msk.bf16.gmra.mrb[8].mxu0 %vm474_vm0, %v1506_v13  ;;  %1393 = vmatmul.mubr.msk.bf16.gmra.mrb[8].mxu1 %vm474_vm0, %v1507_v14 }
  0x89   : > { %1364 = vmatprep.mubr.msk.bf16.mxu0 %vm474_vm0, %v1508_v15  ;;  %1396 = vmatprep.mubr.msk.bf16.mxu1 %vm474_vm0, %v1509_v16 }
  0x90   : > { %1365 = vmatmul.mubr.msk.bf16.gmra.mrb[12].mxu0 %vm474_vm0, %v1510_v17  ;;  %1397 = vmatmul.mubr.msk.bf16.gmra.mrb[12].mxu1 %vm474_vm0, %v1511_v18 }
  0x91   : > { %1368 = vmatprep.mubr.msk.bf16.mxu0 %vm474_vm0, %v1512_v19  ;;  %1400 = vmatprep.mubr.msk.bf16.mxu1 %vm474_vm0, %v1513_v20 }
  0x98   : > { %1369 = vmatmul.mubr.msk.bf16.gmra.mrb[16].mxu0 %vm474_vm0, %v1514_v21  ;;  %1401 = vmatmul.mubr.msk.bf16.gmra.mrb[16].mxu1 %vm474_vm0, %v1515_v22 }
  0x99   : > { %1372 = vmatprep.mubr.msk.bf16.mxu0 %vm474_vm0, %v1516_v23  ;;  %1404 = vmatprep.mubr.msk.bf16.mxu1 %vm474_vm0, %v1517_v24 }
  0xa0   : > { %1373 = vmatmul.mubr.msk.bf16.gmra.mrb[20].mxu0 %vm474_vm0, %v1518_v25  ;;  %1405 = vmatmul.mubr.msk.bf16.gmra.mrb[20].mxu1 %vm474_vm0, %v1519_v26 }
  0xa1   : > { %1376 = vmatprep.mubr.msk.bf16.mxu0 %vm474_vm0, %v1520_v27  ;;  %1408 = vmatprep.mubr.msk.bf16.mxu1 %vm474_vm0, %v1521_v28 }
  0xa8   : > { %1377 = vmatmul.mubr.msk.bf16.gmra.mrb[24].mxu0 %vm474_vm0, %v1522_v29  ;;  %1409 = vmatmul.mubr.msk.bf16.gmra.mrb[24].mxu1 %vm474_vm0, %v1523_v30 }
  0xa9   : > { %1380 = vmatprep.mubr.msk.bf16.mxu0 %vm474_vm0, %v1524_v31  ;;  %1412 = vmatprep.mubr.msk.bf16.mxu1 %vm474_vm0, %v1525_v32 }
  0xb0   : > { %1381 = vmatmul.mubr.msk.bf16.gmra.mrb[28].mxu0 %vm474_vm0, %v1526_v33  ;;  %1413 = vmatmul.mubr.msk.bf16.gmra.mrb[28].mxu1 %vm474_vm0, %v1527_v34 }
 0x14b   : > { %v1354_v36 = vpop.f32.mrb[0].mxu0  ;;  %v1386_v37 = vpop.f32.mrb[0].mxu1 }
 0x14c   : > { %v614_v38 = vadd.f32 %v1354_v36, %v1963_v35  ;;  %v742_v39 = vadd.f32 %v1386_v37, %v1963_v35  ;;  %v605_v40 = vpop.f32.mrb[1].mxu0  ;;  %v733_v41 = vpop.f32.mrb[1].mxu1 }
 0x14d   : > { %v606_v42 = vadd.f32 %v1963_v35, %v605_v40  ;;  %v734_v43 = vadd.f32 %v1963_v35, %v733_v41  ;;  %v1355_v44 = vpop.f32.mrb[2].mxu0  ;;  %v1387_v45 = vpop.f32.mrb[2].mxu1 }
 0x14e   : > { %vm862_vm2 = vcmp.gt.f32.partialorder %v614_v38, 0.0  ;;  %v926_v46 = vmul.f32 0.2, %v614_v38  ;;  %vm894_vm3 = vcmp.gt.f32.partialorder %v742_v39, 0.0  ;;  %v958_v47 = vmul.f32 0.2, %v742_v39 }
 0x14f   : > { %vm860_vm4 = vcmp.gt.f32.partialorder %v606_v42, 0.0  ;;  %v924_v48 = vmul.f32 0.2, %v606_v42  ;;  %vm892_vm5 = vcmp.gt.f32.partialorder %v734_v43, 0.0  ;;  %v956_v49 = vmul.f32 0.2, %v734_v43 }
 0x150   : > { %v990_v50 = vsel %vm862_vm2, %v614_v38, %v926_v46  ;;  %v1022_v51 = vsel %vm894_vm3, %v742_v39, %v958_v47  ;;  %v617_v52 = vadd.f32 %v1355_v44, %v1963_v35  ;;  %v745_v53 = vadd.f32 %v1387_v45, %v1963_v35  ;;  %v608_v54 = vpop.f32.mrb[3].mxu0  ;;  %v736_v55 = vpop.f32.mrb[3].mxu1 }
 0x151   : > { %1055 = vst.msk [vmem:[%s1972_s20 + $0x10] sm:$0xff] %vm1052_vm1, %v990_v50  ;;  %1087 = vst.msk [vmem:[%s1972_s20 + $0x110] sm:$0xff] %vm1052_vm1, %v1022_v51  ;;  %v988_v56 = vsel %vm860_vm4, %v606_v42, %v924_v48  ;;  %v1020_v57 = vsel %vm892_vm5, %v734_v43, %v956_v49  ;;  %v609_v58 = vadd.f32 %v1963_v35, %v608_v54 }
 0x152   : > { %v737_v59 = vadd.f32 %v1963_v35, %v736_v55  ;;  %1053 = vst.msk [vmem:[%s1972_s20] sm:$0xff] %vm1052_vm1, %v988_v56  ;;  %1085 = vst.msk [vmem:[%s1972_s20 + $0x100] sm:$0xff] %vm1052_vm1, %v1020_v57  ;;  %vm863_vm6 = vcmp.gt.f32.partialorder %v617_v52, 0.0  ;;  %v927_v60 = vmul.f32 0.2, %v617_v52  ;;  %vm895_vm7 = vcmp.gt.f32.partialorder %v745_v53, 0.0 }
 0x153   : > { %v959_v61 = vmul.f32 0.2, %v745_v53  ;;  %vm861_vm8 = vcmp.gt.f32.partialorder %v609_v58, 0.0  ;;  %v925_v62 = vmul.f32 0.2, %v609_v58  ;;  %v1358_v2 = vpop.f32.mrb[4].mxu0 }
 0x154   : > { %vm893_vm9 = vcmp.gt.f32.partialorder %v737_v59, 0.0  ;;  %v957_v63 = vmul.f32 0.2, %v737_v59  ;;  %v991_v0 = vsel %vm863_vm6, %v617_v52, %v927_v60  ;;  %v1390_v3 = vpop.f32.mrb[4].mxu1  ;;  %v630_v6 = vadd.f32 %v1358_v2, %v1963_v35  ;;  %v621_v8 = vpop.f32.mrb[5].mxu0 }
 0x155   : > { %v1023_v1 = vsel %vm895_vm7, %v745_v53, %v959_v61  ;;  %1056 = vst.msk [vmem:[%s1972_s20 + $0x18] sm:$0xff] %vm1052_vm1, %v991_v0  ;;  %v989_v4 = vsel %vm861_vm8, %v609_v58, %v925_v62  ;;  %v758_v7 = vadd.f32 %v1390_v3, %v1963_v35  ;;  %v749_v9 = vpop.f32.mrb[5].mxu1  ;;  %v622_v10 = vadd.f32 %v1963_v35, %v621_v8  ;;  %v1359_v12 = vpop.f32.mrb[6].mxu0 }
 0x156   : > { %1088 = vst.msk [vmem:[%s1972_s20 + $0x118] sm:$0xff] %vm1052_vm1, %v1023_v1  ;;  %v1021_v5 = vsel %vm893_vm9, %v737_v59, %v957_v63  ;;  %1054 = vst.msk [vmem:[%s1972_s20 + $0x8] sm:$0xff] %vm1052_vm1, %v989_v4  ;;  %v750_v11 = vadd.f32 %v1963_v35, %v749_v9  ;;  %v1391_v13 = vpop.f32.mrb[6].mxu1  ;;  %vm866_vm10 = vcmp.gt.f32.partialorder %v630_v6, 0.0  ;;  %v930_v14 = vmul.f32 0.2, %v630_v6 }
 0x157   : > { %1086 = vst.msk [vmem:[%s1972_s20 + $0x108] sm:$0xff] %vm1052_vm1, %v1021_v5  ;;  %vm898_vm11 = vcmp.gt.f32.partialorder %v758_v7, 0.0  ;;  %v962_v15 = vmul.f32 0.2, %v758_v7  ;;  %vm864_vm12 = vcmp.gt.f32.partialorder %v622_v10, 0.0  ;;  %v633_v20 = vadd.f32 %v1359_v12, %v1963_v35  ;;  %v624_v22 = vpop.f32.mrb[7].mxu0 }
 0x158   : > { %v928_v16 = vmul.f32 0.2, %v622_v10  ;;  %vm896_vm13 = vcmp.gt.f32.partialorder %v750_v11, 0.0  ;;  %v960_v17 = vmul.f32 0.2, %v750_v11  ;;  %v994_v18 = vsel %vm866_vm10, %v630_v6, %v930_v14  ;;  %v752_v23 = vpop.f32.mrb[7].mxu1 }
 0x159   : > { %v1026_v19 = vsel %vm898_vm11, %v758_v7, %v962_v15  ;;  %v761_v21 = vadd.f32 %v1391_v13, %v1963_v35  ;;  %1059 = vst.msk [vmem:[%s1972_s20 + $0x30] sm:$0xff] %vm1052_vm1, %v994_v18  ;;  %v625_v26 = vadd.f32 %v1963_v35, %v624_v22  ;;  %v753_v27 = vadd.f32 %v1963_v35, %v752_v23 }
 0x15a   : > { %1091 = vst.msk [vmem:[%s1972_s20 + $0x130] sm:$0xff] %vm1052_vm1, %v1026_v19  ;;  %v992_v24 = vsel %vm864_vm12, %v622_v10, %v928_v16  ;;  %v1024_v25 = vsel %vm896_vm13, %v750_v11, %v960_v17  ;;  %vm867_vm14 = vcmp.gt.f32.partialorder %v633_v20, 0.0  ;;  %v931_v28 = vmul.f32 0.2, %v633_v20 }
 0x15b   : > { %1057 = vst.msk [vmem:[%s1972_s20 + $0x20] sm:$0xff] %vm1052_vm1, %v992_v24  ;;  %1089 = vst.msk [vmem:[%s1972_s20 + $0x120] sm:$0xff] %vm1052_vm1, %v1024_v25  ;;  %vm899_vm15 = vcmp.gt.f32.partialorder %v761_v21, 0.0  ;;  %v963_v29 = vmul.f32 0.2, %v761_v21  ;;  %vm865_vm0 = vcmp.gt.f32.partialorder %v625_v26, 0.0 }
 0x15c   : > { %v929_v30 = vmul.f32 0.2, %v625_v26  ;;  %vm897_vm2 = vcmp.gt.f32.partialorder %v753_v27, 0.0  ;;  %v961_v31 = vmul.f32 0.2, %v753_v27  ;;  %v995_v32 = vsel %vm867_vm14, %v633_v20, %v931_v28  ;;  %v1362_v34 = vpop.f32.mrb[8].mxu0 }
 0x15d   : > { %v1027_v33 = vsel %vm899_vm15, %v761_v21, %v963_v29  ;;  %v1394_v36 = vpop.f32.mrb[8].mxu1  ;;  %1060 = vst.msk [vmem:[%s1972_s20 + $0x38] sm:$0xff] %vm1052_vm1, %v995_v32  ;;  %v646_v39 = vadd.f32 %v1362_v34, %v1963_v35  ;;  %v637_v41 = vpop.f32.mrb[9].mxu0 }
 0x15e   : > { %1092 = vst.msk [vmem:[%s1972_s20 + $0x138] sm:$0xff] %vm1052_vm1, %v1027_v33  ;;  %v993_v37 = vsel %vm865_vm0, %v625_v26, %v929_v30  ;;  %v1025_v38 = vsel %vm897_vm2, %v753_v27, %v961_v31  ;;  %v774_v40 = vadd.f32 %v1394_v36, %v1963_v35  ;;  %v765_v42 = vpop.f32.mrb[9].mxu1  ;;  %v638_v43 = vadd.f32 %v1963_v35, %v637_v41  ;;  %v1363_v45 = vpop.f32.mrb[10].mxu0 }
 0x15f   : > { %1058 = vst.msk [vmem:[%s1972_s20 + $0x28] sm:$0xff] %vm1052_vm1, %v993_v37  ;;  %1090 = vst.msk [vmem:[%s1972_s20 + $0x128] sm:$0xff] %vm1052_vm1, %v1025_v38  ;;  %v766_v44 = vadd.f32 %v1963_v35, %v765_v42  ;;  %v1395_v46 = vpop.f32.mrb[10].mxu1  ;;  %vm870_vm3 = vcmp.gt.f32.partialorder %v646_v39, 0.0  ;;  %v934_v47 = vmul.f32 0.2, %v646_v39  ;;  %v649_v53 = vadd.f32 %v1363_v45, %v1963_v35 }
 0x160   : > { %vm902_vm4 = vcmp.gt.f32.partialorder %v774_v40, 0.0  ;;  %v966_v48 = vmul.f32 0.2, %v774_v40  ;;  %vm868_vm5 = vcmp.gt.f32.partialorder %v638_v43, 0.0  ;;  %v932_v49 = vmul.f32 0.2, %v638_v43 }
 0x161   : > { %vm900_vm6 = vcmp.gt.f32.partialorder %v766_v44, 0.0  ;;  %v964_v50 = vmul.f32 0.2, %v766_v44  ;;  %v998_v51 = vsel %vm870_vm3, %v646_v39, %v934_v47  ;;  %v777_v54 = vadd.f32 %v1395_v46, %v1963_v35  ;;  %v640_v55 = vpop.f32.mrb[11].mxu0  ;;  %v768_v56 = vpop.f32.mrb[11].mxu1 }
 0x162   : > { %v1030_v52 = vsel %vm902_vm4, %v774_v40, %v966_v48  ;;  %1063 = vst.msk [vmem:[%s1972_s20 + $0x50] sm:$0xff] %vm1052_vm1, %v998_v51  ;;  %v996_v57 = vsel %vm868_vm5, %v638_v43, %v932_v49  ;;  %v641_v59 = vadd.f32 %v1963_v35, %v640_v55  ;;  %v769_v60 = vadd.f32 %v1963_v35, %v768_v56 }
 0x163   : > { %1095 = vst.msk [vmem:[%s1972_s20 + $0x150] sm:$0xff] %vm1052_vm1, %v1030_v52  ;;  %v1028_v58 = vsel %vm900_vm6, %v766_v44, %v964_v50  ;;  %v1366_v61 = vpop.f32.mrb[12].mxu0  ;;  %v1398_v62 = vpop.f32.mrb[12].mxu1  ;;  %1061 = vst.msk [vmem:[%s1972_s20 + $0x40] sm:$0xff] %vm1052_vm1, %v996_v57  ;;  %vm871_vm7 = vcmp.gt.f32.partialorder %v649_v53, 0.0  ;;  %vm903_vm8 = vcmp.gt.f32.partialorder %v777_v54, 0.0 }
 0x164   : > { %1093 = vst.msk [vmem:[%s1972_s20 + $0x140] sm:$0xff] %vm1052_vm1, %v1028_v58  ;;  %v935_v63 = vmul.f32 0.2, %v649_v53  ;;  %v967_v0 = vmul.f32 0.2, %v777_v54  ;;  %vm869_vm9 = vcmp.gt.f32.partialorder %v641_v59, 0.0  ;;  %v662_v5 = vadd.f32 %v1366_v61, %v1963_v35 }
 0x165   : > { %v933_v1 = vmul.f32 0.2, %v641_v59  ;;  %vm901_vm10 = vcmp.gt.f32.partialorder %v769_v60, 0.0  ;;  %v965_v2 = vmul.f32 0.2, %v769_v60  ;;  %v790_v6 = vadd.f32 %v1398_v62, %v1963_v35  ;;  %v653_v7 = vpop.f32.mrb[13].mxu0 }
 0x166   : > { %v999_v3 = vsel %vm871_vm7, %v649_v53, %v935_v63  ;;  %v1031_v4 = vsel %vm903_vm8, %v777_v54, %v967_v0  ;;  %v781_v8 = vpop.f32.mrb[13].mxu1  ;;  %v654_v11 = vadd.f32 %v1963_v35, %v653_v7  ;;  %v1367_v13 = vpop.f32.mrb[14].mxu0  ;;  %vm874_vm11 = vcmp.gt.f32.partialorder %v662_v5, 0.0 }
 0x167   : > { %1064 = vst.msk [vmem:[%s1972_s20 + $0x58] sm:$0xff] %vm1052_vm1, %v999_v3  ;;  %1096 = vst.msk [vmem:[%s1972_s20 + $0x158] sm:$0xff] %vm1052_vm1, %v1031_v4  ;;  %v997_v9 = vsel %vm869_vm9, %v641_v59, %v933_v1  ;;  %v1029_v10 = vsel %vm901_vm10, %v769_v60, %v965_v2  ;;  %v782_v12 = vadd.f32 %v1963_v35, %v781_v8  ;;  %v1399_v14 = vpop.f32.mrb[14].mxu1  ;;  %v938_v15 = vmul.f32 0.2, %v662_v5  ;;  %v656_v23 = vpop.f32.mrb[15].mxu0 }
 0x168   : > { %1062 = vst.msk [vmem:[%s1972_s20 + $0x48] sm:$0xff] %vm1052_vm1, %v997_v9  ;;  %1094 = vst.msk [vmem:[%s1972_s20 + $0x148] sm:$0xff] %vm1052_vm1, %v1029_v10  ;;  %vm906_vm12 = vcmp.gt.f32.partialorder %v790_v6, 0.0  ;;  %v970_v16 = vmul.f32 0.2, %v790_v6  ;;  %vm872_vm13 = vcmp.gt.f32.partialorder %v654_v11, 0.0  ;;  %v665_v21 = vadd.f32 %v1367_v13, %v1963_v35 }
 0x169   : > { %v936_v17 = vmul.f32 0.2, %v654_v11  ;;  %vm904_vm14 = vcmp.gt.f32.partialorder %v782_v12, 0.0  ;;  %v968_v18 = vmul.f32 0.2, %v782_v12  ;;  %v1002_v19 = vsel %vm874_vm11, %v662_v5, %v938_v15  ;;  %v784_v24 = vpop.f32.mrb[15].mxu1 }
 0x16a   : > { %v1034_v20 = vsel %vm906_vm12, %v790_v6, %v970_v16  ;;  %v793_v22 = vadd.f32 %v1399_v14, %v1963_v35  ;;  %1067 = vst.msk [vmem:[%s1972_s20 + $0x70] sm:$0xff] %vm1052_vm1, %v1002_v19  ;;  %v657_v27 = vadd.f32 %v1963_v35, %v656_v23  ;;  %v785_v28 = vadd.f32 %v1963_v35, %v784_v24 }
 0x16b   : > { %1099 = vst.msk [vmem:[%s1972_s20 + $0x170] sm:$0xff] %vm1052_vm1, %v1034_v20  ;;  %v1000_v25 = vsel %vm872_vm13, %v654_v11, %v936_v17  ;;  %v1032_v26 = vsel %vm904_vm14, %v782_v12, %v968_v18  ;;  %v1370_v29 = vpop.f32.mrb[16].mxu0  ;;  %v1402_v30 = vpop.f32.mrb[16].mxu1  ;;  %vm875_vm15 = vcmp.gt.f32.partialorder %v665_v21, 0.0  ;;  %v939_v31 = vmul.f32 0.2, %v665_v21 }
 0x16c   : > { %1065 = vst.msk [vmem:[%s1972_s20 + $0x60] sm:$0xff] %vm1052_vm1, %v1000_v25  ;;  %1097 = vst.msk [vmem:[%s1972_s20 + $0x160] sm:$0xff] %vm1052_vm1, %v1032_v26  ;;  %vm907_vm0 = vcmp.gt.f32.partialorder %v793_v22, 0.0  ;;  %v971_v32 = vmul.f32 0.2, %v793_v22  ;;  %vm873_vm2 = vcmp.gt.f32.partialorder %v657_v27, 0.0  ;;  %v678_v38 = vadd.f32 %v1370_v29, %v1963_v35 }
 0x16d   : > { %v937_v33 = vmul.f32 0.2, %v657_v27  ;;  %vm905_vm3 = vcmp.gt.f32.partialorder %v785_v28, 0.0  ;;  %v969_v34 = vmul.f32 0.2, %v785_v28  ;;  %v1003_v36 = vsel %vm875_vm15, %v665_v21, %v939_v31  ;;  %v669_v40 = vpop.f32.mrb[17].mxu0 }
 0x16e   : > { %v1035_v37 = vsel %vm907_vm0, %v793_v22, %v971_v32  ;;  %v806_v39 = vadd.f32 %v1402_v30, %v1963_v35  ;;  %v797_v41 = vpop.f32.mrb[17].mxu1  ;;  %1068 = vst.msk [vmem:[%s1972_s20 + $0x78] sm:$0xff] %vm1052_vm1, %v1003_v36  ;;  %v670_v44 = vadd.f32 %v1963_v35, %v669_v40  ;;  %v1371_v46 = vpop.f32.mrb[18].mxu0  ;;  %vm878_vm4 = vcmp.gt.f32.partialorder %v678_v38, 0.0 }
 0x16f   : > { %1100 = vst.msk [vmem:[%s1972_s20 + $0x178] sm:$0xff] %vm1052_vm1, %v1035_v37  ;;  %v1001_v42 = vsel %vm873_vm2, %v657_v27, %v937_v33  ;;  %v1033_v43 = vsel %vm905_vm3, %v785_v28, %v969_v34  ;;  %v798_v45 = vadd.f32 %v1963_v35, %v797_v41  ;;  %v1403_v47 = vpop.f32.mrb[18].mxu1  ;;  %v942_v48 = vmul.f32 0.2, %v678_v38  ;;  %v672_v56 = vpop.f32.mrb[19].mxu0 }
 0x170   : > { %1066 = vst.msk [vmem:[%s1972_s20 + $0x68] sm:$0xff] %vm1052_vm1, %v1001_v42  ;;  %1098 = vst.msk [vmem:[%s1972_s20 + $0x168] sm:$0xff] %vm1052_vm1, %v1033_v43  ;;  %vm910_vm5 = vcmp.gt.f32.partialorder %v806_v39, 0.0  ;;  %v974_v49 = vmul.f32 0.2, %v806_v39  ;;  %vm876_vm6 = vcmp.gt.f32.partialorder %v670_v44, 0.0  ;;  %v681_v54 = vadd.f32 %v1371_v46, %v1963_v35 }
 0x171   : > { %v940_v50 = vmul.f32 0.2, %v670_v44  ;;  %vm908_vm7 = vcmp.gt.f32.partialorder %v798_v45, 0.0  ;;  %v972_v51 = vmul.f32 0.2, %v798_v45  ;;  %v1006_v52 = vsel %vm878_vm4, %v678_v38, %v942_v48  ;;  %v800_v57 = vpop.f32.mrb[19].mxu1 }
 0x172   : > { %v1038_v53 = vsel %vm910_vm5, %v806_v39, %v974_v49  ;;  %v809_v55 = vadd.f32 %v1403_v47, %v1963_v35  ;;  %1071 = vst.msk [vmem:[%s1972_s20 + $0x90] sm:$0xff] %vm1052_vm1, %v1006_v52  ;;  %v673_v60 = vadd.f32 %v1963_v35, %v672_v56  ;;  %v801_v61 = vadd.f32 %v1963_v35, %v800_v57 }
 0x173   : > { %1103 = vst.msk [vmem:[%s1972_s20 + $0x190] sm:$0xff] %vm1052_vm1, %v1038_v53  ;;  %v1004_v58 = vsel %vm876_vm6, %v670_v44, %v940_v50  ;;  %v1036_v59 = vsel %vm908_vm7, %v798_v45, %v972_v51  ;;  %v1374_v62 = vpop.f32.mrb[20].mxu0  ;;  %v1406_v63 = vpop.f32.mrb[20].mxu1  ;;  %vm879_vm8 = vcmp.gt.f32.partialorder %v681_v54, 0.0  ;;  %v943_v0 = vmul.f32 0.2, %v681_v54 }
 0x174   : > { %1069 = vst.msk [vmem:[%s1972_s20 + $0x80] sm:$0xff] %vm1052_vm1, %v1004_v58  ;;  %1101 = vst.msk [vmem:[%s1972_s20 + $0x180] sm:$0xff] %vm1052_vm1, %v1036_v59  ;;  %vm911_vm9 = vcmp.gt.f32.partialorder %v809_v55, 0.0  ;;  %v975_v1 = vmul.f32 0.2, %v809_v55  ;;  %vm877_vm10 = vcmp.gt.f32.partialorder %v673_v60, 0.0  ;;  %v694_v6 = vadd.f32 %v1374_v62, %v1963_v35 }
 0x175   : > { %v941_v2 = vmul.f32 0.2, %v673_v60  ;;  %vm909_vm11 = vcmp.gt.f32.partialorder %v801_v61, 0.0  ;;  %v973_v3 = vmul.f32 0.2, %v801_v61  ;;  %v1007_v4 = vsel %vm879_vm8, %v681_v54, %v943_v0  ;;  %v685_v8 = vpop.f32.mrb[21].mxu0 }
 0x176   : > { %v1039_v5 = vsel %vm911_vm9, %v809_v55, %v975_v1  ;;  %v822_v7 = vadd.f32 %v1406_v63, %v1963_v35  ;;  %v813_v9 = vpop.f32.mrb[21].mxu1  ;;  %1072 = vst.msk [vmem:[%s1972_s20 + $0x98] sm:$0xff] %vm1052_vm1, %v1007_v4  ;;  %v686_v12 = vadd.f32 %v1963_v35, %v685_v8  ;;  %v1375_v14 = vpop.f32.mrb[22].mxu0  ;;  %vm882_vm12 = vcmp.gt.f32.partialorder %v694_v6, 0.0 }
 0x177   : > { %1104 = vst.msk [vmem:[%s1972_s20 + $0x198] sm:$0xff] %vm1052_vm1, %v1039_v5  ;;  %v1005_v10 = vsel %vm877_vm10, %v673_v60, %v941_v2  ;;  %v1037_v11 = vsel %vm909_vm11, %v801_v61, %v973_v3  ;;  %v814_v13 = vadd.f32 %v1963_v35, %v813_v9  ;;  %v1407_v15 = vpop.f32.mrb[22].mxu1  ;;  %v946_v16 = vmul.f32 0.2, %v694_v6  ;;  %v688_v24 = vpop.f32.mrb[23].mxu0 }
 0x178   : > { %1070 = vst.msk [vmem:[%s1972_s20 + $0x88] sm:$0xff] %vm1052_vm1, %v1005_v10  ;;  %1102 = vst.msk [vmem:[%s1972_s20 + $0x188] sm:$0xff] %vm1052_vm1, %v1037_v11  ;;  %vm914_vm13 = vcmp.gt.f32.partialorder %v822_v7, 0.0  ;;  %v978_v17 = vmul.f32 0.2, %v822_v7  ;;  %vm880_vm14 = vcmp.gt.f32.partialorder %v686_v12, 0.0  ;;  %v697_v22 = vadd.f32 %v1375_v14, %v1963_v35 }
 0x179   : > { %v944_v18 = vmul.f32 0.2, %v686_v12  ;;  %vm912_vm15 = vcmp.gt.f32.partialorder %v814_v13, 0.0  ;;  %v976_v19 = vmul.f32 0.2, %v814_v13  ;;  %v1010_v20 = vsel %vm882_vm12, %v694_v6, %v946_v16  ;;  %v816_v25 = vpop.f32.mrb[23].mxu1 }
 0x17a   : > { %v1042_v21 = vsel %vm914_vm13, %v822_v7, %v978_v17  ;;  %v825_v23 = vadd.f32 %v1407_v15, %v1963_v35  ;;  %1075 = vst.msk [vmem:[%s1972_s20 + $0xb0] sm:$0xff] %vm1052_vm1, %v1010_v20  ;;  %v689_v28 = vadd.f32 %v1963_v35, %v688_v24  ;;  %v817_v29 = vadd.f32 %v1963_v35, %v816_v25 }
 0x17b   : > { %1107 = vst.msk [vmem:[%s1972_s20 + $0x1b0] sm:$0xff] %vm1052_vm1, %v1042_v21  ;;  %v1008_v26 = vsel %vm880_vm14, %v686_v12, %v944_v18  ;;  %v1040_v27 = vsel %vm912_vm15, %v814_v13, %v976_v19  ;;  %v1378_v30 = vpop.f32.mrb[24].mxu0  ;;  %v1410_v31 = vpop.f32.mrb[24].mxu1  ;;  %vm883_vm0 = vcmp.gt.f32.partialorder %v697_v22, 0.0  ;;  %v947_v32 = vmul.f32 0.2, %v697_v22 }
 0x17c   : > { %1073 = vst.msk [vmem:[%s1972_s20 + $0xa0] sm:$0xff] %vm1052_vm1, %v1008_v26  ;;  %1105 = vst.msk [vmem:[%s1972_s20 + $0x1a0] sm:$0xff] %vm1052_vm1, %v1040_v27  ;;  %vm915_vm2 = vcmp.gt.f32.partialorder %v825_v23, 0.0  ;;  %v979_v33 = vmul.f32 0.2, %v825_v23  ;;  %vm881_vm3 = vcmp.gt.f32.partialorder %v689_v28, 0.0  ;;  %v710_v39 = vadd.f32 %v1378_v30, %v1963_v35 }
 0x17d   : > { %v945_v34 = vmul.f32 0.2, %v689_v28  ;;  %vm913_vm4 = vcmp.gt.f32.partialorder %v817_v29, 0.0  ;;  %v977_v36 = vmul.f32 0.2, %v817_v29  ;;  %v1011_v37 = vsel %vm883_vm0, %v697_v22, %v947_v32  ;;  %v701_v41 = vpop.f32.mrb[25].mxu0 }
 0x17e   : > { %v1043_v38 = vsel %vm915_vm2, %v825_v23, %v979_v33  ;;  %v838_v40 = vadd.f32 %v1410_v31, %v1963_v35  ;;  %v829_v42 = vpop.f32.mrb[25].mxu1  ;;  %1076 = vst.msk [vmem:[%s1972_s20 + $0xb8] sm:$0xff] %vm1052_vm1, %v1011_v37  ;;  %v702_v45 = vadd.f32 %v1963_v35, %v701_v41  ;;  %v1379_v47 = vpop.f32.mrb[26].mxu0  ;;  %vm886_vm5 = vcmp.gt.f32.partialorder %v710_v39, 0.0 }
 0x17f   : > { %1108 = vst.msk [vmem:[%s1972_s20 + $0x1b8] sm:$0xff] %vm1052_vm1, %v1043_v38  ;;  %v1009_v43 = vsel %vm881_vm3, %v689_v28, %v945_v34  ;;  %v1041_v44 = vsel %vm913_vm4, %v817_v29, %v977_v36  ;;  %v830_v46 = vadd.f32 %v1963_v35, %v829_v42  ;;  %v1411_v48 = vpop.f32.mrb[26].mxu1  ;;  %v950_v49 = vmul.f32 0.2, %v710_v39  ;;  %v704_v57 = vpop.f32.mrb[27].mxu0 }
 0x180   : > { %1074 = vst.msk [vmem:[%s1972_s20 + $0xa8] sm:$0xff] %vm1052_vm1, %v1009_v43  ;;  %1106 = vst.msk [vmem:[%s1972_s20 + $0x1a8] sm:$0xff] %vm1052_vm1, %v1041_v44  ;;  %vm918_vm6 = vcmp.gt.f32.partialorder %v838_v40, 0.0  ;;  %v982_v50 = vmul.f32 0.2, %v838_v40  ;;  %vm884_vm7 = vcmp.gt.f32.partialorder %v702_v45, 0.0  ;;  %v713_v55 = vadd.f32 %v1379_v47, %v1963_v35 }
 0x181   : > { %v948_v51 = vmul.f32 0.2, %v702_v45  ;;  %vm916_vm8 = vcmp.gt.f32.partialorder %v830_v46, 0.0  ;;  %v980_v52 = vmul.f32 0.2, %v830_v46  ;;  %v1014_v53 = vsel %vm886_vm5, %v710_v39, %v950_v49  ;;  %v832_v58 = vpop.f32.mrb[27].mxu1 }
 0x182   : > { %v1046_v54 = vsel %vm918_vm6, %v838_v40, %v982_v50  ;;  %v841_v56 = vadd.f32 %v1411_v48, %v1963_v35  ;;  %1079 = vst.msk [vmem:[%s1972_s20 + $0xd0] sm:$0xff] %vm1052_vm1, %v1014_v53  ;;  %v705_v61 = vadd.f32 %v1963_v35, %v704_v57  ;;  %v833_v62 = vadd.f32 %v1963_v35, %v832_v58 }
 0x183   : > { %1111 = vst.msk [vmem:[%s1972_s20 + $0x1d0] sm:$0xff] %vm1052_vm1, %v1046_v54  ;;  %v1012_v59 = vsel %vm884_vm7, %v702_v45, %v948_v51  ;;  %v1044_v60 = vsel %vm916_vm8, %v830_v46, %v980_v52  ;;  %v1382_v63 = vpop.f32.mrb[28].mxu0  ;;  %v1414_v0 = vpop.f32.mrb[28].mxu1  ;;  %vm887_vm9 = vcmp.gt.f32.partialorder %v713_v55, 0.0  ;;  %v951_v1 = vmul.f32 0.2, %v713_v55 }
 0x184   : > { %1077 = vst.msk [vmem:[%s1972_s20 + $0xc0] sm:$0xff] %vm1052_vm1, %v1012_v59  ;;  %1109 = vst.msk [vmem:[%s1972_s20 + $0x1c0] sm:$0xff] %vm1052_vm1, %v1044_v60  ;;  %vm919_vm10 = vcmp.gt.f32.partialorder %v841_v56, 0.0  ;;  %v983_v2 = vmul.f32 0.2, %v841_v56  ;;  %vm885_vm11 = vcmp.gt.f32.partialorder %v705_v61, 0.0  ;;  %v726_v7 = vadd.f32 %v1382_v63, %v1963_v35 }
 0x185   : > { %v949_v3 = vmul.f32 0.2, %v705_v61  ;;  %vm917_vm12 = vcmp.gt.f32.partialorder %v833_v62, 0.0  ;;  %v981_v4 = vmul.f32 0.2, %v833_v62  ;;  %v1015_v5 = vsel %vm887_vm9, %v713_v55, %v951_v1  ;;  %v717_v9 = vpop.f32.mrb[29].mxu0 }
 0x186   : > { %v1047_v6 = vsel %vm919_vm10, %v841_v56, %v983_v2  ;;  %v854_v8 = vadd.f32 %v1414_v0, %v1963_v35  ;;  %v845_v10 = vpop.f32.mrb[29].mxu1  ;;  %1080 = vst.msk [vmem:[%s1972_s20 + $0xd8] sm:$0xff] %vm1052_vm1, %v1015_v5  ;;  %v718_v13 = vadd.f32 %v1963_v35, %v717_v9  ;;  %v1383_v15 = vpop.f32.mrb[30].mxu0  ;;  %vm890_vm13 = vcmp.gt.f32.partialorder %v726_v7, 0.0 }
 0x187   : > { %1112 = vst.msk [vmem:[%s1972_s20 + $0x1d8] sm:$0xff] %vm1052_vm1, %v1047_v6  ;;  %v1013_v11 = vsel %vm885_vm11, %v705_v61, %v949_v3  ;;  %v1045_v12 = vsel %vm917_vm12, %v833_v62, %v981_v4  ;;  %v846_v14 = vadd.f32 %v1963_v35, %v845_v10  ;;  %v1415_v16 = vpop.f32.mrb[30].mxu1  ;;  %v954_v17 = vmul.f32 0.2, %v726_v7  ;;  %v720_v25 = vpop.f32.mrb[31].mxu0 }
 0x188   : > { %1078 = vst.msk [vmem:[%s1972_s20 + $0xc8] sm:$0xff] %vm1052_vm1, %v1013_v11  ;;  %1110 = vst.msk [vmem:[%s1972_s20 + $0x1c8] sm:$0xff] %vm1052_vm1, %v1045_v12  ;;  %vm922_vm14 = vcmp.gt.f32.partialorder %v854_v8, 0.0  ;;  %v986_v18 = vmul.f32 0.2, %v854_v8  ;;  %vm888_vm15 = vcmp.gt.f32.partialorder %v718_v13, 0.0  ;;  %v729_v23 = vadd.f32 %v1383_v15, %v1963_v35 }
 0x189   : > { %v952_v19 = vmul.f32 0.2, %v718_v13  ;;  %vm920_vm0 = vcmp.gt.f32.partialorder %v846_v14, 0.0  ;;  %v984_v20 = vmul.f32 0.2, %v846_v14  ;;  %v1018_v21 = vsel %vm890_vm13, %v726_v7, %v954_v17  ;;  %v848_v26 = vpop.f32.mrb[31].mxu1 }
 0x18a   : > { %v1050_v22 = vsel %vm922_vm14, %v854_v8, %v986_v18  ;;  %v857_v24 = vadd.f32 %v1415_v16, %v1963_v35  ;;  %1083 = vst.msk [vmem:[%s1972_s20 + $0xf0] sm:$0xff] %vm1052_vm1, %v1018_v21  ;;  %v721_v29 = vadd.f32 %v1963_v35, %v720_v25  ;;  %v849_v30 = vadd.f32 %v1963_v35, %v848_v26 }
 0x18b   : > { %1115 = vst.msk [vmem:[%s1972_s20 + $0x1f0] sm:$0xff] %vm1052_vm1, %v1050_v22  ;;  %v1016_v27 = vsel %vm888_vm15, %v718_v13, %v952_v19  ;;  %v1048_v28 = vsel %vm920_vm0, %v846_v14, %v984_v20  ;;  %vm891_vm2 = vcmp.gt.f32.partialorder %v729_v23, 0.0  ;;  %v955_v31 = vmul.f32 0.2, %v729_v23 }
 0x18c   : > { %1081 = vst.msk [vmem:[%s1972_s20 + $0xe0] sm:$0xff] %vm1052_vm1, %v1016_v27  ;;  %1113 = vst.msk [vmem:[%s1972_s20 + $0x1e0] sm:$0xff] %vm1052_vm1, %v1048_v28  ;;  %vm923_vm3 = vcmp.gt.f32.partialorder %v857_v24, 0.0  ;;  %v987_v32 = vmul.f32 0.2, %v857_v24  ;;  %vm889_vm4 = vcmp.gt.f32.partialorder %v721_v29, 0.0 }
 0x18d   : > { %v953_v33 = vmul.f32 0.2, %v721_v29  ;;  %vm921_vm5 = vcmp.gt.f32.partialorder %v849_v30, 0.0  ;;  %v985_v34 = vmul.f32 0.2, %v849_v30  ;;  %v1019_v35 = vsel %vm891_vm2, %v729_v23, %v955_v31 }
 0x18e   : > { %v1051_v36 = vsel %vm923_vm3, %v857_v24, %v987_v32  ;;  %1084 = vst.msk [vmem:[%s1972_s20 + $0xf8] sm:$0xff] %vm1052_vm1, %v1019_v35 }
 0x18f   : > { %1116 = vst.msk [vmem:[%s1972_s20 + $0x1f8] sm:$0xff] %vm1052_vm1, %v1051_v36  ;;  %v1017_v37 = vsel %vm889_vm4, %v721_v29, %v953_v33  ;;  %v1049_v38 = vsel %vm921_vm5, %v849_v30, %v985_v34 }
 0x190   : > { %1082 = vst.msk [vmem:[%s1972_s20 + $0xe8] sm:$0xff] %vm1052_vm1, %v1017_v37  ;;  %1114 = vst.msk [vmem:[%s1972_s20 + $0x1e8] sm:$0xff] %vm1052_vm1, %v1049_v38 }
 0x191   : > { %1627 = shalt.err (!%p1624_p7)
}
 0x192   : > { %s1628_s21 = scalar_lea.hbm %s2157_s28, 8192  ;;  %s1632_s4 = scalar_lea.hbm %s2213_s3, 32768 }
 0x193   : > { %p1629_p9 = scmp.ne.s32.totalorder %s2157_s28, %s1628_s21  ;;  %p1633_p5 = scmp.lt.u32.totalorder %s2157_s28, %s2213_s3 }
 0x194   : > { %p1634_p10 = scmp.lt.u32.totalorder %s1632_s4, %s1628_s21  ;;  %p1636_p2 = scmp.lt.u32.totalorder %s1628_s21, %s2157_s28 }
 0x195   : > { %p1630_p12 = pnand %p1629_p9, %p1830_p6 }
 0x196   : > { %p1635_p1 = por %p1634_p10, %p1633_p5 }
 0x197   : > { %p1631_p0 = pneg %p1630_p12 }
 0x198   : > { %p1637_p4 = por %p1636_p2, %p1635_p1 }
 0x19a   : > { %p1638_p8 = pnand %p1637_p4, %p1631_p0 }
 0x19c   : > { %1641 = shalt.err (!%p1638_p8)
}
 0x19d   : > { %s1692_s18 = smov 128   ;;  %s1693_s20 = smov 8  }
 0x19e   : > { %1432 = dma.vmem_to_hbm [thread:$0]  (%p1830_p6), %s2159_s8, 8192, %s2157_s28, %s1118_s22, %s1692_s18, %s1692_s18, %s1693_s20  }
 0x19f PF: > { %p1454_p11 = scmp.ge.s32.totalorder %s1684_s15, 2  ;;  %s1146_s7 = sand.u32 1, %s1672_s12  }
 0x1a0   : > { %p2228_p13 = scmp.ne.s32.totalorder %s2218_s19, 0  ;;  %s1147_s16 = scalar_lea.sflag [#allocation4], %s1146_s7 }
 0x1a2   : > { %p1446_p3 = pnand %p1454_p11, %p2228_p13 }
 0x1a4   : > { %1667 = dma.done.wait (!%p1446_p3), %s1147_s16, 8192  }
 0x1a5   : > { %1669 = vsyncadd (!%p1446_p3), %s1147_s16, 4294959104  ;;  %p17_p7 = scmp.ge.s32.totalorder %s1820_s5, 6   ;;  %s2229_s12 = smov %s1676_s13 }
 0x1a6   : > { %s2230_s13 = smov %s1680_s14  ;;  %s2231_s14 = smov %s1836_s10 }
 0x1a7   : > { %s2232_s15 = smov %s1820_s5  ;;  %19 = sbr.rel (!%p17_p7) target bundleno = 6 (0x6), region = 85 }
 0x1ae   :  { %1152 = vsyncpa [#allocation3], 1 }
 0x1af   :  { %1154 = vsyncpa [#allocation3 + $0x1], 1 }
 0x1b0   :  { %1155 = vsyncpa [#allocation6], 1 }
 0x1b1   :  { %1156 = vsyncpa [#allocation4], 1 }
 0x1b2   :  { %1158 = vsyncpa [#allocation4 + $0x1], 1 }

// kernel: discriminator_dc_forward.9
= control target key start
LH: loop header
LB: loop body
LE: loop exit
PB: predicated region body
PF: predicated region fallthrough
CT: control target
= control target key end

     0   :  { %10 = vsyncpa [#allocation3], 0  ;;  %s1950_s0 = inlined_call_operand.hbm [shape: bf16[512,128], index: 0, kind: input, shape index: {}]   ;;  %s1951_s1 = inlined_call_operand.hbm [shape: bf16[128,16], index: 1, kind: input, shape index: {}]   ;;  %s1952_s2 = inlined_call_operand.hbm [shape: f32[512,16], index: 2, kind: output, shape index: {0}]   ;;  %s1953_s3 = inlined_call_operand.hbm [shape: f32[1,16], index: 3, kind: output, shape index: {1}]   ;;  %s1954_s4 = inlined_call_operand.hbm [shape: f32[1,16], index: 4, kind: output, shape index: {2}]  }
   0x1   :  { %11 = vsyncpa [#allocation6], 0 }
   0x2   :  { %12 = vsyncpa [#allocation4], 0 }
   0x3   :  { %13 = vsyncpa [#allocation9], 0  ;;  %s1452_s15 = smov [#allocation2]   ;;  %s1334_s19 = scalar_lea.hbm %s1950_s0, 4096 }
   0x4   :  { %s19_s16 = sshll.u32 %s1452_s15, 4  ;;  %p1335_p0 = scmp.ne.s32.totalorder %s1950_s0, %s1334_s19  ;;  %s20_s16 = int_to_ptr.vmem [resolvable:$true] %s19_s16 }
   0x5   :  { %p1338_p1 = scmp.lt.u32.totalorder %s1334_s19, %s1950_s0 }
   0x7   :  { %p1340_p2 = pnand %p1338_p1, %p1335_p0 }
   0x9   :  { %1343 = shalt.err (!%p1340_p2)
}
   0xa   :  { %s1344_s24 = scalar_lea.vmem %s20_s16, 4096  ;;  %p1349_p4 = scmp.lt.s32.totalorder %s20_s16, %s20_s16 }
   0xb   :  { %p1345_p3 = scmp.ne.s32.totalorder %s20_s16, %s1344_s24  ;;  %p1350_p5 = scmp.lt.s32.totalorder %s1344_s24, %s1344_s24 }
   0xd   :  { %p1351_p6 = por %p1350_p5, %p1349_p4 }
   0xf   :  { %p1352_p7 = pnand %p1351_p6, %p1345_p3 }
  0x11   :  { %1355 = shalt.err (!%p1352_p7)
}
  0x12   :  { %s1453_s25 = smov 64   ;;  %s1454_s26 = smov 4  }
  0x13   :  { %25 = dma.hbm_to_vmem [thread:$0]  %s1950_s0, 4096, %s20_s16, [#allocation3], %s1453_s25, %s1453_s25, %s1454_s26  }
  0x14   :  { %s1455_s29 = smov [#allocation5]   ;;  %s1356_s7 = scalar_lea.hbm %s1951_s1, 1024 }
  0x15   :  { %s31_s30 = sshll.u32 %s1455_s29, 4  ;;  %p1357_p8 = scmp.ne.s32.totalorder %s1951_s1, %s1356_s7  ;;  %s32_s30 = int_to_ptr.vmem [resolvable:$true] %s31_s30 }
  0x16   :  { %p1360_p9 = scmp.lt.u32.totalorder %s1356_s7, %s1951_s1 }
  0x18   :  { %p1362_p10 = pnand %p1360_p9, %p1357_p8 }
  0x1a   :  { %1365 = shalt.err (!%p1362_p10)
}
  0x1b   :  { %s1366_s12 = scalar_lea.vmem %s32_s30, 1024  ;;  %p1371_p12 = scmp.lt.s32.totalorder %s32_s30, %s32_s30 }
  0x1c   :  { %p1367_p11 = scmp.ne.s32.totalorder %s32_s30, %s1366_s12  ;;  %p1372_p13 = scmp.lt.s32.totalorder %s1366_s12, %s1366_s12 }
  0x1e   :  { %p1373_p0 = por %p1372_p13, %p1371_p12 }
  0x20   :  { %p1374_p1 = pnand %p1373_p0, %p1367_p11 }
  0x22   :  { %1377 = shalt.err (!%p1374_p1)
}
  0x23   :  { %37 = dma.hbm_to_vmem [thread:$0]  %s1951_s1, 1024, %s32_s30, [#allocation6], %s1453_s25, %s1453_s25, %s1454_s26  }
  0x24   :  { %1444 = dma.done.wait [#allocation3], 4096  }
  0x25   :  { %1445 = vsyncadd [#allocation3], 4294963200 }
  0x26   :  { %1446 = dma.done.wait [#allocation6], 1024  }
  0x27   :  { %1447 = vsyncadd [#allocation6], 4294966272  ;;  %v1294_v0 = vld [vmem:[#allocation5] sm:$0xff]   ;;  %v1295_v1 = vld [vmem:[#allocation5 + $0x8] sm:$0xff]   ;;  %vm661_vm0 = vcmask 130048   ;;  %vm49_vm1 = vcmask 122880  }
  0x28   :  { %1188 = vmatprep.subr.bf16.mxu0 %v1294_v0  ;;  %1268 = vmatprep.subr.bf16.mxu1 %v1294_v0  ;;  %v1296_v2 = vld [vmem:[#allocation5 + $0x10] sm:$0xff]   ;;  %v1297_v3 = vld [vmem:[#allocation5 + $0x18] sm:$0xff]   ;;  %v1302_v4 = vld [vmem:[#allocation2] sm:$0xff]   ;;  %s1457_s1 = smov [#allocation7]  }
  0x29   :  { %1189 = vmatpush3.bf16.msra.mxu0 %v1294_v0  ;;  %1276 = vmatpush3.bf16.msra.mxu1 %v1294_v0  ;;  %v1298_v5 = vld [vmem:[#allocation5 + $0x20] sm:$0xff]   ;;  %v1299_v6 = vld [vmem:[#allocation5 + $0x28] sm:$0xff]   ;;  %v1300_v7 = vld [vmem:[#allocation5 + $0x30] sm:$0xff]   ;;  %s1068_s14 = sshll.u32 %s1457_s1, 4  ;;  %s1722_s14 = int_to_ptr.vmem [resolvable:$true] %s1068_s14 }
  0x2a   :  { %1190 = vmatprep.subr.bf16.mxu0 %v1295_v1  ;;  %1269 = vmatprep.subr.bf16.mxu1 %v1295_v1  ;;  %v1301_v8 = vld [vmem:[#allocation5 + $0x38] sm:$0xff]   ;;  %v1318_v9 = vld [vmem:[#allocation2 + $0x80] sm:$0xff]   ;;  %v1303_v10 = vld [vmem:[#allocation2 + $0x8] sm:$0xff]   ;;  %s1378_s15 = scalar_lea.vmem %s1722_s14, 8192  ;;  %p1383_p3 = scmp.lt.s32.totalorder %s1722_s14, %s1722_s14 }
  0x2b   :  { %1204 = vmatprep.mubr.bf16.mxu0 %v1302_v4  ;;  %1236 = vmatprep.mubr.bf16.mxu1 %v1318_v9  ;;  %v1304_v11 = vld [vmem:[#allocation2 + $0x10] sm:$0xff]   ;;  %v1319_v12 = vld [vmem:[#allocation2 + $0x88] sm:$0xff]   ;;  %v1305_v14 = vld [vmem:[#allocation2 + $0x18] sm:$0xff]   ;;  %v1456_v4 = vmov 0.0   ;;  %p1379_p2 = scmp.ne.s32.totalorder %s1722_s14, %s1378_s15  ;;  %p1384_p4 = scmp.lt.s32.totalorder %s1378_s15, %s1378_s15 }
  0x2c   :  { %v1320_v13 = vld [vmem:[#allocation2 + $0x90] sm:$0xff]   ;;  %v1306_v15 = vld [vmem:[#allocation2 + $0x20] sm:$0xff]   ;;  %v1321_v16 = vld [vmem:[#allocation2 + $0x98] sm:$0xff]   ;;  %50 = vst.msk [vmem:[#allocation8] sm:$0x1] %vm49_vm1, %v1456_v4 }
  0x2d   :  { %1191 = vmatpush3.bf16.msra.mxu0 %v1295_v1  ;;  %1277 = vmatpush3.bf16.msra.mxu1 %v1295_v1  ;;  %v1322_v17 = vld [vmem:[#allocation2 + $0xa0] sm:$0xff]   ;;  %v1307_v18 = vld [vmem:[#allocation2 + $0x28] sm:$0xff]   ;;  %v1308_v20 = vld [vmem:[#allocation2 + $0x30] sm:$0xff]   ;;  %51 = vst.msk [vmem:[#allocation10] sm:$0x1] %vm49_vm1, %v1456_v4  ;;  %p1385_p5 = por %p1384_p4, %p1383_p3 }
  0x2e   :  { %1192 = vmatprep.subr.bf16.mxu0 %v1296_v2  ;;  %1270 = vmatprep.subr.bf16.mxu1 %v1296_v2  ;;  %v1323_v19 = vld [vmem:[#allocation2 + $0xa8] sm:$0xff]   ;;  %v1324_v21 = vld [vmem:[#allocation2 + $0xb0] sm:$0xff]   ;;  %v1309_v22 = vld [vmem:[#allocation2 + $0x38] sm:$0xff]  }
  0x2f   :  { %v1325_v23 = vld [vmem:[#allocation2 + $0xb8] sm:$0xff]   ;;  %v1310_v24 = vld [vmem:[#allocation2 + $0x40] sm:$0xff]   ;;  %v1311_v26 = vld [vmem:[#allocation2 + $0x48] sm:$0xff]   ;;  %p1386_p6 = pnand %p1385_p5, %p1379_p2 }
  0x30   :  { %v1326_v25 = vld [vmem:[#allocation2 + $0xc0] sm:$0xff]   ;;  %v1327_v27 = vld [vmem:[#allocation2 + $0xc8] sm:$0xff]   ;;  %v1312_v28 = vld [vmem:[#allocation2 + $0x50] sm:$0xff]  }
  0x31   :  { %1193 = vmatpush3.bf16.msra.mxu0 %v1296_v2  ;;  %1278 = vmatpush3.bf16.msra.mxu1 %v1296_v2  ;;  %v1328_v29 = vld [vmem:[#allocation2 + $0xd0] sm:$0xff]   ;;  %v1313_v30 = vld [vmem:[#allocation2 + $0x58] sm:$0xff]   ;;  %v1314_v32 = vld [vmem:[#allocation2 + $0x60] sm:$0xff]  }
  0x32   :  { %1194 = vmatprep.subr.bf16.mxu0 %v1297_v3  ;;  %1271 = vmatprep.subr.bf16.mxu1 %v1297_v3  ;;  %v1329_v31 = vld [vmem:[#allocation2 + $0xd8] sm:$0xff]   ;;  %v1330_v33 = vld [vmem:[#allocation2 + $0xe0] sm:$0xff]   ;;  %v1315_v34 = vld [vmem:[#allocation2 + $0x68] sm:$0xff]  }
  0x33   :  { %v1331_v35 = vld [vmem:[#allocation2 + $0xe8] sm:$0xff]   ;;  %v1316_v36 = vld [vmem:[#allocation2 + $0x70] sm:$0xff]   ;;  %v1317_v38 = vld [vmem:[#allocation2 + $0x78] sm:$0xff]  }
  0x34   :  { %v1332_v37 = vld [vmem:[#allocation2 + $0xf0] sm:$0xff]   ;;  %v1333_v39 = vld [vmem:[#allocation2 + $0xf8] sm:$0xff]  }
  0x35   :  { %1195 = vmatpush3.bf16.msra.mxu0 %v1297_v3  ;;  %1279 = vmatpush3.bf16.msra.mxu1 %v1297_v3 }
  0x36   :  { %1196 = vmatprep.subr.bf16.mxu0 %v1298_v5  ;;  %1272 = vmatprep.subr.bf16.mxu1 %v1298_v5 }
  0x39   :  { %1197 = vmatpush3.bf16.msra.mxu0 %v1298_v5  ;;  %1280 = vmatpush3.bf16.msra.mxu1 %v1298_v5 }
  0x3a   :  { %1198 = vmatprep.subr.bf16.mxu0 %v1299_v6  ;;  %1273 = vmatprep.subr.bf16.mxu1 %v1299_v6 }
  0x3d   :  { %1199 = vmatpush3.bf16.msra.mxu0 %v1299_v6  ;;  %1281 = vmatpush3.bf16.msra.mxu1 %v1299_v6 }
  0x3e   :  { %1200 = vmatprep.subr.bf16.mxu0 %v1300_v7  ;;  %1274 = vmatprep.subr.bf16.mxu1 %v1300_v7 }
  0x41   :  { %1201 = vmatpush3.bf16.msra.mxu0 %v1300_v7  ;;  %1282 = vmatpush3.bf16.msra.mxu1 %v1300_v7 }
  0x42   :  { %1202 = vmatprep.subr.bf16.mxu0 %v1301_v8  ;;  %1275 = vmatprep.subr.bf16.mxu1 %v1301_v8 }
  0x45   :  { %1203 = vmatpush3.bf16.msra.mxu0 %v1301_v8  ;;  %1283 = vmatpush3.bf16.msra.mxu1 %v1301_v8 }
  0x48   :  { %1205 = vmatmul.mubr.bf16.vlgmr.msra.gmra.mrb[0].mxu0 %v1303_v10  ;;  %1237 = vmatmul.mubr.bf16.vlgmr.msra.gmra.mrb[0].mxu1 %v1319_v12 }
  0x49   :  { %1208 = vmatprep.mubr.bf16.mxu0 %v1304_v11  ;;  %1240 = vmatprep.mubr.bf16.mxu1 %v1320_v13 }
  0x50   :  { %1209 = vmatmul.mubr.bf16.gmra.mrb[4].mxu0 %v1305_v14  ;;  %1241 = vmatmul.mubr.bf16.gmra.mrb[4].mxu1 %v1321_v16 }
  0x51   :  { %1212 = vmatprep.mubr.bf16.mxu0 %v1306_v15  ;;  %1244 = vmatprep.mubr.bf16.mxu1 %v1322_v17 }
  0x58   :  { %1213 = vmatmul.mubr.bf16.gmra.mrb[8].mxu0 %v1307_v18  ;;  %1245 = vmatmul.mubr.bf16.gmra.mrb[8].mxu1 %v1323_v19 }
  0x59   :  { %1216 = vmatprep.mubr.bf16.mxu0 %v1308_v20  ;;  %1248 = vmatprep.mubr.bf16.mxu1 %v1324_v21 }
  0x60   :  { %1217 = vmatmul.mubr.bf16.gmra.mrb[12].mxu0 %v1309_v22  ;;  %1249 = vmatmul.mubr.bf16.gmra.mrb[12].mxu1 %v1325_v23 }
  0x61   :  { %1220 = vmatprep.mubr.bf16.mxu0 %v1310_v24  ;;  %1252 = vmatprep.mubr.bf16.mxu1 %v1326_v25 }
  0x68   :  { %1221 = vmatmul.mubr.bf16.gmra.mrb[16].mxu0 %v1311_v26  ;;  %1253 = vmatmul.mubr.bf16.gmra.mrb[16].mxu1 %v1327_v27 }
  0x69   :  { %1224 = vmatprep.mubr.bf16.mxu0 %v1312_v28  ;;  %1256 = vmatprep.mubr.bf16.mxu1 %v1328_v29 }
  0x70   :  { %1225 = vmatmul.mubr.bf16.gmra.mrb[20].mxu0 %v1313_v30  ;;  %1257 = vmatmul.mubr.bf16.gmra.mrb[20].mxu1 %v1329_v31 }
  0x71   :  { %1228 = vmatprep.mubr.bf16.mxu0 %v1314_v32  ;;  %1260 = vmatprep.mubr.bf16.mxu1 %v1330_v33 }
  0x78   :  { %1229 = vmatmul.mubr.bf16.gmra.mrb[24].mxu0 %v1315_v34  ;;  %1261 = vmatmul.mubr.bf16.gmra.mrb[24].mxu1 %v1331_v35 }
  0x79   :  { %1232 = vmatprep.mubr.bf16.mxu0 %v1316_v36  ;;  %1264 = vmatprep.mubr.bf16.mxu1 %v1332_v37 }
  0x80   :  { %1233 = vmatmul.mubr.bf16.gmra.mrb[28].mxu0 %v1317_v38  ;;  %1265 = vmatmul.mubr.bf16.gmra.mrb[28].mxu1 %v1333_v39 }
 0x11b   :  { %v1206_v40 = vpop.f32.mrb[0].mxu0  ;;  %v1511_v41 = vpop.f32.mrb[0].mxu1 }
 0x11c   :  { %664 = vst.msk [vmem:[#allocation7 + $0x10] sm:$0xff] %vm661_vm0, %v1206_v40  ;;  %v406_v42 = vpop.f32.mrb[1].mxu0  ;;  %696 = vst.msk [vmem:[#allocation7 + $0x110] sm:$0xff] %vm661_vm0, %v1511_v41  ;;  %v1516_v43 = vpop.f32.mrb[1].mxu1  ;;  %v866_v49 = vmul.f32 %v1206_v40, %v1206_v40  ;;  %v730_v54 = vsel %vm661_vm0, %v1206_v40, 0.0 }
 0x11d   :  { %662 = vst.msk [vmem:[#allocation7] sm:$0xff] %vm661_vm0, %v406_v42  ;;  %v864_v44 = vmul.f32 %v406_v42, %v406_v42  ;;  %v1207_v45 = vpop.f32.mrb[2].mxu0  ;;  %694 = vst.msk [vmem:[#allocation7 + $0x100] sm:$0xff] %vm661_vm0, %v1516_v43  ;;  %v1521_v46 = vpop.f32.mrb[2].mxu1  ;;  %v727_v50 = vsel %vm661_vm0, %v406_v42, 0.0 }
 0x11e   :  { %665 = vst.msk [vmem:[#allocation7 + $0x18] sm:$0xff] %vm661_vm0, %v1207_v45  ;;  %v409_v47 = vpop.f32.mrb[3].mxu0  ;;  %697 = vst.msk [vmem:[#allocation7 + $0x118] sm:$0xff] %vm661_vm0, %v1521_v46  ;;  %v1526_v48 = vpop.f32.mrb[3].mxu1  ;;  %v867_v56 = vmul.f32 %v1207_v45, %v1207_v45  ;;  %v931_v60 = vsel %vm661_vm0, %v866_v49, 0.0  ;;  %v732_v61 = vsel %vm661_vm0, %v1207_v45, 0.0 }
 0x11f   :  { %663 = vst.msk [vmem:[#allocation7 + $0x8] sm:$0xff] %vm661_vm0, %v409_v47  ;;  %v728_v51 = vsel %vm661_vm0, %v409_v47, 0.0  ;;  %v865_v52 = vmul.f32 %v409_v47, %v409_v47  ;;  %695 = vst.msk [vmem:[#allocation7 + $0x108] sm:$0xff] %vm661_vm0, %v1526_v48  ;;  %v928_v55 = vsel %vm661_vm0, %v864_v44, 0.0 }
 0x120   :  { %v729_v53 = vadd.f32 %v728_v51, %v727_v50  ;;  %v933_v5 = vsel %vm661_vm0, %v867_v56, 0.0 }
 0x121   :  { %v929_v57 = vsel %vm661_vm0, %v865_v52, 0.0 }
 0x122   :  { %v731_v58 = vadd.f32 %v730_v54, %v729_v53  ;;  %v930_v59 = vadd.f32 %v929_v57, %v928_v55 }
 0x123   :  { %v1210_v62 = vpop.f32.mrb[4].mxu0  ;;  %v1538_v63 = vpop.f32.mrb[4].mxu1 }
 0x124   :  { %v932_v0 = vadd.f32 %v931_v60, %v930_v59  ;;  %668 = vst.msk [vmem:[#allocation7 + $0x30] sm:$0xff] %vm661_vm0, %v1210_v62  ;;  %v422_v1 = vpop.f32.mrb[5].mxu0  ;;  %v733_v2 = vadd.f32 %v732_v61, %v731_v58  ;;  %700 = vst.msk [vmem:[#allocation7 + $0x130] sm:$0xff] %vm661_vm0, %v1538_v63  ;;  %v1543_v3 = vpop.f32.mrb[5].mxu1  ;;  %v870_v14 = vmul.f32 %v1210_v62, %v1210_v62  ;;  %v738_v20 = vsel %vm661_vm0, %v1210_v62, 0.0 }
 0x125   :  { %666 = vst.msk [vmem:[#allocation7 + $0x20] sm:$0xff] %vm661_vm0, %v422_v1  ;;  %v734_v6 = vsel %vm661_vm0, %v422_v1, 0.0  ;;  %v868_v7 = vmul.f32 %v422_v1, %v422_v1  ;;  %v1211_v8 = vpop.f32.mrb[6].mxu0  ;;  %698 = vst.msk [vmem:[#allocation7 + $0x120] sm:$0xff] %vm661_vm0, %v1543_v3  ;;  %v1552_v9 = vpop.f32.mrb[6].mxu1 }
 0x126   :  { %v735_v10 = vadd.f32 %v734_v6, %v733_v2  ;;  %v934_v11 = vadd.f32 %v933_v5, %v932_v0  ;;  %669 = vst.msk [vmem:[#allocation7 + $0x38] sm:$0xff] %vm661_vm0, %v1211_v8  ;;  %v425_v12 = vpop.f32.mrb[7].mxu0  ;;  %701 = vst.msk [vmem:[#allocation7 + $0x138] sm:$0xff] %vm661_vm0, %v1552_v9  ;;  %v1557_v13 = vpop.f32.mrb[7].mxu1  ;;  %v871_v21 = vmul.f32 %v1211_v8, %v1211_v8  ;;  %v939_v25 = vsel %vm661_vm0, %v870_v14, 0.0 }
 0x127   :  { %v935_v15 = vsel %vm661_vm0, %v868_v7, 0.0  ;;  %667 = vst.msk [vmem:[#allocation7 + $0x28] sm:$0xff] %vm661_vm0, %v425_v12  ;;  %v736_v16 = vsel %vm661_vm0, %v425_v12, 0.0  ;;  %v869_v17 = vmul.f32 %v425_v12, %v425_v12  ;;  %699 = vst.msk [vmem:[#allocation7 + $0x128] sm:$0xff] %vm661_vm0, %v1557_v13  ;;  %v740_v26 = vsel %vm661_vm0, %v1211_v8, 0.0 }
 0x128   :  { %v936_v18 = vadd.f32 %v935_v15, %v934_v11  ;;  %v737_v19 = vadd.f32 %v736_v16, %v735_v10  ;;  %v941_v33 = vsel %vm661_vm0, %v871_v21, 0.0 }
 0x129   :  { %v937_v22 = vsel %vm661_vm0, %v869_v17, 0.0 }
 0x12a   :  { %v739_v23 = vadd.f32 %v738_v20, %v737_v19  ;;  %v938_v24 = vadd.f32 %v937_v22, %v936_v18 }
 0x12b   :  { %v1214_v27 = vpop.f32.mrb[8].mxu0  ;;  %v1568_v28 = vpop.f32.mrb[8].mxu1 }
 0x12c   :  { %v940_v29 = vadd.f32 %v939_v25, %v938_v24  ;;  %672 = vst.msk [vmem:[#allocation7 + $0x50] sm:$0xff] %vm661_vm0, %v1214_v27  ;;  %v438_v30 = vpop.f32.mrb[9].mxu0  ;;  %v741_v31 = vadd.f32 %v740_v26, %v739_v23  ;;  %704 = vst.msk [vmem:[#allocation7 + $0x150] sm:$0xff] %vm661_vm0, %v1568_v28  ;;  %v1573_v32 = vpop.f32.mrb[9].mxu1  ;;  %v874_v44 = vmul.f32 %v1214_v27, %v1214_v27  ;;  %v746_v52 = vsel %vm661_vm0, %v1214_v27, 0.0 }
 0x12d   :  { %670 = vst.msk [vmem:[#allocation7 + $0x40] sm:$0xff] %vm661_vm0, %v438_v30  ;;  %v742_v34 = vsel %vm661_vm0, %v438_v30, 0.0  ;;  %v872_v35 = vmul.f32 %v438_v30, %v438_v30  ;;  %v1215_v36 = vpop.f32.mrb[10].mxu0  ;;  %702 = vst.msk [vmem:[#allocation7 + $0x140] sm:$0xff] %vm661_vm0, %v1573_v32  ;;  %v1580_v37 = vpop.f32.mrb[10].mxu1 }
 0x12e   :  { %v743_v38 = vadd.f32 %v742_v34, %v741_v31  ;;  %v942_v39 = vadd.f32 %v941_v33, %v940_v29  ;;  %673 = vst.msk [vmem:[#allocation7 + $0x58] sm:$0xff] %vm661_vm0, %v1215_v36  ;;  %v441_v40 = vpop.f32.mrb[11].mxu0  ;;  %705 = vst.msk [vmem:[#allocation7 + $0x158] sm:$0xff] %vm661_vm0, %v1580_v37  ;;  %v1585_v42 = vpop.f32.mrb[11].mxu1  ;;  %v875_v53 = vmul.f32 %v1215_v36, %v1215_v36  ;;  %v947_v57 = vsel %vm661_vm0, %v874_v44, 0.0 }
 0x12f   :  { %v943_v45 = vsel %vm661_vm0, %v872_v35, 0.0  ;;  %671 = vst.msk [vmem:[#allocation7 + $0x48] sm:$0xff] %vm661_vm0, %v441_v40  ;;  %v744_v47 = vsel %vm661_vm0, %v441_v40, 0.0  ;;  %v873_v49 = vmul.f32 %v441_v40, %v441_v40  ;;  %703 = vst.msk [vmem:[#allocation7 + $0x148] sm:$0xff] %vm661_vm0, %v1585_v42  ;;  %v748_v58 = vsel %vm661_vm0, %v1215_v36, 0.0 }
 0x130   :  { %v944_v50 = vadd.f32 %v943_v45, %v942_v39  ;;  %v745_v51 = vadd.f32 %v744_v47, %v743_v38  ;;  %v949_v2 = vsel %vm661_vm0, %v875_v53, 0.0 }
 0x131   :  { %v945_v54 = vsel %vm661_vm0, %v873_v49, 0.0 }
 0x132   :  { %v747_v55 = vadd.f32 %v746_v52, %v745_v51  ;;  %v946_v56 = vadd.f32 %v945_v54, %v944_v50 }
 0x133   :  { %v1218_v59 = vpop.f32.mrb[12].mxu0  ;;  %v1596_v60 = vpop.f32.mrb[12].mxu1 }
 0x134   :  { %v948_v61 = vadd.f32 %v947_v57, %v946_v56  ;;  %676 = vst.msk [vmem:[#allocation7 + $0x70] sm:$0xff] %vm661_vm0, %v1218_v59  ;;  %v454_v62 = vpop.f32.mrb[13].mxu0  ;;  %v749_v0 = vadd.f32 %v748_v58, %v747_v55  ;;  %708 = vst.msk [vmem:[#allocation7 + $0x170] sm:$0xff] %vm661_vm0, %v1596_v60  ;;  %v1601_v1 = vpop.f32.mrb[13].mxu1  ;;  %v878_v14 = vmul.f32 %v1218_v59, %v1218_v59  ;;  %v754_v20 = vsel %vm661_vm0, %v1218_v59, 0.0 }
 0x135   :  { %674 = vst.msk [vmem:[#allocation7 + $0x60] sm:$0xff] %vm661_vm0, %v454_v62  ;;  %v750_v4 = vsel %vm661_vm0, %v454_v62, 0.0  ;;  %v876_v5 = vmul.f32 %v454_v62, %v454_v62  ;;  %v1219_v6 = vpop.f32.mrb[14].mxu0  ;;  %706 = vst.msk [vmem:[#allocation7 + $0x160] sm:$0xff] %vm661_vm0, %v1601_v1  ;;  %v1608_v7 = vpop.f32.mrb[14].mxu1 }
 0x136   :  { %v751_v8 = vadd.f32 %v750_v4, %v749_v0  ;;  %v950_v10 = vadd.f32 %v949_v2, %v948_v61  ;;  %677 = vst.msk [vmem:[#allocation7 + $0x78] sm:$0xff] %vm661_vm0, %v1219_v6  ;;  %v457_v11 = vpop.f32.mrb[15].mxu0  ;;  %709 = vst.msk [vmem:[#allocation7 + $0x178] sm:$0xff] %vm661_vm0, %v1608_v7  ;;  %v1613_v12 = vpop.f32.mrb[15].mxu1  ;;  %v879_v21 = vmul.f32 %v1219_v6, %v1219_v6  ;;  %v955_v25 = vsel %vm661_vm0, %v878_v14, 0.0 }
 0x137   :  { %v951_v15 = vsel %vm661_vm0, %v876_v5, 0.0  ;;  %675 = vst.msk [vmem:[#allocation7 + $0x68] sm:$0xff] %vm661_vm0, %v457_v11  ;;  %v752_v16 = vsel %vm661_vm0, %v457_v11, 0.0  ;;  %v877_v17 = vmul.f32 %v457_v11, %v457_v11  ;;  %707 = vst.msk [vmem:[#allocation7 + $0x168] sm:$0xff] %vm661_vm0, %v1613_v12  ;;  %v756_v26 = vsel %vm661_vm0, %v1219_v6, 0.0 }
 0x138   :  { %v952_v18 = vadd.f32 %v951_v15, %v950_v10  ;;  %v753_v19 = vadd.f32 %v752_v16, %v751_v8  ;;  %v957_v35 = vsel %vm661_vm0, %v879_v21, 0.0 }
 0x139   :  { %v953_v22 = vsel %vm661_vm0, %v877_v17, 0.0 }
 0x13a   :  { %v755_v23 = vadd.f32 %v754_v20, %v753_v19  ;;  %v954_v24 = vadd.f32 %v953_v22, %v952_v18 }
 0x13b   :  { %v1222_v27 = vpop.f32.mrb[16].mxu0  ;;  %v1624_v29 = vpop.f32.mrb[16].mxu1 }
 0x13c   :  { %v956_v30 = vadd.f32 %v955_v25, %v954_v24  ;;  %680 = vst.msk [vmem:[#allocation7 + $0x90] sm:$0xff] %vm661_vm0, %v1222_v27  ;;  %v470_v31 = vpop.f32.mrb[17].mxu0  ;;  %v757_v33 = vadd.f32 %v756_v26, %v755_v23  ;;  %712 = vst.msk [vmem:[#allocation7 + $0x190] sm:$0xff] %vm661_vm0, %v1624_v29  ;;  %v1629_v34 = vpop.f32.mrb[17].mxu1  ;;  %v882_v50 = vmul.f32 %v1222_v27, %v1222_v27  ;;  %v762_v56 = vsel %vm661_vm0, %v1222_v27, 0.0 }
 0x13d   :  { %678 = vst.msk [vmem:[#allocation7 + $0x80] sm:$0xff] %vm661_vm0, %v470_v31  ;;  %v758_v36 = vsel %vm661_vm0, %v470_v31, 0.0  ;;  %v880_v38 = vmul.f32 %v470_v31, %v470_v31  ;;  %v1223_v39 = vpop.f32.mrb[18].mxu0  ;;  %710 = vst.msk [vmem:[#allocation7 + $0x180] sm:$0xff] %vm661_vm0, %v1629_v34  ;;  %v1636_v40 = vpop.f32.mrb[18].mxu1 }
 0x13e   :  { %v759_v44 = vadd.f32 %v758_v36, %v757_v33  ;;  %v958_v45 = vadd.f32 %v957_v35, %v956_v30  ;;  %681 = vst.msk [vmem:[#allocation7 + $0x98] sm:$0xff] %vm661_vm0, %v1223_v39  ;;  %v473_v47 = vpop.f32.mrb[19].mxu0  ;;  %713 = vst.msk [vmem:[#allocation7 + $0x198] sm:$0xff] %vm661_vm0, %v1636_v40  ;;  %v1641_v49 = vpop.f32.mrb[19].mxu1  ;;  %v883_v57 = vmul.f32 %v1223_v39, %v1223_v39  ;;  %v963_v62 = vsel %vm661_vm0, %v882_v50, 0.0 }
 0x13f   :  { %v959_v51 = vsel %vm661_vm0, %v880_v38, 0.0  ;;  %679 = vst.msk [vmem:[#allocation7 + $0x88] sm:$0xff] %vm661_vm0, %v473_v47  ;;  %v760_v52 = vsel %vm661_vm0, %v473_v47, 0.0  ;;  %v881_v53 = vmul.f32 %v473_v47, %v473_v47  ;;  %711 = vst.msk [vmem:[#allocation7 + $0x188] sm:$0xff] %vm661_vm0, %v1641_v49  ;;  %v764_v0 = vsel %vm661_vm0, %v1223_v39, 0.0 }
 0x140   :  { %v960_v54 = vadd.f32 %v959_v51, %v958_v45  ;;  %v761_v55 = vadd.f32 %v760_v52, %v759_v44  ;;  %v965_v11 = vsel %vm661_vm0, %v883_v57, 0.0 }
 0x141   :  { %v961_v58 = vsel %vm661_vm0, %v881_v53, 0.0 }
 0x142   :  { %v763_v59 = vadd.f32 %v762_v56, %v761_v55  ;;  %v962_v61 = vadd.f32 %v961_v58, %v960_v54 }
 0x143   :  { %v1226_v2 = vpop.f32.mrb[20].mxu0  ;;  %v1652_v4 = vpop.f32.mrb[20].mxu1 }
 0x144   :  { %v964_v5 = vadd.f32 %v963_v62, %v962_v61  ;;  %684 = vst.msk [vmem:[#allocation7 + $0xb0] sm:$0xff] %vm661_vm0, %v1226_v2  ;;  %v486_v6 = vpop.f32.mrb[21].mxu0  ;;  %v765_v8 = vadd.f32 %v764_v0, %v763_v59  ;;  %716 = vst.msk [vmem:[#allocation7 + $0x1b0] sm:$0xff] %vm661_vm0, %v1652_v4  ;;  %v1657_v10 = vpop.f32.mrb[21].mxu1  ;;  %v886_v22 = vmul.f32 %v1226_v2, %v1226_v2  ;;  %v770_v30 = vsel %vm661_vm0, %v1226_v2, 0.0 }
 0x145   :  { %682 = vst.msk [vmem:[#allocation7 + $0xa0] sm:$0xff] %vm661_vm0, %v486_v6  ;;  %v766_v14 = vsel %vm661_vm0, %v486_v6, 0.0  ;;  %v884_v15 = vmul.f32 %v486_v6, %v486_v6  ;;  %v1227_v16 = vpop.f32.mrb[22].mxu0  ;;  %714 = vst.msk [vmem:[#allocation7 + $0x1a0] sm:$0xff] %vm661_vm0, %v1657_v10  ;;  %v1664_v17 = vpop.f32.mrb[22].mxu1 }
 0x146   :  { %v767_v18 = vadd.f32 %v766_v14, %v765_v8  ;;  %v966_v19 = vadd.f32 %v965_v11, %v964_v5  ;;  %685 = vst.msk [vmem:[#allocation7 + $0xb8] sm:$0xff] %vm661_vm0, %v1227_v16  ;;  %v489_v20 = vpop.f32.mrb[23].mxu0  ;;  %717 = vst.msk [vmem:[#allocation7 + $0x1b8] sm:$0xff] %vm661_vm0, %v1664_v17  ;;  %v1669_v21 = vpop.f32.mrb[23].mxu1  ;;  %v887_v31 = vmul.f32 %v1227_v16, %v1227_v16  ;;  %v971_v38 = vsel %vm661_vm0, %v886_v22, 0.0 }
 0x147   :  { %v967_v23 = vsel %vm661_vm0, %v884_v15, 0.0  ;;  %683 = vst.msk [vmem:[#allocation7 + $0xa8] sm:$0xff] %vm661_vm0, %v489_v20  ;;  %v768_v24 = vsel %vm661_vm0, %v489_v20, 0.0  ;;  %v885_v25 = vmul.f32 %v489_v20, %v489_v20  ;;  %715 = vst.msk [vmem:[#allocation7 + $0x1a8] sm:$0xff] %vm661_vm0, %v1669_v21  ;;  %v772_v39 = vsel %vm661_vm0, %v1227_v16, 0.0 }
 0x148   :  { %v968_v26 = vadd.f32 %v967_v23, %v966_v19  ;;  %v769_v27 = vadd.f32 %v768_v24, %v767_v18  ;;  %v973_v53 = vsel %vm661_vm0, %v887_v31, 0.0 }
 0x149   :  { %v969_v33 = vsel %vm661_vm0, %v885_v25, 0.0 }
 0x14a   :  { %v771_v35 = vadd.f32 %v770_v30, %v769_v27  ;;  %v970_v36 = vadd.f32 %v969_v33, %v968_v26 }
 0x14b   :  { %v1230_v44 = vpop.f32.mrb[24].mxu0  ;;  %v1680_v45 = vpop.f32.mrb[24].mxu1 }
 0x14c   :  { %v972_v47 = vadd.f32 %v971_v38, %v970_v36  ;;  %688 = vst.msk [vmem:[#allocation7 + $0xd0] sm:$0xff] %vm661_vm0, %v1230_v44  ;;  %v502_v50 = vpop.f32.mrb[25].mxu0  ;;  %v773_v51 = vadd.f32 %v772_v39, %v771_v35  ;;  %720 = vst.msk [vmem:[#allocation7 + $0x1d0] sm:$0xff] %vm661_vm0, %v1680_v45  ;;  %v1685_v52 = vpop.f32.mrb[25].mxu1  ;;  %v890_v0 = vmul.f32 %v1230_v44, %v1230_v44  ;;  %v778_v14 = vsel %vm661_vm0, %v1230_v44, 0.0 }
 0x14d   :  { %686 = vst.msk [vmem:[#allocation7 + $0xc0] sm:$0xff] %vm661_vm0, %v502_v50  ;;  %v774_v54 = vsel %vm661_vm0, %v502_v50, 0.0  ;;  %v888_v55 = vmul.f32 %v502_v50, %v502_v50  ;;  %v1231_v56 = vpop.f32.mrb[26].mxu0  ;;  %718 = vst.msk [vmem:[#allocation7 + $0x1c0] sm:$0xff] %vm661_vm0, %v1685_v52  ;;  %v1692_v57 = vpop.f32.mrb[26].mxu1 }
 0x14e   :  { %v775_v58 = vadd.f32 %v774_v54, %v773_v51  ;;  %v974_v59 = vadd.f32 %v973_v53, %v972_v47  ;;  %689 = vst.msk [vmem:[#allocation7 + $0xd8] sm:$0xff] %vm661_vm0, %v1231_v56  ;;  %v505_v61 = vpop.f32.mrb[27].mxu0  ;;  %721 = vst.msk [vmem:[#allocation7 + $0x1d8] sm:$0xff] %vm661_vm0, %v1692_v57  ;;  %v1697_v62 = vpop.f32.mrb[27].mxu1  ;;  %v891_v15 = vmul.f32 %v1231_v56, %v1231_v56  ;;  %v979_v20 = vsel %vm661_vm0, %v890_v0, 0.0 }
 0x14f   :  { %v975_v2 = vsel %vm661_vm0, %v888_v55, 0.0  ;;  %687 = vst.msk [vmem:[#allocation7 + $0xc8] sm:$0xff] %vm661_vm0, %v505_v61  ;;  %v776_v5 = vsel %vm661_vm0, %v505_v61, 0.0  ;;  %v889_v6 = vmul.f32 %v505_v61, %v505_v61  ;;  %719 = vst.msk [vmem:[#allocation7 + $0x1c8] sm:$0xff] %vm661_vm0, %v1697_v62  ;;  %v780_v22 = vsel %vm661_vm0, %v1231_v56, 0.0 }
 0x150   :  { %v976_v8 = vadd.f32 %v975_v2, %v974_v59  ;;  %v777_v11 = vadd.f32 %v776_v5, %v775_v58  ;;  %v981_v31 = vsel %vm661_vm0, %v891_v15, 0.0 }
 0x151   :  { %v977_v16 = vsel %vm661_vm0, %v889_v6, 0.0 }
 0x152   :  { %v779_v18 = vadd.f32 %v778_v14, %v777_v11  ;;  %v978_v19 = vadd.f32 %v977_v16, %v976_v8 }
 0x153   :  { %v1234_v23 = vpop.f32.mrb[28].mxu0  ;;  %v1708_v24 = vpop.f32.mrb[28].mxu1 }
 0x154   :  { %v980_v25 = vadd.f32 %v979_v20, %v978_v19  ;;  %692 = vst.msk [vmem:[#allocation7 + $0xf0] sm:$0xff] %vm661_vm0, %v1234_v23  ;;  %v518_v26 = vpop.f32.mrb[29].mxu0  ;;  %v781_v27 = vadd.f32 %v780_v22, %v779_v18  ;;  %724 = vst.msk [vmem:[#allocation7 + $0x1f0] sm:$0xff] %vm661_vm0, %v1708_v24  ;;  %v1713_v30 = vpop.f32.mrb[29].mxu1  ;;  %v894_v51 = vmul.f32 %v1234_v23, %v1234_v23 }
 0x155   :  { %690 = vst.msk [vmem:[#allocation7 + $0xe0] sm:$0xff] %vm661_vm0, %v518_v26  ;;  %v782_v33 = vsel %vm661_vm0, %v518_v26, 0.0  ;;  %v892_v35 = vmul.f32 %v518_v26, %v518_v26  ;;  %v1235_v36 = vpop.f32.mrb[30].mxu0  ;;  %722 = vst.msk [vmem:[#allocation7 + $0x1e0] sm:$0xff] %vm661_vm0, %v1713_v30  ;;  %v1720_v38 = vpop.f32.mrb[30].mxu1 }
 0x156   :  { %v783_v39 = vadd.f32 %v782_v33, %v781_v27  ;;  %v982_v44 = vadd.f32 %v981_v31, %v980_v25  ;;  %693 = vst.msk [vmem:[#allocation7 + $0xf8] sm:$0xff] %vm661_vm0, %v1235_v36  ;;  %v521_v47 = vpop.f32.mrb[31].mxu0  ;;  %725 = vst.msk [vmem:[#allocation7 + $0x1f8] sm:$0xff] %vm661_vm0, %v1720_v38  ;;  %v1727_v50 = vpop.f32.mrb[31].mxu1 }
 0x157   :  { %v983_v53 = vsel %vm661_vm0, %v892_v35, 0.0  ;;  %691 = vst.msk [vmem:[#allocation7 + $0xe8] sm:$0xff] %vm661_vm0, %v521_v47  ;;  %v784_v54 = vsel %vm661_vm0, %v521_v47, 0.0  ;;  %v893_v55 = vmul.f32 %v521_v47, %v521_v47  ;;  %723 = vst.msk [vmem:[#allocation7 + $0x1e8] sm:$0xff] %vm661_vm0, %v1727_v50 }
 0x158   :  { %v984_v56 = vadd.f32 %v983_v53, %v982_v44  ;;  %v785_v58 = vadd.f32 %v784_v54, %v783_v39 }
 0x159   :  { %1389 = shalt.err (!%p1386_p6)
}
 0x15a   :  { %s1390_s18 = scalar_lea.hbm %s1952_s2, 8192 }
 0x15b   :  { %p1391_p7 = scmp.ne.s32.totalorder %s1952_s2, %s1390_s18  ;;  %p1394_p8 = scmp.lt.u32.totalorder %s1390_s18, %s1952_s2 }
 0x15d   :  { %p1396_p9 = pnand %p1394_p8, %p1391_p7 }
 0x15f   :  { %1399 = shalt.err (!%p1396_p9)
}
 0x160   :  { %s1458_s23 = smov 128   ;;  %s1459_s24 = smov 8   ;;  %v786_v59 = vsel %vm661_vm0, %v1234_v23, 0.0  ;;  %v895_v61 = vmul.f32 %v1235_v36, %v1235_v36  ;;  %v985_v0 = vsel %vm661_vm0, %v893_v55, 0.0  ;;  %v896_v2 = vmul.f32 %v1516_v43, %v1516_v43 }
 0x161   :  { %1074 = dma.vmem_to_hbm [thread:$0]  %s1722_s14, 8192, %s1952_s2, [#allocation4], %s1458_s23, %s1458_s23, %s1459_s24   ;;  %v787_v5 = vadd.f32 %v786_v59, %v785_v58  ;;  %v986_v6 = vadd.f32 %v985_v0, %v984_v56  ;;  %v987_v8 = vsel %vm661_vm0, %v894_v51, 0.0  ;;  %v788_v11 = vsel %vm661_vm0, %v1235_v36, 0.0 }
 0x162   :  { %v790_v14 = vsel %vm661_vm0, %v1516_v43, 0.0  ;;  %v989_v18 = vsel %vm661_vm0, %v895_v61, 0.0  ;;  %v991_v19 = vsel %vm661_vm0, %v896_v2, 0.0  ;;  %v897_v20 = vmul.f32 %v1526_v48, %v1526_v48  ;;  %s1460_s2 = smov [#allocation8]   ;;  %s1461_s28 = smov [#allocation10]  }
 0x163   :  { %v988_v15 = vadd.f32 %v987_v8, %v986_v6  ;;  %v789_v16 = vadd.f32 %v788_v11, %v787_v5  ;;  %v898_v25 = vmul.f32 %v1511_v41, %v1511_v41  ;;  %v792_v26 = vsel %vm661_vm0, %v1526_v48, 0.0  ;;  %s1081_s27 = sshll.u32 %s1460_s2, 4  ;;  %s1091_s29 = sshll.u32 %s1461_s28, 4  ;;  %s1082_s27 = int_to_ptr.vmem [resolvable:$true] %s1081_s27  ;;  %s1917_s29 = int_to_ptr.vmem [resolvable:$true] %s1091_s29 }
 0x164   :  { %v794_v43 = vsel %vm661_vm0, %v1511_v41, 0.0  ;;  %v899_v33 = vmul.f32 %v1521_v46, %v1521_v46  ;;  %v993_v35 = vsel %vm661_vm0, %v897_v20, 0.0  ;;  %v900_v36 = vmul.f32 %v1543_v3, %v1543_v3  ;;  %s1400_s30 = scalar_lea.vmem %s1082_s27, 16  ;;  %s1404_s5 = scalar_lea.vmem %s1082_s27, 32 }
 0x165   :  { %v791_v22 = vadd.f32 %v790_v14, %v789_v16  ;;  %v990_v23 = vadd.f32 %v989_v18, %v988_v15  ;;  %v995_v47 = vsel %vm661_vm0, %v898_v25, 0.0  ;;  %v796_v48 = vsel %vm661_vm0, %v1521_v46, 0.0  ;;  %p1401_p10 = scmp.ne.s32.totalorder %s1082_s27, %s1400_s30  ;;  %p1405_p11 = scmp.lt.s32.totalorder %s1082_s27, %s1082_s27 }
 0x166   :  { %v798_v51 = vsel %vm661_vm0, %v1543_v3, 0.0  ;;  %v997_v54 = vsel %vm661_vm0, %v899_v33, 0.0  ;;  %v999_v55 = vsel %vm661_vm0, %v900_v36, 0.0  ;;  %v901_v56 = vmul.f32 %v1557_v13, %v1557_v13  ;;  %p1406_p12 = scmp.lt.s32.totalorder %s1404_s5, %s1400_s30 }
 0x167   :  { %v992_v27 = vadd.f32 %v991_v19, %v990_v23  ;;  %v793_v31 = vadd.f32 %v792_v26, %v791_v22  ;;  %v902_v61 = vmul.f32 %v1538_v63, %v1538_v63  ;;  %v800_v46 = vsel %vm661_vm0, %v1557_v13, 0.0 }
 0x168   :  { %v802_v3 = vsel %vm661_vm0, %v1538_v63, 0.0  ;;  %v903_v5 = vmul.f32 %v1552_v9, %v1552_v9  ;;  %v1001_v6 = vsel %vm661_vm0, %v901_v56, 0.0  ;;  %v904_v8 = vmul.f32 %v1573_v32, %v1573_v32  ;;  %p1407_p13 = por %p1406_p12, %p1405_p11 }
 0x169   :  { %v795_v39 = vadd.f32 %v794_v43, %v793_v31  ;;  %v994_v44 = vadd.f32 %v993_v35, %v992_v27  ;;  %v1003_v15 = vsel %vm661_vm0, %v902_v61, 0.0  ;;  %v804_v13 = vsel %vm661_vm0, %v1552_v9, 0.0 }
 0x16a   :  { %v806_v16 = vsel %vm661_vm0, %v1573_v32, 0.0  ;;  %v1005_v19 = vsel %vm661_vm0, %v903_v5, 0.0  ;;  %v1007_v20 = vsel %vm661_vm0, %v904_v8, 0.0  ;;  %v905_v22 = vmul.f32 %v1585_v42, %v1585_v42  ;;  %p1408_p0 = pnand %p1407_p13, %p1401_p10 }
 0x16b   :  { %v996_v53 = vadd.f32 %v995_v47, %v994_v44  ;;  %v797_v41 = vadd.f32 %v796_v48, %v795_v39  ;;  %v906_v26 = vmul.f32 %v1568_v28, %v1568_v28  ;;  %v808_v9 = vsel %vm661_vm0, %v1585_v42, 0.0 }
 0x16c   :  { %v810_v32 = vsel %vm661_vm0, %v1568_v28, 0.0  ;;  %v907_v43 = vmul.f32 %v1580_v37, %v1580_v37  ;;  %v1009_v33 = vsel %vm661_vm0, %v905_v22, 0.0  ;;  %v908_v35 = vmul.f32 %v1601_v1, %v1601_v1 }
 0x16d   :  { %v799_v58 = vadd.f32 %v798_v51, %v797_v41  ;;  %v998_v59 = vadd.f32 %v997_v54, %v996_v53  ;;  %v1011_v44 = vsel %vm661_vm0, %v906_v26, 0.0  ;;  %v812_v42 = vsel %vm661_vm0, %v1580_v37, 0.0 }
 0x16e   :  { %v814_v47 = vsel %vm661_vm0, %v1601_v1, 0.0  ;;  %v1013_v51 = vsel %vm661_vm0, %v907_v43, 0.0  ;;  %v1015_v53 = vsel %vm661_vm0, %v908_v35, 0.0  ;;  %v909_v41 = vmul.f32 %v1613_v12, %v1613_v12 }
 0x16f   :  { %v1000_v0 = vadd.f32 %v999_v55, %v998_v59  ;;  %v801_v2 = vadd.f32 %v800_v46, %v799_v58  ;;  %v910_v56 = vmul.f32 %v1596_v60, %v1596_v60  ;;  %v816_v37 = vsel %vm661_vm0, %v1613_v12, 0.0 }
 0x170   :  { %v818_v1 = vsel %vm661_vm0, %v1596_v60, 0.0  ;;  %v911_v61 = vmul.f32 %v1608_v7, %v1608_v7  ;;  %v1017_v46 = vsel %vm661_vm0, %v909_v41, 0.0  ;;  %v820_v12 = vsel %vm661_vm0, %v1608_v7, 0.0 }
 0x171   :  { %v803_v11 = vadd.f32 %v802_v3, %v801_v2  ;;  %v1002_v14 = vadd.f32 %v1001_v6, %v1000_v0  ;;  %v912_v0 = vmul.f32 %v1629_v34, %v1629_v34  ;;  %v1019_v5 = vsel %vm661_vm0, %v910_v56, 0.0 }
 0x172   :  { %v822_v6 = vsel %vm661_vm0, %v1629_v34, 0.0  ;;  %v824_v7 = vsel %vm661_vm0, %v1641_v49, 0.0  ;;  %v826_v34 = vsel %vm661_vm0, %v1624_v29, 0.0 }
 0x173   :  { %v1004_v18 = vadd.f32 %v1003_v15, %v1002_v14  ;;  %v805_v63 = vadd.f32 %v804_v13, %v803_v11  ;;  %v1021_v11 = vsel %vm661_vm0, %v911_v61, 0.0  ;;  %v1023_v14 = vsel %vm661_vm0, %v912_v0, 0.0 }
 0x174   :  { %v913_v15 = vmul.f32 %v1641_v49, %v1641_v49  ;;  %v828_v49 = vsel %vm661_vm0, %v1636_v40, 0.0  ;;  %v922_v61 = vmul.f32 %v1680_v45, %v1680_v45 }
 0x175   :  { %v807_v23 = vadd.f32 %v806_v16, %v805_v63  ;;  %v1006_v25 = vadd.f32 %v1005_v19, %v1004_v18  ;;  %v914_v18 = vmul.f32 %v1624_v29, %v1624_v29 }
 0x176   :  { %v1025_v22 = vsel %vm661_vm0, %v913_v15, 0.0 }
 0x177   :  { %v1008_v27 = vadd.f32 %v1007_v20, %v1006_v25  ;;  %v809_v31 = vadd.f32 %v808_v9, %v807_v23  ;;  %v915_v20 = vmul.f32 %v1636_v40, %v1636_v40  ;;  %v916_v23 = vmul.f32 %v1657_v10, %v1657_v10 }
 0x178   :  { %v1027_v9 = vsel %vm661_vm0, %v914_v18, 0.0  ;;  %v832_v40 = vsel %vm661_vm0, %v1669_v21, 0.0 }
 0x179   :  { %v811_v36 = vadd.f32 %v810_v32, %v809_v31  ;;  %v1010_v39 = vadd.f32 %v1009_v33, %v1008_v27  ;;  %v830_v27 = vsel %vm661_vm0, %v1657_v10, 0.0  ;;  %v1029_v32 = vsel %vm661_vm0, %v915_v20, 0.0 }
 0x17a   :  { %v1031_v43 = vsel %vm661_vm0, %v916_v23, 0.0  ;;  %v917_v33 = vmul.f32 %v1669_v21, %v1669_v21  ;;  %v834_v10 = vsel %vm661_vm0, %v1652_v4, 0.0  ;;  %v836_v21 = vsel %vm661_vm0, %v1664_v17, 0.0 }
 0x17b   :  { %v1012_v48 = vadd.f32 %v1011_v44, %v1010_v39  ;;  %v813_v28 = vadd.f32 %v812_v42, %v811_v36  ;;  %v918_v39 = vmul.f32 %v1652_v4, %v1652_v4 }
 0x17d   :  { %v815_v54 = vadd.f32 %v814_v47, %v813_v28  ;;  %v1014_v55 = vadd.f32 %v1013_v51, %v1012_v48  ;;  %v919_v47 = vmul.f32 %v1664_v17, %v1664_v17  ;;  %v1033_v48 = vsel %vm661_vm0, %v917_v33, 0.0 }
 0x17e   :  { %v920_v28 = vmul.f32 %v1685_v52, %v1685_v52  ;;  %v1035_v41 = vsel %vm661_vm0, %v918_v39, 0.0  ;;  %v840_v17 = vsel %vm661_vm0, %v1697_v62, 0.0 }
 0x17f   :  { %v1016_v58 = vadd.f32 %v1015_v53, %v1014_v55  ;;  %v817_v59 = vadd.f32 %v816_v37, %v815_v54  ;;  %v838_v54 = vsel %vm661_vm0, %v1685_v52, 0.0  ;;  %v1037_v56 = vsel %vm661_vm0, %v919_v47, 0.0 }
 0x180   :  { %v1039_v37 = vsel %vm661_vm0, %v920_v28, 0.0  ;;  %v842_v52 = vsel %vm661_vm0, %v1680_v45, 0.0 }
 0x181   :  { %v819_v2 = vadd.f32 %v818_v1, %v817_v59  ;;  %v1018_v3 = vadd.f32 %v1017_v46, %v1016_v58  ;;  %v921_v58 = vmul.f32 %v1697_v62, %v1697_v62  ;;  %v844_v62 = vsel %vm661_vm0, %v1692_v57, 0.0 }
 0x183   :  { %v1020_v8 = vadd.f32 %v1019_v5, %v1018_v3  ;;  %v821_v60 = vadd.f32 %v820_v12, %v819_v2  ;;  %v923_v2 = vmul.f32 %v1692_v57, %v1692_v57  ;;  %v1041_v3 = vsel %vm661_vm0, %v921_v58, 0.0 }
 0x184   :  { %v924_v5 = vmul.f32 %v1713_v30, %v1713_v30  ;;  %v848_v57 = vsel %vm661_vm0, %v1727_v50, 0.0 }
 0x185   :  { %v823_v13 = vadd.f32 %v822_v6, %v821_v60  ;;  %v1022_v16 = vadd.f32 %v1021_v11, %v1020_v8  ;;  %v1043_v8 = vsel %vm661_vm0, %v922_v61, 0.0  ;;  %v846_v60 = vsel %vm661_vm0, %v1713_v30, 0.0 }
 0x186   :  { %v1047_v15 = vsel %vm661_vm0, %v924_v5, 0.0  ;;  %v850_v30 = vsel %vm661_vm0, %v1708_v24, 0.0 }
 0x187   :  { %v1024_v63 = vadd.f32 %v1023_v14, %v1022_v16  ;;  %v825_v19 = vadd.f32 %v824_v7, %v823_v13  ;;  %v1045_v14 = vsel %vm661_vm0, %v923_v2, 0.0  ;;  %v925_v13 = vmul.f32 %v1727_v50, %v1727_v50 }
 0x188   :  { %v926_v7 = vmul.f32 %v1708_v24, %v1708_v24 }
 0x189   :  { %v827_v25 = vadd.f32 %v826_v34, %v825_v19  ;;  %v1026_v26 = vadd.f32 %v1025_v22, %v1024_v63  ;;  %v927_v34 = vmul.f32 %v1720_v38, %v1720_v38  ;;  %v1049_v20 = vsel %vm661_vm0, %v925_v13, 0.0 }
 0x18b   :  { %v1028_v31 = vadd.f32 %v1027_v9, %v1026_v26  ;;  %v829_v29 = vadd.f32 %v828_v49, %v827_v25  ;;  %v1051_v25 = vsel %vm661_vm0, %v926_v7, 0.0  ;;  %v852_v26 = vsel %vm661_vm0, %v1720_v38, 0.0  ;;  %v863_v38 = vld [vmem:[#allocation10] sm:$0x1] }
 0x18c   :  { %v1053_v50 = vsel %vm661_vm0, %v927_v34, 0.0 }
 0x18d   :  { %v831_v35 = vadd.f32 %v830_v27, %v829_v29  ;;  %v1030_v36 = vadd.f32 %v1029_v32, %v1028_v31 }
 0x18f   :  { %v1032_v44 = vadd.f32 %v1031_v43, %v1030_v36  ;;  %v833_v42 = vadd.f32 %v832_v40, %v831_v35  ;;  %v726_v40 = vld [vmem:[#allocation8] sm:$0x1] }
 0x191   :  { %v835_v51 = vadd.f32 %v834_v10, %v833_v42  ;;  %v1034_v53 = vadd.f32 %v1033_v48, %v1032_v44 }
 0x193   :  { %v1036_v55 = vadd.f32 %v1035_v41, %v1034_v53  ;;  %v837_v4 = vadd.f32 %v836_v21, %v835_v51 }
 0x195   :  { %v839_v59 = vadd.f32 %v838_v54, %v837_v4  ;;  %v1038_v1 = vadd.f32 %v1037_v56, %v1036_v55 }
 0x197   :  { %v1040_v46 = vadd.f32 %v1039_v37, %v1038_v1  ;;  %v841_v0 = vadd.f32 %v840_v17, %v839_v59 }
 0x199   :  { %v843_v12 = vadd.f32 %v842_v52, %v841_v0  ;;  %v1042_v6 = vadd.f32 %v1041_v3, %v1040_v46 }
 0x19b   :  { %v1044_v11 = vadd.f32 %v1043_v8, %v1042_v6  ;;  %v845_v45 = vadd.f32 %v844_v62, %v843_v12 }
 0x19d   :  { %v847_v16 = vadd.f32 %v846_v60, %v845_v45  ;;  %v1046_v18 = vadd.f32 %v1045_v14, %v1044_v11 }
 0x19f   :  { %v1048_v63 = vadd.f32 %v1047_v15, %v1046_v18  ;;  %v849_v19 = vadd.f32 %v848_v57, %v847_v16 }
 0x1a1   :  { %v851_v22 = vadd.f32 %v850_v30, %v849_v19  ;;  %v1050_v23 = vadd.f32 %v1049_v20, %v1048_v63 }
 0x1a3   :  { %v853_v9 = vadd.f32 %v852_v26, %v851_v22  ;;  %v1052_v49 = vadd.f32 %v1051_v25, %v1050_v23 }
 0x1a5   :  { %v854_v27 = vrot.slane %v853_v9, 4  ;;  %v1054_v31 = vadd.f32 %v1053_v50, %v1052_v49 }
 0x1a7   :  { %v855_v29 = vadd.f32 %v854_v27, %v853_v9  ;;  %v1055_v24 = vrot.slane %v1054_v31, 4 }
 0x1a9   :  { %v856_v32 = vrot.slane %v855_v29, 2  ;;  %v1056_v43 = vadd.f32 %v1055_v24, %v1054_v31 }
 0x1ab   :  { %v857_v33 = vadd.f32 %v856_v32, %v855_v29  ;;  %v1057_v35 = vrot.slane %v1056_v43, 2 }
 0x1ad   :  { %v858_v36 = vrot.slane %v857_v33, 1  ;;  %v1058_v39 = vadd.f32 %v1057_v35, %v1056_v43 }
 0x1af   :  { %v859_v44 = vadd.f32 %v858_v36, %v857_v33  ;;  %v1059_v42 = vrot.slane %v1058_v39, 1 }
 0x1b1   :  { %v860_v10 = vadd.f32 %v859_v44, %v726_v40  ;;  %v1060_v47 = vadd.f32 %v1059_v42, %v1058_v39 }
 0x1b3   :  { %862 = vst.msk [vmem:[#allocation8] sm:$0x1] %vm49_vm1, %v860_v10  ;;  %v1061_v48 = vadd.f32 %v1060_v47, %v863_v38 }
 0x1b4   :  { %1411 = shalt.err (!%p1408_p0)
}
 0x1b5   :  { %s1412_s8 = scalar_lea.hbm %s1953_s3, 16 }
 0x1b6   :  { %p1413_p1 = scmp.ne.s32.totalorder %s1953_s3, %s1412_s8  ;;  %p1416_p2 = scmp.lt.u32.totalorder %s1412_s8, %s1953_s3 }
 0x1b8   :  { %p1418_p3 = pnand %p1416_p2, %p1413_p1 }
 0x1ba   :  { %1421 = shalt.err (!%p1418_p3)
}
 0x1bb   :  { %1084 = dma.vmem_to_hbm [thread:$0]  %s1082_s27, 16, %s1953_s3, [#allocation9]   ;;  %1062 = vst.msk [vmem:[#allocation10] sm:$0x1] %vm49_vm1, %v1061_v48 }
 0x1bc   :  { %s1422_s1 = scalar_lea.vmem %s1917_s29, 16  ;;  %s1426_s14 = scalar_lea.vmem %s1917_s29, 32 }
 0x1bd   :  { %p1423_p4 = scmp.ne.s32.totalorder %s1917_s29, %s1422_s1  ;;  %p1427_p5 = scmp.lt.s32.totalorder %s1917_s29, %s1917_s29 }
 0x1be   :  { %p1428_p6 = scmp.lt.s32.totalorder %s1426_s14, %s1422_s1 }
 0x1c0   :  { %p1429_p7 = por %p1428_p6, %p1427_p5 }
 0x1c2   :  { %p1430_p8 = pnand %p1429_p7, %p1423_p4 }
 0x1c4   :  { %1433 = shalt.err (!%p1430_p8)
}
 0x1c5   :  { %s1434_s17 = scalar_lea.hbm %s1954_s4, 16 }
 0x1c6   :  { %p1435_p9 = scmp.ne.s32.totalorder %s1954_s4, %s1434_s17  ;;  %p1438_p10 = scmp.lt.u32.totalorder %s1434_s17, %s1954_s4 }
 0x1c8   :  { %p1440_p11 = pnand %p1438_p10, %p1435_p9 }
 0x1ca   :  { %1443 = shalt.err (!%p1440_p11)
}
 0x1cb   :  { %1094 = dma.vmem_to_hbm [thread:$0]  %s1917_s29, 16, %s1954_s4, [#allocation9]  }
 0x1cc   :  { %1448 = dma.done.wait [#allocation4], 8192  }
 0x1cd   :  { %1449 = vsyncadd [#allocation4], 4294959104 }
 0x1ce   :  { %1450 = dma.done.wait [#allocation9], 32  }
 0x1cf   :  { %1451 = vsyncadd [#allocation9], 4294967264 }
 0x1d0   :  { %1104 = vsyncpa [#allocation3], 1 }
 0x1d1   :  { %1105 = vsyncpa [#allocation6], 1 }
 0x1d2   :  { %1106 = vsyncpa [#allocation4], 1 }
 0x1d3   :  { %1107 = vsyncpa [#allocation9], 1 }

// kernel: discriminator_dc_forward.10
= control target key start
LH: loop header
LB: loop body
LE: loop exit
PB: predicated region body
PF: predicated region fallthrough
CT: control target
= control target key end

     0   :  { %8 = vsyncpa [#allocation3], 0  ;;  %s924_s0 = inlined_call_operand.hbm [shape: f32[512,16], index: 0, kind: input, shape index: {}]   ;;  %s925_s1 = inlined_call_operand.hbm [shape: f32[1,16], index: 1, kind: input, shape index: {}]   ;;  %s926_s2 = inlined_call_operand.hbm [shape: f32[1,16], index: 2, kind: input, shape index: {}]   ;;  %s927_s3 = inlined_call_operand.hbm [shape: f32[512,16], index: 3, kind: output, shape index: {}]  }
   0x1   :  { %9 = vsyncpa [#allocation6], 0 }
   0x2   :  { %10 = vsyncpa [#allocation4], 0  ;;  %s635_s12 = smov [#allocation5]   ;;  %s636_s14 = smov [#allocation2]  }
   0x3   :  { %s29_s13 = sshll.u32 %s635_s12, 4  ;;  %s16_s15 = sshll.u32 %s636_s14, 4  ;;  %s30_s13 = int_to_ptr.vmem [resolvable:$true] %s29_s13  ;;  %s661_s15 = int_to_ptr.vmem [resolvable:$true] %s16_s15 }
   0x4   :  { %s541_s18 = scalar_lea.hbm %s925_s1, 16 }
   0x5   :  { %p542_p0 = scmp.ne.s32.totalorder %s925_s1, %s541_s18  ;;  %p545_p1 = scmp.lt.u32.totalorder %s541_s18, %s925_s1 }
   0x7   :  { %p547_p2 = pnand %p545_p1, %p542_p0 }
   0x9   :  { %550 = shalt.err (!%p547_p2)
}
   0xa   :  { %s551_s23 = scalar_lea.vmem %s30_s13, 16  ;;  %s555_s24 = scalar_lea.vmem %s30_s13, 32 }
   0xb   :  { %p552_p3 = scmp.ne.s32.totalorder %s30_s13, %s551_s23  ;;  %p556_p4 = scmp.lt.s32.totalorder %s30_s13, %s30_s13 }
   0xc   :  { %p557_p5 = scmp.lt.s32.totalorder %s555_s24, %s551_s23 }
   0xe   :  { %p558_p6 = por %p557_p5, %p556_p4 }
  0x10   :  { %p559_p7 = pnand %p558_p6, %p552_p3 }
  0x12   :  { %562 = shalt.err (!%p559_p7)
}
  0x13   :  { %32 = dma.hbm_to_vmem [thread:$0]  %s925_s1, 16, %s30_s13, [#allocation6]  }
  0x14   :  { %s563_s29 = scalar_lea.hbm %s924_s0, 8192 }
  0x15   :  { %p564_p8 = scmp.ne.s32.totalorder %s924_s0, %s563_s29  ;;  %p567_p9 = scmp.lt.u32.totalorder %s563_s29, %s924_s0 }
  0x17   :  { %p569_p10 = pnand %p567_p9, %p564_p8 }
  0x19   :  { %572 = shalt.err (!%p569_p10)
}
  0x1a   :  { %s573_s7 = scalar_lea.vmem %s661_s15, 8192  ;;  %p578_p12 = scmp.lt.s32.totalorder %s661_s15, %s661_s15 }
  0x1b   :  { %p574_p11 = scmp.ne.s32.totalorder %s661_s15, %s573_s7  ;;  %p579_p13 = scmp.lt.s32.totalorder %s573_s7, %s573_s7 }
  0x1d   :  { %p580_p0 = por %p579_p13, %p578_p12 }
  0x1f   :  { %p581_p1 = pnand %p580_p0, %p574_p11 }
  0x21   :  { %584 = shalt.err (!%p581_p1)
}
  0x22   :  { %s637_s1 = smov 128   ;;  %s638_s8 = smov 8  }
  0x23   :  { %22 = dma.hbm_to_vmem [thread:$0]  %s924_s0, 8192, %s661_s15, [#allocation3], %s637_s1, %s637_s1, %s638_s8  }
  0x24   :  { %s639_s11 = smov [#allocation7]   ;;  %s585_s16 = scalar_lea.hbm %s926_s2, 16 }
  0x25   :  { %s39_s12 = sshll.u32 %s639_s11, 4  ;;  %p586_p2 = scmp.ne.s32.totalorder %s926_s2, %s585_s16  ;;  %s40_s12 = int_to_ptr.vmem [resolvable:$true] %s39_s12 }
  0x26   :  { %p589_p3 = scmp.lt.u32.totalorder %s585_s16, %s926_s2 }
  0x28   :  { %p591_p4 = pnand %p589_p3, %p586_p2 }
  0x2a   :  { %594 = shalt.err (!%p591_p4)
}
  0x2b   :  { %s595_s21 = scalar_lea.vmem %s40_s12, 16  ;;  %s599_s0 = scalar_lea.vmem %s40_s12, 32 }
  0x2c   :  { %p596_p5 = scmp.ne.s32.totalorder %s40_s12, %s595_s21  ;;  %p600_p6 = scmp.lt.s32.totalorder %s40_s12, %s40_s12 }
  0x2d   :  { %p601_p7 = scmp.lt.s32.totalorder %s599_s0, %s595_s21 }
  0x2f   :  { %p602_p8 = por %p601_p7, %p600_p6 }
  0x31   :  { %p603_p9 = pnand %p602_p8, %p596_p5 }
  0x33   :  { %606 = shalt.err (!%p603_p9)
}
  0x34   :  { %42 = dma.hbm_to_vmem [thread:$0]  %s926_s2, 16, %s40_s12, [#allocation6]  }
  0x35   :  { %629 = dma.done.wait [#allocation3], 8192  }
  0x36   :  { %630 = vsyncadd [#allocation3], 4294959104 }
  0x37   :  { %631 = dma.done.wait [#allocation6], 32  }
  0x38   :  { %632 = vsyncadd [#allocation6], 4294967264  ;;  %v52_v0 = vld [vmem:[#allocation2] sm:$0xff]  ;;  %v53_v4 = vld [vmem:[#allocation2 + $0x8] sm:$0xff]  ;;  %vm450_vm0 = vcmask 130048   ;;  %s640_s2 = smov [#allocation8]  }
  0x39   :  { %v707_v1 = vld [vmem:[#allocation5] ss:$0 sm:$0xff]  ;;  %v709_v2 = vld [vmem:[#allocation7] ss:$0 sm:$0xff]  ;;  %v54_v5 = vld [vmem:[#allocation2 + $0x10] sm:$0xff]  ;;  %s520_s23 = sshll.u32 %s640_s2, 4  ;;  %s521_s23 = int_to_ptr.vmem [resolvable:$true] %s520_s23 }
  0x3a   :  { %v123_v3 = vmul.f32 %v707_v1, %v52_v0  ;;  %v55_v6 = vld [vmem:[#allocation2 + $0x18] sm:$0xff]  ;;  %v124_v7 = vmul.f32 %v707_v1, %v53_v4  ;;  %v125_v8 = vmul.f32 %v707_v1, %v54_v5  ;;  %v56_v10 = vld [vmem:[#allocation2 + $0x20] sm:$0xff]  ;;  %v57_v11 = vld [vmem:[#allocation2 + $0x28] sm:$0xff]  ;;  %s607_s24 = scalar_lea.vmem %s521_s23, 8192  ;;  %p612_p11 = scmp.lt.s32.totalorder %s521_s23, %s521_s23 }
  0x3b   :  { %v126_v9 = vmul.f32 %v707_v1, %v55_v6  ;;  %v58_v12 = vld [vmem:[#allocation2 + $0x30] sm:$0xff]  ;;  %v127_v14 = vmul.f32 %v707_v1, %v56_v10  ;;  %v128_v15 = vmul.f32 %v707_v1, %v57_v11  ;;  %v59_v17 = vld [vmem:[#allocation2 + $0x38] sm:$0xff]  ;;  %v60_v25 = vld [vmem:[#allocation2 + $0x40] sm:$0xff]  ;;  %p608_p10 = scmp.ne.s32.totalorder %s521_s23, %s607_s24  ;;  %p613_p12 = scmp.lt.s32.totalorder %s607_s24, %s607_s24 }
  0x3c   :  { %v194_v13 = vadd.f32 %v709_v2, %v123_v3  ;;  %v129_v16 = vmul.f32 %v707_v1, %v58_v12  ;;  %v195_v18 = vadd.f32 %v709_v2, %v124_v7  ;;  %v196_v19 = vadd.f32 %v709_v2, %v125_v8  ;;  %v61_v30 = vld [vmem:[#allocation2 + $0x48] sm:$0xff]  ;;  %v62_v31 = vld [vmem:[#allocation2 + $0x50] sm:$0xff]  ;;  %v63_v43 = vld [vmem:[#allocation2 + $0x58] sm:$0xff] }
  0x3d   :  { %v197_v20 = vadd.f32 %v709_v2, %v126_v9  ;;  %v130_v21 = vmul.f32 %v707_v1, %v59_v17  ;;  %v198_v23 = vadd.f32 %v709_v2, %v127_v14  ;;  %v199_v24 = vadd.f32 %v709_v2, %v128_v15  ;;  %v64_v44 = vld [vmem:[#allocation2 + $0x60] sm:$0xff]  ;;  %v65_v45 = vld [vmem:[#allocation2 + $0x68] sm:$0xff]  ;;  %v66_v56 = vld [vmem:[#allocation2 + $0x70] sm:$0xff]  ;;  %p614_p13 = por %p613_p12, %p612_p11 }
  0x3e   :  { %vm258_vm1 = vcmp.gt.f32.partialorder %v194_v13, 0.0  ;;  %v322_v22 = vmul.f32 0.2, %v194_v13  ;;  %vm259_vm2 = vcmp.gt.f32.partialorder %v195_v18, 0.0  ;;  %v323_v26 = vmul.f32 0.2, %v195_v18 }
  0x3f   :  { %vm260_vm3 = vcmp.gt.f32.partialorder %v196_v19, 0.0  ;;  %v324_v27 = vmul.f32 0.2, %v196_v19  ;;  %vm261_vm4 = vcmp.gt.f32.partialorder %v197_v20, 0.0  ;;  %v325_v29 = vmul.f32 0.2, %v197_v20  ;;  %p615_p0 = pnand %p614_p13, %p608_p10 }
  0x40   :  { %v386_v28 = vsel %vm258_vm1, %v194_v13, %v322_v22  ;;  %vm262_vm5 = vcmp.gt.f32.partialorder %v198_v23, 0.0  ;;  %v387_v32 = vsel %vm259_vm2, %v195_v18, %v323_v26  ;;  %v326_v34 = vmul.f32 0.2, %v198_v23  ;;  %v67_v4 = vld [vmem:[#allocation2 + $0x78] sm:$0xff]  ;;  %v68_v5 = vld [vmem:[#allocation2 + $0x80] sm:$0xff]  ;;  %v69_v9 = vld [vmem:[#allocation2 + $0x88] sm:$0xff] }
  0x41   :  { %451 = vst.msk [vmem:[#allocation8] sm:$0xff] %vm450_vm0, %v386_v28  ;;  %v388_v33 = vsel %vm260_vm3, %v196_v19, %v324_v27  ;;  %vm263_vm6 = vcmp.gt.f32.partialorder %v199_v24, 0.0  ;;  %452 = vst.msk [vmem:[#allocation8 + $0x8] sm:$0xff] %vm450_vm0, %v387_v32  ;;  %v389_v35 = vsel %vm261_vm4, %v197_v20, %v325_v29  ;;  %v327_v36 = vmul.f32 0.2, %v199_v24  ;;  %v70_v10 = vld [vmem:[#allocation2 + $0x90] sm:$0xff] }
  0x42   :  { %453 = vst.msk [vmem:[#allocation8 + $0x10] sm:$0xff] %vm450_vm0, %v388_v33  ;;  %v200_v37 = vadd.f32 %v709_v2, %v129_v16  ;;  %v201_v38 = vadd.f32 %v709_v2, %v130_v21  ;;  %454 = vst.msk [vmem:[#allocation8 + $0x18] sm:$0xff] %vm450_vm0, %v389_v35  ;;  %v390_v39 = vsel %vm262_vm5, %v198_v23, %v326_v34  ;;  %v71_v17 = vld [vmem:[#allocation2 + $0x98] sm:$0xff]  ;;  %v72_v18 = vld [vmem:[#allocation2 + $0xa0] sm:$0xff] }
  0x43   :  { %v131_v40 = vmul.f32 %v707_v1, %v60_v25  ;;  %v132_v41 = vmul.f32 %v707_v1, %v61_v30  ;;  %v133_v42 = vmul.f32 %v707_v1, %v62_v31  ;;  %455 = vst.msk [vmem:[#allocation8 + $0x20] sm:$0xff] %vm450_vm0, %v390_v39  ;;  %v391_v46 = vsel %vm263_vm6, %v199_v24, %v327_v36  ;;  %v73_v32 = vld [vmem:[#allocation2 + $0xa8] sm:$0xff]  ;;  %v74_v33 = vld [vmem:[#allocation2 + $0xb0] sm:$0xff] }
  0x44   :  { %vm264_vm7 = vcmp.gt.f32.partialorder %v200_v37, 0.0  ;;  %v328_v47 = vmul.f32 0.2, %v200_v37  ;;  %vm265_vm8 = vcmp.gt.f32.partialorder %v201_v38, 0.0  ;;  %456 = vst.msk [vmem:[#allocation8 + $0x28] sm:$0xff] %vm450_vm0, %v391_v46  ;;  %v134_v53 = vmul.f32 %v707_v1, %v63_v43  ;;  %v77_v46 = vld [vmem:[#allocation2 + $0xc8] sm:$0xff] }
  0x45   :  { %v329_v48 = vmul.f32 0.2, %v201_v38  ;;  %v202_v49 = vadd.f32 %v709_v2, %v131_v40  ;;  %v203_v50 = vadd.f32 %v709_v2, %v132_v41  ;;  %v204_v51 = vadd.f32 %v709_v2, %v133_v42  ;;  %v75_v40 = vld [vmem:[#allocation2 + $0xb8] sm:$0xff] }
  0x46   :  { %v392_v52 = vsel %vm264_vm7, %v200_v37, %v328_v47  ;;  %v135_v54 = vmul.f32 %v707_v1, %v64_v44  ;;  %v136_v55 = vmul.f32 %v707_v1, %v65_v45  ;;  %v205_v61 = vadd.f32 %v709_v2, %v134_v53  ;;  %v76_v45 = vld [vmem:[#allocation2 + $0xc0] sm:$0xff]  ;;  %v78_v47 = vld [vmem:[#allocation2 + $0xd0] sm:$0xff] }
  0x47   :  { %457 = vst.msk [vmem:[#allocation8 + $0x30] sm:$0xff] %vm450_vm0, %v392_v52  ;;  %v393_v57 = vsel %vm265_vm8, %v201_v38, %v329_v48  ;;  %vm266_vm9 = vcmp.gt.f32.partialorder %v202_v49, 0.0  ;;  %v330_v58 = vmul.f32 0.2, %v202_v49  ;;  %vm267_vm10 = vcmp.gt.f32.partialorder %v203_v50, 0.0 }
  0x48   :  { %458 = vst.msk [vmem:[#allocation8 + $0x38] sm:$0xff] %vm450_vm0, %v393_v57  ;;  %v331_v59 = vmul.f32 0.2, %v203_v50  ;;  %vm268_vm11 = vcmp.gt.f32.partialorder %v204_v51, 0.0  ;;  %v332_v60 = vmul.f32 0.2, %v204_v51  ;;  %v206_v63 = vadd.f32 %v709_v2, %v135_v54 }
  0x49   :  { %v394_v62 = vsel %vm266_vm9, %v202_v49, %v330_v58  ;;  %v207_v0 = vadd.f32 %v709_v2, %v136_v55  ;;  %v137_v3 = vmul.f32 %v707_v1, %v66_v56  ;;  %vm269_vm12 = vcmp.gt.f32.partialorder %v205_v61, 0.0  ;;  %v79_v58 = vld [vmem:[#allocation2 + $0xd8] sm:$0xff] }
  0x4a   :  { %459 = vst.msk [vmem:[#allocation8 + $0x40] sm:$0xff] %vm450_vm0, %v394_v62  ;;  %v395_v6 = vsel %vm267_vm10, %v203_v50, %v331_v59  ;;  %v396_v7 = vsel %vm268_vm11, %v204_v51, %v332_v60  ;;  %v333_v8 = vmul.f32 0.2, %v205_v61  ;;  %vm270_vm13 = vcmp.gt.f32.partialorder %v206_v63, 0.0  ;;  %v80_v59 = vld [vmem:[#allocation2 + $0xe0] sm:$0xff] }
  0x4b   :  { %460 = vst.msk [vmem:[#allocation8 + $0x48] sm:$0xff] %vm450_vm0, %v395_v6  ;;  %461 = vst.msk [vmem:[#allocation8 + $0x50] sm:$0xff] %vm450_vm0, %v396_v7  ;;  %v334_v11 = vmul.f32 0.2, %v206_v63  ;;  %vm271_vm14 = vcmp.gt.f32.partialorder %v207_v0, 0.0  ;;  %v208_v14 = vadd.f32 %v709_v2, %v137_v3  ;;  %v138_v15 = vmul.f32 %v707_v1, %v67_v4 }
  0x4c   :  { %v335_v12 = vmul.f32 0.2, %v207_v0  ;;  %v397_v13 = vsel %vm269_vm12, %v205_v61, %v333_v8  ;;  %v139_v16 = vmul.f32 %v707_v1, %v68_v5  ;;  %v140_v21 = vmul.f32 %v707_v1, %v69_v9 }
  0x4d   :  { %462 = vst.msk [vmem:[#allocation8 + $0x58] sm:$0xff] %vm450_vm0, %v397_v13  ;;  %v398_v19 = vsel %vm270_vm13, %v206_v63, %v334_v11  ;;  %v141_v22 = vmul.f32 %v707_v1, %v70_v10  ;;  %vm272_vm15 = vcmp.gt.f32.partialorder %v208_v14, 0.0  ;;  %v336_v23 = vmul.f32 0.2, %v208_v14  ;;  %v81_v10 = vld [vmem:[#allocation2 + $0xe8] sm:$0xff]  ;;  %v82_v11 = vld [vmem:[#allocation2 + $0xf0] sm:$0xff] }
  0x4e   :  { %v399_v20 = vsel %vm271_vm14, %v207_v0, %v335_v12  ;;  %463 = vst.msk [vmem:[#allocation8 + $0x60] sm:$0xff] %vm450_vm0, %v398_v19  ;;  %v209_v24 = vadd.f32 %v709_v2, %v138_v15  ;;  %v210_v25 = vadd.f32 %v709_v2, %v139_v16  ;;  %v211_v26 = vadd.f32 %v709_v2, %v140_v21 }
  0x4f   :  { %464 = vst.msk [vmem:[#allocation8 + $0x68] sm:$0xff] %vm450_vm0, %v399_v20  ;;  %v212_v27 = vadd.f32 %v709_v2, %v141_v22  ;;  %v142_v28 = vmul.f32 %v707_v1, %v71_v17  ;;  %v143_v29 = vmul.f32 %v707_v1, %v72_v18  ;;  %v400_v30 = vsel %vm272_vm15, %v208_v14, %v336_v23  ;;  %v83_v18 = vld [vmem:[#allocation2 + $0xf8] sm:$0xff]  ;;  %v84_v23 = vld [vmem:[#allocation2 + $0x100] sm:$0xff] }
  0x50   :  { %vm273_vm1 = vcmp.gt.f32.partialorder %v209_v24, 0.0  ;;  %v337_v31 = vmul.f32 0.2, %v209_v24  ;;  %vm274_vm2 = vcmp.gt.f32.partialorder %v210_v25, 0.0  ;;  %465 = vst.msk [vmem:[#allocation8 + $0x70] sm:$0xff] %vm450_vm0, %v400_v30  ;;  %vm275_vm3 = vcmp.gt.f32.partialorder %v211_v26, 0.0 }
  0x51   :  { %v338_v34 = vmul.f32 0.2, %v210_v25  ;;  %v339_v35 = vmul.f32 0.2, %v211_v26  ;;  %vm276_vm4 = vcmp.gt.f32.partialorder %v212_v27, 0.0  ;;  %v213_v38 = vadd.f32 %v709_v2, %v142_v28 }
  0x52   :  { %v401_v36 = vsel %vm273_vm1, %v209_v24, %v337_v31  ;;  %v340_v37 = vmul.f32 0.2, %v212_v27  ;;  %v214_v39 = vadd.f32 %v709_v2, %v143_v29  ;;  %v144_v43 = vmul.f32 %v707_v1, %v73_v32  ;;  %v85_v24 = vld [vmem:[#allocation2 + $0x108] sm:$0xff] }
  0x53   :  { %466 = vst.msk [vmem:[#allocation8 + $0x78] sm:$0xff] %vm450_vm0, %v401_v36  ;;  %v402_v41 = vsel %vm274_vm2, %v210_v25, %v338_v34  ;;  %v403_v42 = vsel %vm275_vm3, %v211_v26, %v339_v35  ;;  %v145_v44 = vmul.f32 %v707_v1, %v74_v33  ;;  %vm277_vm5 = vcmp.gt.f32.partialorder %v213_v38, 0.0  ;;  %v86_v25 = vld [vmem:[#allocation2 + $0x110] sm:$0xff]  ;;  %v87_v36 = vld [vmem:[#allocation2 + $0x118] sm:$0xff] }
  0x54   :  { %467 = vst.msk [vmem:[#allocation8 + $0x80] sm:$0xff] %vm450_vm0, %v402_v41  ;;  %468 = vst.msk [vmem:[#allocation8 + $0x88] sm:$0xff] %vm450_vm0, %v403_v42  ;;  %v404_v48 = vsel %vm276_vm4, %v212_v27, %v340_v37  ;;  %v341_v49 = vmul.f32 0.2, %v213_v38  ;;  %vm278_vm6 = vcmp.gt.f32.partialorder %v214_v39, 0.0  ;;  %v215_v51 = vadd.f32 %v709_v2, %v144_v43  ;;  %v88_v37 = vld [vmem:[#allocation2 + $0x120] sm:$0xff] }
  0x55   :  { %469 = vst.msk [vmem:[#allocation8 + $0x90] sm:$0xff] %vm450_vm0, %v404_v48  ;;  %v342_v50 = vmul.f32 0.2, %v214_v39  ;;  %v216_v52 = vadd.f32 %v709_v2, %v145_v44  ;;  %v146_v53 = vmul.f32 %v707_v1, %v75_v40  ;;  %v147_v55 = vmul.f32 %v707_v1, %v76_v45 }
  0x56   :  { %v405_v54 = vsel %vm277_vm5, %v213_v38, %v341_v49  ;;  %v148_v56 = vmul.f32 %v707_v1, %v77_v46  ;;  %v149_v57 = vmul.f32 %v707_v1, %v78_v47  ;;  %vm279_vm7 = vcmp.gt.f32.partialorder %v215_v51, 0.0 }
  0x57   :  { %470 = vst.msk [vmem:[#allocation8 + $0x98] sm:$0xff] %vm450_vm0, %v405_v54  ;;  %v406_v60 = vsel %vm278_vm6, %v214_v39, %v342_v50  ;;  %v343_v61 = vmul.f32 0.2, %v215_v51  ;;  %vm280_vm8 = vcmp.gt.f32.partialorder %v216_v52, 0.0  ;;  %v344_v62 = vmul.f32 0.2, %v216_v52 }
  0x58   :  { %471 = vst.msk [vmem:[#allocation8 + $0xa0] sm:$0xff] %vm450_vm0, %v406_v60  ;;  %v217_v63 = vadd.f32 %v709_v2, %v146_v53  ;;  %v218_v0 = vadd.f32 %v709_v2, %v147_v55  ;;  %v219_v3 = vadd.f32 %v709_v2, %v148_v56  ;;  %v220_v5 = vadd.f32 %v709_v2, %v149_v57  ;;  %v89_v50 = vld [vmem:[#allocation2 + $0x128] sm:$0xff] }
  0x59   :  { %v407_v4 = vsel %vm279_vm7, %v215_v51, %v343_v61  ;;  %v150_v6 = vmul.f32 %v707_v1, %v79_v58  ;;  %v151_v7 = vmul.f32 %v707_v1, %v80_v59  ;;  %v408_v8 = vsel %vm280_vm8, %v216_v52, %v344_v62  ;;  %v90_v51 = vld [vmem:[#allocation2 + $0x130] sm:$0xff]  ;;  %v91_v58 = vld [vmem:[#allocation2 + $0x138] sm:$0xff] }
  0x5a   :  { %472 = vst.msk [vmem:[#allocation8 + $0xa8] sm:$0xff] %vm450_vm0, %v407_v4  ;;  %vm281_vm9 = vcmp.gt.f32.partialorder %v217_v63, 0.0  ;;  %v345_v9 = vmul.f32 0.2, %v217_v63  ;;  %vm282_vm10 = vcmp.gt.f32.partialorder %v218_v0, 0.0  ;;  %473 = vst.msk [vmem:[#allocation8 + $0xb0] sm:$0xff] %vm450_vm0, %v408_v8  ;;  %v152_v21 = vmul.f32 %v707_v1, %v81_v10 }
  0x5b   :  { %v346_v12 = vmul.f32 0.2, %v218_v0  ;;  %vm283_vm11 = vcmp.gt.f32.partialorder %v219_v3, 0.0  ;;  %v347_v13 = vmul.f32 0.2, %v219_v3  ;;  %vm284_vm12 = vcmp.gt.f32.partialorder %v220_v5, 0.0 }
  0x5c   :  { %v409_v14 = vsel %vm281_vm9, %v217_v63, %v345_v9  ;;  %v348_v15 = vmul.f32 0.2, %v220_v5  ;;  %v221_v16 = vadd.f32 %v709_v2, %v150_v6  ;;  %v222_v17 = vadd.f32 %v709_v2, %v151_v7  ;;  %v92_v63 = vld [vmem:[#allocation2 + $0x140] sm:$0xff] }
  0x5d   :  { %474 = vst.msk [vmem:[#allocation8 + $0xb8] sm:$0xff] %vm450_vm0, %v409_v14  ;;  %v410_v19 = vsel %vm282_vm10, %v218_v0, %v346_v12  ;;  %v411_v20 = vsel %vm283_vm11, %v219_v3, %v347_v13  ;;  %v153_v22 = vmul.f32 %v707_v1, %v82_v11  ;;  %v223_v29 = vadd.f32 %v709_v2, %v152_v21  ;;  %v93_v0 = vld [vmem:[#allocation2 + $0x148] sm:$0xff]  ;;  %v94_v3 = vld [vmem:[#allocation2 + $0x150] sm:$0xff]  ;;  %v95_v14 = vld [vmem:[#allocation2 + $0x158] sm:$0xff] }
  0x5e   :  { %475 = vst.msk [vmem:[#allocation8 + $0xc0] sm:$0xff] %vm450_vm0, %v410_v19  ;;  %476 = vst.msk [vmem:[#allocation8 + $0xc8] sm:$0xff] %vm450_vm0, %v411_v20  ;;  %v412_v26 = vsel %vm284_vm12, %v220_v5, %v348_v15  ;;  %vm285_vm13 = vcmp.gt.f32.partialorder %v221_v16, 0.0  ;;  %v349_v27 = vmul.f32 0.2, %v221_v16  ;;  %vm286_vm14 = vcmp.gt.f32.partialorder %v222_v17, 0.0 }
  0x5f   :  { %477 = vst.msk [vmem:[#allocation8 + $0xd0] sm:$0xff] %vm450_vm0, %v412_v26  ;;  %v350_v28 = vmul.f32 0.2, %v222_v17  ;;  %v224_v30 = vadd.f32 %v709_v2, %v153_v22  ;;  %v154_v31 = vmul.f32 %v707_v1, %v83_v18  ;;  %v155_v33 = vmul.f32 %v707_v1, %v84_v23  ;;  %v96_v15 = vld [vmem:[#allocation2 + $0x160] sm:$0xff] }
  0x60   :  { %v413_v32 = vsel %vm285_vm13, %v221_v16, %v349_v27  ;;  %v156_v34 = vmul.f32 %v707_v1, %v85_v24  ;;  %v157_v35 = vmul.f32 %v707_v1, %v86_v25  ;;  %vm287_vm15 = vcmp.gt.f32.partialorder %v223_v29, 0.0 }
  0x61   :  { %478 = vst.msk [vmem:[#allocation8 + $0xd8] sm:$0xff] %vm450_vm0, %v413_v32  ;;  %v414_v38 = vsel %vm286_vm14, %v222_v17, %v350_v28  ;;  %v351_v39 = vmul.f32 0.2, %v223_v29  ;;  %vm288_vm1 = vcmp.gt.f32.partialorder %v224_v30, 0.0  ;;  %v352_v40 = vmul.f32 0.2, %v224_v30 }
  0x62   :  { %479 = vst.msk [vmem:[#allocation8 + $0xe0] sm:$0xff] %vm450_vm0, %v414_v38  ;;  %v225_v41 = vadd.f32 %v709_v2, %v154_v31  ;;  %v226_v42 = vadd.f32 %v709_v2, %v155_v33  ;;  %v227_v43 = vadd.f32 %v709_v2, %v156_v34  ;;  %v228_v45 = vadd.f32 %v709_v2, %v157_v35  ;;  %v97_v28 = vld [vmem:[#allocation2 + $0x168] sm:$0xff] }
  0x63   :  { %v415_v44 = vsel %vm287_vm15, %v223_v29, %v351_v39  ;;  %v158_v46 = vmul.f32 %v707_v1, %v87_v36  ;;  %v159_v47 = vmul.f32 %v707_v1, %v88_v37  ;;  %v416_v48 = vsel %vm288_vm1, %v224_v30, %v352_v40  ;;  %v98_v29 = vld [vmem:[#allocation2 + $0x170] sm:$0xff]  ;;  %v99_v36 = vld [vmem:[#allocation2 + $0x178] sm:$0xff] }
  0x64   :  { %480 = vst.msk [vmem:[#allocation8 + $0xe8] sm:$0xff] %vm450_vm0, %v415_v44  ;;  %vm289_vm2 = vcmp.gt.f32.partialorder %v225_v41, 0.0  ;;  %v353_v49 = vmul.f32 0.2, %v225_v41  ;;  %vm290_vm3 = vcmp.gt.f32.partialorder %v226_v42, 0.0  ;;  %481 = vst.msk [vmem:[#allocation8 + $0xf0] sm:$0xff] %vm450_vm0, %v416_v48  ;;  %v160_v61 = vmul.f32 %v707_v1, %v89_v50 }
  0x65   :  { %v354_v52 = vmul.f32 0.2, %v226_v42  ;;  %vm291_vm4 = vcmp.gt.f32.partialorder %v227_v43, 0.0  ;;  %v355_v53 = vmul.f32 0.2, %v227_v43  ;;  %vm292_vm5 = vcmp.gt.f32.partialorder %v228_v45, 0.0 }
  0x66   :  { %v417_v54 = vsel %vm289_vm2, %v225_v41, %v353_v49  ;;  %v356_v55 = vmul.f32 0.2, %v228_v45  ;;  %v229_v56 = vadd.f32 %v709_v2, %v158_v46  ;;  %v230_v57 = vadd.f32 %v709_v2, %v159_v47  ;;  %v100_v41 = vld [vmem:[#allocation2 + $0x180] sm:$0xff] }
  0x67   :  { %482 = vst.msk [vmem:[#allocation8 + $0xf8] sm:$0xff] %vm450_vm0, %v417_v54  ;;  %v418_v59 = vsel %vm290_vm3, %v226_v42, %v354_v52  ;;  %v419_v60 = vsel %vm291_vm4, %v227_v43, %v355_v53  ;;  %v161_v62 = vmul.f32 %v707_v1, %v90_v51  ;;  %v231_v7 = vadd.f32 %v709_v2, %v160_v61  ;;  %v101_v42 = vld [vmem:[#allocation2 + $0x188] sm:$0xff]  ;;  %v102_v43 = vld [vmem:[#allocation2 + $0x190] sm:$0xff]  ;;  %v103_v54 = vld [vmem:[#allocation2 + $0x198] sm:$0xff] }
  0x68   :  { %483 = vst.msk [vmem:[#allocation8 + $0x100] sm:$0xff] %vm450_vm0, %v418_v59  ;;  %484 = vst.msk [vmem:[#allocation8 + $0x108] sm:$0xff] %vm450_vm0, %v419_v60  ;;  %v420_v4 = vsel %vm292_vm5, %v228_v45, %v356_v55  ;;  %vm293_vm6 = vcmp.gt.f32.partialorder %v229_v56, 0.0  ;;  %v357_v5 = vmul.f32 0.2, %v229_v56  ;;  %vm294_vm7 = vcmp.gt.f32.partialorder %v230_v57, 0.0 }
  0x69   :  { %485 = vst.msk [vmem:[#allocation8 + $0x110] sm:$0xff] %vm450_vm0, %v420_v4  ;;  %v358_v6 = vmul.f32 0.2, %v230_v57  ;;  %v232_v8 = vadd.f32 %v709_v2, %v161_v62  ;;  %v162_v9 = vmul.f32 %v707_v1, %v91_v58  ;;  %v163_v11 = vmul.f32 %v707_v1, %v92_v63  ;;  %v104_v55 = vld [vmem:[#allocation2 + $0x1a0] sm:$0xff] }
  0x6a   :  { %v421_v10 = vsel %vm293_vm6, %v229_v56, %v357_v5  ;;  %v164_v12 = vmul.f32 %v707_v1, %v93_v0  ;;  %v165_v13 = vmul.f32 %v707_v1, %v94_v3  ;;  %vm295_vm8 = vcmp.gt.f32.partialorder %v231_v7, 0.0 }
  0x6b   :  { %486 = vst.msk [vmem:[#allocation8 + $0x118] sm:$0xff] %vm450_vm0, %v421_v10  ;;  %v422_v16 = vsel %vm294_vm7, %v230_v57, %v358_v6  ;;  %v359_v17 = vmul.f32 0.2, %v231_v7  ;;  %vm296_vm9 = vcmp.gt.f32.partialorder %v232_v8, 0.0  ;;  %v360_v18 = vmul.f32 0.2, %v232_v8 }
  0x6c   :  { %487 = vst.msk [vmem:[#allocation8 + $0x120] sm:$0xff] %vm450_vm0, %v422_v16  ;;  %v233_v19 = vadd.f32 %v709_v2, %v162_v9  ;;  %v234_v20 = vadd.f32 %v709_v2, %v163_v11  ;;  %v235_v21 = vadd.f32 %v709_v2, %v164_v12  ;;  %v236_v23 = vadd.f32 %v709_v2, %v165_v13  ;;  %v105_v6 = vld [vmem:[#allocation2 + $0x1a8] sm:$0xff] }
  0x6d   :  { %v423_v22 = vsel %vm295_vm8, %v231_v7, %v359_v17  ;;  %v166_v24 = vmul.f32 %v707_v1, %v95_v14  ;;  %v167_v25 = vmul.f32 %v707_v1, %v96_v15  ;;  %v424_v26 = vsel %vm296_vm9, %v232_v8, %v360_v18  ;;  %v106_v7 = vld [vmem:[#allocation2 + $0x1b0] sm:$0xff]  ;;  %v107_v14 = vld [vmem:[#allocation2 + $0x1b8] sm:$0xff] }
  0x6e   :  { %488 = vst.msk [vmem:[#allocation8 + $0x128] sm:$0xff] %vm450_vm0, %v423_v22  ;;  %vm297_vm10 = vcmp.gt.f32.partialorder %v233_v19, 0.0  ;;  %v361_v27 = vmul.f32 0.2, %v233_v19  ;;  %vm298_vm11 = vcmp.gt.f32.partialorder %v234_v20, 0.0  ;;  %489 = vst.msk [vmem:[#allocation8 + $0x130] sm:$0xff] %vm450_vm0, %v424_v26  ;;  %v168_v39 = vmul.f32 %v707_v1, %v97_v28 }
  0x6f   :  { %v362_v30 = vmul.f32 0.2, %v234_v20  ;;  %vm299_vm12 = vcmp.gt.f32.partialorder %v235_v21, 0.0  ;;  %v363_v31 = vmul.f32 0.2, %v235_v21  ;;  %vm300_vm13 = vcmp.gt.f32.partialorder %v236_v23, 0.0 }
  0x70   :  { %v425_v32 = vsel %vm297_vm10, %v233_v19, %v361_v27  ;;  %v364_v33 = vmul.f32 0.2, %v236_v23  ;;  %v237_v34 = vadd.f32 %v709_v2, %v166_v24  ;;  %v238_v35 = vadd.f32 %v709_v2, %v167_v25  ;;  %v108_v19 = vld [vmem:[#allocation2 + $0x1c0] sm:$0xff] }
  0x71   :  { %490 = vst.msk [vmem:[#allocation8 + $0x138] sm:$0xff] %vm450_vm0, %v425_v32  ;;  %v426_v37 = vsel %vm298_vm11, %v234_v20, %v362_v30  ;;  %v427_v38 = vsel %vm299_vm12, %v235_v21, %v363_v31  ;;  %v169_v40 = vmul.f32 %v707_v1, %v98_v29  ;;  %v239_v47 = vadd.f32 %v709_v2, %v168_v39  ;;  %v109_v20 = vld [vmem:[#allocation2 + $0x1c8] sm:$0xff]  ;;  %v110_v21 = vld [vmem:[#allocation2 + $0x1d0] sm:$0xff]  ;;  %v111_v32 = vld [vmem:[#allocation2 + $0x1d8] sm:$0xff] }
  0x72   :  { %491 = vst.msk [vmem:[#allocation8 + $0x140] sm:$0xff] %vm450_vm0, %v426_v37  ;;  %492 = vst.msk [vmem:[#allocation8 + $0x148] sm:$0xff] %vm450_vm0, %v427_v38  ;;  %v428_v44 = vsel %vm300_vm13, %v236_v23, %v364_v33  ;;  %vm301_vm14 = vcmp.gt.f32.partialorder %v237_v34, 0.0  ;;  %v365_v45 = vmul.f32 0.2, %v237_v34  ;;  %vm302_vm15 = vcmp.gt.f32.partialorder %v238_v35, 0.0 }
  0x73   :  { %493 = vst.msk [vmem:[#allocation8 + $0x150] sm:$0xff] %vm450_vm0, %v428_v44  ;;  %v366_v46 = vmul.f32 0.2, %v238_v35  ;;  %v240_v48 = vadd.f32 %v709_v2, %v169_v40  ;;  %v170_v49 = vmul.f32 %v707_v1, %v99_v36  ;;  %v171_v51 = vmul.f32 %v707_v1, %v100_v41  ;;  %v112_v33 = vld [vmem:[#allocation2 + $0x1e0] sm:$0xff] }
  0x74   :  { %v429_v50 = vsel %vm301_vm14, %v237_v34, %v365_v45  ;;  %v172_v52 = vmul.f32 %v707_v1, %v101_v42  ;;  %v173_v53 = vmul.f32 %v707_v1, %v102_v43  ;;  %vm303_vm1 = vcmp.gt.f32.partialorder %v239_v47, 0.0 }
  0x75   :  { %494 = vst.msk [vmem:[#allocation8 + $0x158] sm:$0xff] %vm450_vm0, %v429_v50  ;;  %v430_v56 = vsel %vm302_vm15, %v238_v35, %v366_v46  ;;  %v367_v57 = vmul.f32 0.2, %v239_v47  ;;  %vm304_vm2 = vcmp.gt.f32.partialorder %v240_v48, 0.0  ;;  %v368_v58 = vmul.f32 0.2, %v240_v48 }
  0x76   :  { %495 = vst.msk [vmem:[#allocation8 + $0x160] sm:$0xff] %vm450_vm0, %v430_v56  ;;  %v241_v59 = vadd.f32 %v709_v2, %v170_v49  ;;  %v242_v60 = vadd.f32 %v709_v2, %v171_v51  ;;  %v243_v61 = vadd.f32 %v709_v2, %v172_v52  ;;  %v244_v63 = vadd.f32 %v709_v2, %v173_v53  ;;  %v113_v46 = vld [vmem:[#allocation2 + $0x1e8] sm:$0xff] }
  0x77   :  { %v431_v62 = vsel %vm303_vm1, %v239_v47, %v367_v57  ;;  %v174_v0 = vmul.f32 %v707_v1, %v103_v54  ;;  %v175_v3 = vmul.f32 %v707_v1, %v104_v55  ;;  %v432_v4 = vsel %vm304_vm2, %v240_v48, %v368_v58  ;;  %v114_v47 = vld [vmem:[#allocation2 + $0x1f0] sm:$0xff]  ;;  %v115_v54 = vld [vmem:[#allocation2 + $0x1f8] sm:$0xff] }
  0x78   :  { %496 = vst.msk [vmem:[#allocation8 + $0x168] sm:$0xff] %vm450_vm0, %v431_v62  ;;  %vm305_vm3 = vcmp.gt.f32.partialorder %v241_v59, 0.0  ;;  %v369_v5 = vmul.f32 0.2, %v241_v59  ;;  %vm306_vm4 = vcmp.gt.f32.partialorder %v242_v60, 0.0  ;;  %497 = vst.msk [vmem:[#allocation8 + $0x170] sm:$0xff] %vm450_vm0, %v432_v4  ;;  %v176_v17 = vmul.f32 %v707_v1, %v105_v6 }
  0x79   :  { %v370_v8 = vmul.f32 0.2, %v242_v60  ;;  %vm307_vm5 = vcmp.gt.f32.partialorder %v243_v61, 0.0  ;;  %v371_v9 = vmul.f32 0.2, %v243_v61  ;;  %vm308_vm6 = vcmp.gt.f32.partialorder %v244_v63, 0.0 }
  0x7a   :  { %v433_v10 = vsel %vm305_vm3, %v241_v59, %v369_v5  ;;  %v372_v11 = vmul.f32 0.2, %v244_v63  ;;  %v245_v12 = vadd.f32 %v709_v2, %v174_v0  ;;  %v246_v13 = vadd.f32 %v709_v2, %v175_v3 }
  0x7b   :  { %498 = vst.msk [vmem:[#allocation8 + $0x178] sm:$0xff] %vm450_vm0, %v433_v10  ;;  %v434_v15 = vsel %vm306_vm4, %v242_v60, %v370_v8  ;;  %v435_v16 = vsel %vm307_vm5, %v243_v61, %v371_v9  ;;  %v177_v18 = vmul.f32 %v707_v1, %v106_v7  ;;  %v247_v25 = vadd.f32 %v709_v2, %v176_v17 }
  0x7c   :  { %499 = vst.msk [vmem:[#allocation8 + $0x180] sm:$0xff] %vm450_vm0, %v434_v15  ;;  %500 = vst.msk [vmem:[#allocation8 + $0x188] sm:$0xff] %vm450_vm0, %v435_v16  ;;  %v436_v22 = vsel %vm308_vm6, %v244_v63, %v372_v11  ;;  %vm309_vm7 = vcmp.gt.f32.partialorder %v245_v12, 0.0  ;;  %v373_v23 = vmul.f32 0.2, %v245_v12  ;;  %vm310_vm8 = vcmp.gt.f32.partialorder %v246_v13, 0.0 }
  0x7d   :  { %501 = vst.msk [vmem:[#allocation8 + $0x190] sm:$0xff] %vm450_vm0, %v436_v22  ;;  %v374_v24 = vmul.f32 0.2, %v246_v13  ;;  %v248_v26 = vadd.f32 %v709_v2, %v177_v18  ;;  %v178_v27 = vmul.f32 %v707_v1, %v107_v14  ;;  %v179_v29 = vmul.f32 %v707_v1, %v108_v19 }
  0x7e   :  { %v437_v28 = vsel %vm309_vm7, %v245_v12, %v373_v23  ;;  %v180_v30 = vmul.f32 %v707_v1, %v109_v20  ;;  %v181_v31 = vmul.f32 %v707_v1, %v110_v21  ;;  %vm311_vm9 = vcmp.gt.f32.partialorder %v247_v25, 0.0 }
  0x7f   :  { %502 = vst.msk [vmem:[#allocation8 + $0x198] sm:$0xff] %vm450_vm0, %v437_v28  ;;  %v438_v34 = vsel %vm310_vm8, %v246_v13, %v374_v24  ;;  %v375_v35 = vmul.f32 0.2, %v247_v25  ;;  %vm312_vm10 = vcmp.gt.f32.partialorder %v248_v26, 0.0  ;;  %v376_v36 = vmul.f32 0.2, %v248_v26 }
  0x80   :  { %503 = vst.msk [vmem:[#allocation8 + $0x1a0] sm:$0xff] %vm450_vm0, %v438_v34  ;;  %v249_v37 = vadd.f32 %v709_v2, %v178_v27  ;;  %v250_v38 = vadd.f32 %v709_v2, %v179_v29  ;;  %v251_v39 = vadd.f32 %v709_v2, %v180_v30  ;;  %v252_v41 = vadd.f32 %v709_v2, %v181_v31 }
  0x81   :  { %v439_v40 = vsel %vm311_vm9, %v247_v25, %v375_v35  ;;  %v182_v42 = vmul.f32 %v707_v1, %v111_v32  ;;  %v183_v43 = vmul.f32 %v707_v1, %v112_v33  ;;  %v440_v44 = vsel %vm312_vm10, %v248_v26, %v376_v36 }
  0x82   :  { %504 = vst.msk [vmem:[#allocation8 + $0x1a8] sm:$0xff] %vm450_vm0, %v439_v40  ;;  %vm313_vm11 = vcmp.gt.f32.partialorder %v249_v37, 0.0  ;;  %v377_v45 = vmul.f32 0.2, %v249_v37  ;;  %vm314_vm12 = vcmp.gt.f32.partialorder %v250_v38, 0.0  ;;  %505 = vst.msk [vmem:[#allocation8 + $0x1b0] sm:$0xff] %vm450_vm0, %v440_v44  ;;  %v184_v57 = vmul.f32 %v707_v1, %v113_v46 }
  0x83   :  { %v378_v48 = vmul.f32 0.2, %v250_v38  ;;  %vm315_vm13 = vcmp.gt.f32.partialorder %v251_v39, 0.0  ;;  %v379_v49 = vmul.f32 0.2, %v251_v39  ;;  %vm316_vm14 = vcmp.gt.f32.partialorder %v252_v41, 0.0 }
  0x84   :  { %v441_v50 = vsel %vm313_vm11, %v249_v37, %v377_v45  ;;  %v380_v51 = vmul.f32 0.2, %v252_v41  ;;  %v253_v52 = vadd.f32 %v709_v2, %v182_v42  ;;  %v254_v53 = vadd.f32 %v709_v2, %v183_v43 }
  0x85   :  { %506 = vst.msk [vmem:[#allocation8 + $0x1b8] sm:$0xff] %vm450_vm0, %v441_v50  ;;  %v442_v55 = vsel %vm314_vm12, %v250_v38, %v378_v48  ;;  %v443_v56 = vsel %vm315_vm13, %v251_v39, %v379_v49  ;;  %v185_v58 = vmul.f32 %v707_v1, %v114_v47  ;;  %v255_v62 = vadd.f32 %v709_v2, %v184_v57 }
  0x86   :  { %507 = vst.msk [vmem:[#allocation8 + $0x1c0] sm:$0xff] %vm450_vm0, %v442_v55  ;;  %508 = vst.msk [vmem:[#allocation8 + $0x1c8] sm:$0xff] %vm450_vm0, %v443_v56  ;;  %v444_v59 = vsel %vm316_vm14, %v252_v41, %v380_v51  ;;  %vm317_vm15 = vcmp.gt.f32.partialorder %v253_v52, 0.0  ;;  %v381_v60 = vmul.f32 0.2, %v253_v52  ;;  %vm318_vm1 = vcmp.gt.f32.partialorder %v254_v53, 0.0 }
  0x87   :  { %509 = vst.msk [vmem:[#allocation8 + $0x1d0] sm:$0xff] %vm450_vm0, %v444_v59  ;;  %v382_v61 = vmul.f32 0.2, %v254_v53  ;;  %v256_v63 = vadd.f32 %v709_v2, %v185_v58  ;;  %v186_v0 = vmul.f32 %v707_v1, %v115_v54  ;;  %vm319_vm2 = vcmp.gt.f32.partialorder %v255_v62, 0.0 }
  0x88   :  { %v445_v3 = vsel %vm317_vm15, %v253_v52, %v381_v60  ;;  %v383_v5 = vmul.f32 0.2, %v255_v62 }
  0x89   :  { %510 = vst.msk [vmem:[#allocation8 + $0x1d8] sm:$0xff] %vm450_vm0, %v445_v3  ;;  %v446_v4 = vsel %vm318_vm1, %v254_v53, %v382_v61  ;;  %vm320_vm3 = vcmp.gt.f32.partialorder %v256_v63, 0.0  ;;  %v384_v6 = vmul.f32 0.2, %v256_v63  ;;  %v257_v7 = vadd.f32 %v709_v2, %v186_v0 }
  0x8a   :  { %511 = vst.msk [vmem:[#allocation8 + $0x1e0] sm:$0xff] %vm450_vm0, %v446_v4  ;;  %v447_v8 = vsel %vm319_vm2, %v255_v62, %v383_v5 }
  0x8b   :  { %512 = vst.msk [vmem:[#allocation8 + $0x1e8] sm:$0xff] %vm450_vm0, %v447_v8  ;;  %v448_v9 = vsel %vm320_vm3, %v256_v63, %v384_v6  ;;  %vm321_vm4 = vcmp.gt.f32.partialorder %v257_v7, 0.0  ;;  %v385_v1 = vmul.f32 0.2, %v257_v7 }
  0x8c   :  { %513 = vst.msk [vmem:[#allocation8 + $0x1f0] sm:$0xff] %vm450_vm0, %v448_v9 }
  0x8d   :  { %v449_v10 = vsel %vm321_vm4, %v257_v7, %v385_v1 }
  0x8e   :  { %514 = vst.msk [vmem:[#allocation8 + $0x1f8] sm:$0xff] %vm450_vm0, %v449_v10 }
  0x8f   :  { %618 = shalt.err (!%p615_p0)
}
  0x90   :  { %s619_s27 = scalar_lea.hbm %s927_s3, 8192 }
  0x91   :  { %p620_p1 = scmp.ne.s32.totalorder %s927_s3, %s619_s27  ;;  %p623_p2 = scmp.lt.u32.totalorder %s619_s27, %s927_s3 }
  0x93   :  { %p625_p3 = pnand %p623_p2, %p620_p1 }
  0x95   :  { %628 = shalt.err (!%p625_p3)
}
  0x96   :  { %526 = dma.vmem_to_hbm [thread:$0]  %s521_s23, 8192, %s927_s3, [#allocation4], %s637_s1, %s637_s1, %s638_s8  }
  0x97   :  { %633 = dma.done.wait [#allocation4], 8192  }
  0x98   :  { %634 = vsyncadd [#allocation4], 4294959104 }
  0x99   :  { %530 = vsyncpa [#allocation3], 1 }
  0x9a   :  { %531 = vsyncpa [#allocation6], 1 }
  0x9b   :  { %532 = vsyncpa [#allocation4], 1 }

// kernel: discriminator_dc_forward.11
= control target key start
LH: loop header
LB: loop body
LE: loop exit
PB: predicated region body
PF: predicated region fallthrough
CT: control target
= control target key end

     0   :  { %10 = vsyncpa [#allocation3], 0  ;;  %s1015_s0 = inlined_call_operand.hbm [shape: bf16[128,256], index: 0, kind: input, shape index: {}]   ;;  %s1016_s1 = inlined_call_operand.hbm [shape: bf16[256,32], index: 1, kind: input, shape index: {}]   ;;  %s1017_s2 = inlined_call_operand.hbm [shape: f32[128,32], index: 2, kind: output, shape index: {0}]   ;;  %s1018_s3 = inlined_call_operand.hbm [shape: f32[1,32], index: 3, kind: output, shape index: {1}]   ;;  %s1019_s4 = inlined_call_operand.hbm [shape: f32[1,32], index: 4, kind: output, shape index: {2}]  }
   0x1   :  { %11 = vsyncpa [#allocation6], 0 }
   0x2   :  { %12 = vsyncpa [#allocation4], 0 }
   0x3   :  { %13 = vsyncpa [#allocation9], 0  ;;  %s812_s15 = smov [#allocation2]   ;;  %s694_s19 = scalar_lea.hbm %s1015_s0, 2048 }
   0x4   :  { %s19_s16 = sshll.u32 %s812_s15, 4  ;;  %p695_p0 = scmp.ne.s32.totalorder %s1015_s0, %s694_s19  ;;  %s20_s16 = int_to_ptr.vmem [resolvable:$true] %s19_s16 }
   0x5   :  { %p698_p1 = scmp.lt.u32.totalorder %s694_s19, %s1015_s0 }
   0x7   :  { %p700_p2 = pnand %p698_p1, %p695_p0 }
   0x9   :  { %703 = shalt.err (!%p700_p2)
}
   0xa   :  { %s704_s24 = scalar_lea.vmem %s20_s16, 2048  ;;  %p709_p4 = scmp.lt.s32.totalorder %s20_s16, %s20_s16 }
   0xb   :  { %p705_p3 = scmp.ne.s32.totalorder %s20_s16, %s704_s24  ;;  %p710_p5 = scmp.lt.s32.totalorder %s704_s24, %s704_s24 }
   0xd   :  { %p711_p6 = por %p710_p5, %p709_p4 }
   0xf   :  { %p712_p7 = pnand %p711_p6, %p705_p3 }
  0x11   :  { %715 = shalt.err (!%p712_p7)
}
  0x12   :  { %s813_s25 = smov 128   ;;  %s814_s26 = smov 8  }
  0x13   :  { %25 = dma.hbm_to_vmem [thread:$0]  %s1015_s0, 2048, %s20_s16, [#allocation3], %s813_s25, %s813_s25, %s814_s26  }
  0x14   :  { %s815_s29 = smov [#allocation5]   ;;  %s716_s7 = scalar_lea.hbm %s1016_s1, 2048 }
  0x15   :  { %s31_s30 = sshll.u32 %s815_s29, 4  ;;  %p717_p8 = scmp.ne.s32.totalorder %s1016_s1, %s716_s7  ;;  %s32_s30 = int_to_ptr.vmem [resolvable:$true] %s31_s30 }
  0x16   :  { %p720_p9 = scmp.lt.u32.totalorder %s716_s7, %s1016_s1 }
  0x18   :  { %p722_p10 = pnand %p720_p9, %p717_p8 }
  0x1a   :  { %725 = shalt.err (!%p722_p10)
}
  0x1b   :  { %s726_s12 = scalar_lea.vmem %s32_s30, 2048  ;;  %p731_p12 = scmp.lt.s32.totalorder %s32_s30, %s32_s30 }
  0x1c   :  { %p727_p11 = scmp.ne.s32.totalorder %s32_s30, %s726_s12  ;;  %p732_p13 = scmp.lt.s32.totalorder %s726_s12, %s726_s12 }
  0x1e   :  { %p733_p0 = por %p732_p13, %p731_p12 }
  0x20   :  { %p734_p1 = pnand %p733_p0, %p727_p11 }
  0x22   :  { %737 = shalt.err (!%p734_p1)
}
  0x23   :  { %s816_s0 = smov 64   ;;  %s817_s13 = smov 4  }
  0x24   :  { %37 = dma.hbm_to_vmem [thread:$0]  %s1016_s1, 2048, %s32_s30, [#allocation6], %s816_s0, %s816_s0, %s817_s13  }
  0x25   :  { %804 = dma.done.wait [#allocation3], 2048  }
  0x26   :  { %805 = vsyncadd [#allocation3], 4294965248 }
  0x27   :  { %806 = dma.done.wait [#allocation6], 2048  }
  0x28   :  { %807 = vsyncadd [#allocation6], 4294965248  ;;  %v654_v0 = vld [vmem:[#allocation5 + $0x40] sm:$0xff]   ;;  %v656_v2 = vld [vmem:[#allocation5 + $0x48] sm:$0xff]   ;;  %vm49_vm0 = vcmask 253952   ;;  %v818_v32 = vmov 0.0  }
  0x29   :  { %v655_v1 = vld [vmem:[#allocation5] sm:$0xff]   ;;  %564 = vmatprep.subr.bf16.mxu0 %v654_v0  ;;  %628 = vmatprep.subr.bf16.mxu1 %v654_v0  ;;  %v657_v3 = vld [vmem:[#allocation5 + $0x8] sm:$0xff]   ;;  %v658_v4 = vld [vmem:[#allocation5 + $0x50] sm:$0xff]   ;;  %50 = vst.msk [vmem:[#allocation8] sm:$0x1] %vm49_vm0, %v818_v32  ;;  %vm373_vm1 = vcmask 261120  }
  0x2a   :  { %565 = vmatpush3.bf16.msra.mxu0 %v655_v1  ;;  %636 = vmatpush3.bf16.msra.mxu1 %v655_v1  ;;  %v659_v5 = vld [vmem:[#allocation5 + $0x10] sm:$0xff]   ;;  %v660_v6 = vld [vmem:[#allocation5 + $0x58] sm:$0xff]   ;;  %v662_v8 = vld [vmem:[#allocation5 + $0x60] sm:$0xff]   ;;  %51 = vst.msk [vmem:[#allocation10] sm:$0x1] %vm49_vm0, %v818_v32  ;;  %s819_s1 = smov [#allocation7]  }
  0x2b   :  { %566 = vmatprep.subr.bf16.mxu0 %v656_v2  ;;  %629 = vmatprep.subr.bf16.mxu1 %v656_v2  ;;  %v661_v7 = vld [vmem:[#allocation5 + $0x18] sm:$0xff]   ;;  %v663_v9 = vld [vmem:[#allocation5 + $0x20] sm:$0xff]   ;;  %v664_v10 = vld [vmem:[#allocation5 + $0x68] sm:$0xff]   ;;  %s492_s16 = sshll.u32 %s819_s1, 4  ;;  %s493_s16 = int_to_ptr.vmem [resolvable:$true] %s492_s16 }
  0x2c   :  { %v672_v11 = vld [vmem:[#allocation2 + $0x4] ss:$8 sps:$4 sm:$0xff]   ;;  %v666_v14 = vld [vmem:[#allocation5 + $0x70] sm:$0xff]   ;;  %v668_v16 = vld [vmem:[#allocation5 + $0x78] sm:$0xff]   ;;  %s738_s17 = scalar_lea.vmem %s493_s16, 2048  ;;  %p743_p3 = scmp.lt.s32.totalorder %s493_s16, %s493_s16 }
  0x2d   :  { %v665_v12 = vld [vmem:[#allocation5 + $0x28] sm:$0xff]   ;;  %308 = vmatprep.mubr.bf16.mxu0 %v672_v11  ;;  %v667_v15 = vld [vmem:[#allocation5 + $0x30] sm:$0xff]   ;;  %v669_v17 = vld [vmem:[#allocation5 + $0x38] sm:$0xff]   ;;  %p739_p2 = scmp.ne.s32.totalorder %s493_s16, %s738_s17  ;;  %p744_p4 = scmp.lt.s32.totalorder %s738_s17, %s738_s17 }
  0x2e   :  { %567 = vmatpush3.bf16.msra.mxu0 %v657_v3  ;;  %637 = vmatpush3.bf16.msra.mxu1 %v657_v3  ;;  %v678_v13 = vld [vmem:[#allocation2 + $0x44] ss:$8 sps:$4 sm:$0xff]   ;;  %v670_v18 = vld [vmem:[#allocation2] ss:$8 sps:$4 sm:$0xff]   ;;  %v673_v20 = vld [vmem:[#allocation2 + $0x14] ss:$8 sps:$4 sm:$0xff]  }
  0x2f   :  { %568 = vmatprep.subr.bf16.mxu0 %v658_v4  ;;  %630 = vmatprep.subr.bf16.mxu1 %v658_v4  ;;  %v676_v19 = vld [vmem:[#allocation2 + $0x40] ss:$8 sps:$4 sm:$0xff]   ;;  %v682_v21 = vld [vmem:[#allocation2 + $0x54] ss:$8 sps:$4 sm:$0xff]   ;;  %v675_v22 = vld [vmem:[#allocation2 + $0x10] ss:$8 sps:$4 sm:$0xff]   ;;  %p745_p5 = por %p744_p4, %p743_p3 }
  0x30   :  { %340 = vmatprep.mubr.bf16.mxu1 %v678_v13  ;;  %v684_v23 = vld [vmem:[#allocation2 + $0x50] ss:$8 sps:$4 sm:$0xff]   ;;  %v679_v24 = vld [vmem:[#allocation2 + $0x24] ss:$8 sps:$4 sm:$0xff]   ;;  %v681_v26 = vld [vmem:[#allocation2 + $0x20] ss:$8 sps:$4 sm:$0xff]  }
  0x31   :  { %v688_v25 = vld [vmem:[#allocation2 + $0x64] ss:$8 sps:$4 sm:$0xff]   ;;  %v690_v27 = vld [vmem:[#allocation2 + $0x60] ss:$8 sps:$4 sm:$0xff]   ;;  %v685_v28 = vld [vmem:[#allocation2 + $0x34] ss:$8 sps:$4 sm:$0xff]   ;;  %p746_p6 = pnand %p745_p5, %p739_p2 }
  0x32   :  { %569 = vmatpush3.bf16.msra.mxu0 %v659_v5  ;;  %638 = vmatpush3.bf16.msra.mxu1 %v659_v5  ;;  %v691_v29 = vld [vmem:[#allocation2 + $0x74] ss:$8 sps:$4 sm:$0xff]   ;;  %v687_v30 = vld [vmem:[#allocation2 + $0x30] ss:$8 sps:$4 sm:$0xff]  }
  0x33   :  { %570 = vmatprep.subr.bf16.mxu0 %v660_v6  ;;  %631 = vmatprep.subr.bf16.mxu1 %v660_v6  ;;  %v693_v31 = vld [vmem:[#allocation2 + $0x70] ss:$8 sps:$4 sm:$0xff]  }
  0x36   :  { %571 = vmatpush3.bf16.msra.mxu0 %v661_v7  ;;  %639 = vmatpush3.bf16.msra.mxu1 %v661_v7 }
  0x37   :  { %572 = vmatprep.subr.bf16.mxu0 %v662_v8  ;;  %632 = vmatprep.subr.bf16.mxu1 %v662_v8 }
  0x3a   :  { %573 = vmatpush3.bf16.msra.mxu0 %v663_v9  ;;  %640 = vmatpush3.bf16.msra.mxu1 %v663_v9 }
  0x3b   :  { %574 = vmatprep.subr.bf16.mxu0 %v664_v10  ;;  %633 = vmatprep.subr.bf16.mxu1 %v664_v10 }
  0x3e   :  { %575 = vmatpush3.bf16.msra.mxu0 %v665_v12  ;;  %641 = vmatpush3.bf16.msra.mxu1 %v665_v12 }
  0x3f   :  { %576 = vmatprep.subr.bf16.mxu0 %v666_v14  ;;  %634 = vmatprep.subr.bf16.mxu1 %v666_v14 }
  0x42   :  { %577 = vmatpush3.bf16.msra.mxu0 %v667_v15  ;;  %642 = vmatpush3.bf16.msra.mxu1 %v667_v15 }
  0x43   :  { %578 = vmatprep.subr.bf16.mxu0 %v668_v16  ;;  %635 = vmatprep.subr.bf16.mxu1 %v668_v16 }
  0x46   :  { %579 = vmatpush3.bf16.msra.mxu0 %v669_v17  ;;  %643 = vmatpush3.bf16.msra.mxu1 %v669_v17 }
  0x49   :  { %309 = vmatmul.mubr.bf16.vlgmr.msra.gmra.mrb[0].mxu0 %v670_v18  ;;  %341 = vmatmul.mubr.bf16.vlgmr.msra.gmra.mrb[0].mxu1 %v676_v19 }
  0x4a   :  { %316 = vmatprep.mubr.bf16.mxu0 %v673_v20  ;;  %348 = vmatprep.mubr.bf16.mxu1 %v682_v21 }
  0x51   :  { %317 = vmatmul.mubr.bf16.gmra.mrb[4].mxu0 %v675_v22  ;;  %349 = vmatmul.mubr.bf16.gmra.mrb[4].mxu1 %v684_v23 }
  0x52   :  { %324 = vmatprep.mubr.bf16.mxu0 %v679_v24  ;;  %356 = vmatprep.mubr.bf16.mxu1 %v688_v25 }
  0x59   :  { %325 = vmatmul.mubr.bf16.gmra.mrb[8].mxu0 %v681_v26  ;;  %357 = vmatmul.mubr.bf16.gmra.mrb[8].mxu1 %v690_v27 }
  0x5a   :  { %332 = vmatprep.mubr.bf16.mxu0 %v685_v28  ;;  %364 = vmatprep.mubr.bf16.mxu1 %v691_v29 }
  0x61   :  { %333 = vmatmul.mubr.bf16.gmra.mrb[12].mxu0 %v687_v30  ;;  %365 = vmatmul.mubr.bf16.gmra.mrb[12].mxu1 %v693_v31 }
 0x11c   :  { %v580_v33 = vpop.f32.mrb[0].mxu0  ;;  %v604_v34 = vpop.f32.mrb[0].mxu1 }
 0x11d   :  { %v581_v35 = vpop.f32.mrb[1].mxu0  ;;  %v605_v36 = vpop.f32.mrb[1].mxu1 }
 0x11e   :  { %v582_v37 = vadd.f32 %v581_v35, %v580_v33  ;;  %v583_v38 = vpop.f32.mrb[2].mxu0  ;;  %v876_v39 = vadd.f32 %v605_v36, %v604_v34  ;;  %v607_v40 = vpop.f32.mrb[2].mxu1 }
 0x11f   :  { %v584_v41 = vpop.f32.mrb[3].mxu0  ;;  %v608_v42 = vpop.f32.mrb[3].mxu1 }
 0x120   :  { %374 = vst.msk [vmem:[#allocation7] sm:$0xff] %vm373_vm1, %v582_v37  ;;  %v432_v43 = vmul.f32 %v582_v37, %v582_v37  ;;  %v585_v44 = vadd.f32 %v584_v41, %v583_v38  ;;  %382 = vst.msk [vmem:[#allocation7 + $0x40] sm:$0xff] %vm373_vm1, %v876_v39  ;;  %v881_v45 = vadd.f32 %v608_v42, %v607_v40  ;;  %v391_v46 = vsel %vm373_vm1, %v582_v37, 0.0 }
 0x122   :  { %375 = vst.msk [vmem:[#allocation7 + $0x8] sm:$0xff] %vm373_vm1, %v585_v44  ;;  %v392_v47 = vsel %vm373_vm1, %v585_v44, 0.0  ;;  %v433_v48 = vmul.f32 %v585_v44, %v585_v44  ;;  %383 = vst.msk [vmem:[#allocation7 + $0x48] sm:$0xff] %vm373_vm1, %v881_v45  ;;  %v448_v50 = vsel %vm373_vm1, %v432_v43, 0.0 }
 0x123   :  { %v393_v49 = vadd.f32 %v392_v47, %v391_v46 }
 0x124   :  { %v449_v51 = vsel %vm373_vm1, %v433_v48, 0.0  ;;  %v586_v52 = vpop.f32.mrb[4].mxu0  ;;  %v610_v53 = vpop.f32.mrb[4].mxu1 }
 0x125   :  { %v450_v54 = vadd.f32 %v449_v51, %v448_v50  ;;  %v587_v55 = vpop.f32.mrb[5].mxu0  ;;  %v611_v56 = vpop.f32.mrb[5].mxu1  ;;  %v440_v50 = vmul.f32 %v876_v39, %v876_v39 }
 0x126   :  { %v588_v57 = vadd.f32 %v587_v55, %v586_v52  ;;  %v589_v58 = vpop.f32.mrb[6].mxu0  ;;  %v890_v59 = vadd.f32 %v611_v56, %v610_v53  ;;  %v613_v60 = vpop.f32.mrb[6].mxu1  ;;  %v406_v56 = vsel %vm373_vm1, %v876_v39, 0.0 }
 0x127   :  { %v590_v61 = vpop.f32.mrb[7].mxu0  ;;  %v614_v62 = vpop.f32.mrb[7].mxu1 }
 0x128   :  { %376 = vst.msk [vmem:[#allocation7 + $0x10] sm:$0xff] %vm373_vm1, %v588_v57  ;;  %v394_v63 = vsel %vm373_vm1, %v588_v57, 0.0  ;;  %v434_v0 = vmul.f32 %v588_v57, %v588_v57  ;;  %v591_v1 = vadd.f32 %v590_v61, %v589_v58  ;;  %384 = vst.msk [vmem:[#allocation7 + $0x50] sm:$0xff] %vm373_vm1, %v890_v59  ;;  %v896_v3 = vadd.f32 %v614_v62, %v613_v60 }
 0x129   :  { %v395_v2 = vadd.f32 %v394_v63, %v393_v49  ;;  %v441_v57 = vmul.f32 %v881_v45, %v881_v45 }
 0x12a   :  { %v451_v4 = vsel %vm373_vm1, %v434_v0, 0.0  ;;  %377 = vst.msk [vmem:[#allocation7 + $0x18] sm:$0xff] %vm373_vm1, %v591_v1  ;;  %v396_v5 = vsel %vm373_vm1, %v591_v1, 0.0  ;;  %v435_v6 = vmul.f32 %v591_v1, %v591_v1  ;;  %385 = vst.msk [vmem:[#allocation7 + $0x58] sm:$0xff] %vm373_vm1, %v896_v3 }
 0x12b   :  { %v452_v7 = vadd.f32 %v451_v4, %v450_v54  ;;  %v397_v8 = vadd.f32 %v396_v5, %v395_v2 }
 0x12c   :  { %v453_v9 = vsel %vm373_vm1, %v435_v6, 0.0  ;;  %v592_v10 = vpop.f32.mrb[8].mxu0  ;;  %v616_v11 = vpop.f32.mrb[8].mxu1 }
 0x12d   :  { %v454_v12 = vadd.f32 %v453_v9, %v452_v7  ;;  %v593_v13 = vpop.f32.mrb[9].mxu0  ;;  %v617_v14 = vpop.f32.mrb[9].mxu1 }
 0x12e   :  { %v594_v15 = vadd.f32 %v593_v13, %v592_v10  ;;  %v595_v16 = vpop.f32.mrb[10].mxu0  ;;  %v904_v17 = vadd.f32 %v617_v14, %v616_v11  ;;  %v619_v18 = vpop.f32.mrb[10].mxu1 }
 0x12f   :  { %v596_v19 = vpop.f32.mrb[11].mxu0  ;;  %v620_v20 = vpop.f32.mrb[11].mxu1 }
 0x130   :  { %378 = vst.msk [vmem:[#allocation7 + $0x20] sm:$0xff] %vm373_vm1, %v594_v15  ;;  %v398_v21 = vsel %vm373_vm1, %v594_v15, 0.0  ;;  %v436_v22 = vmul.f32 %v594_v15, %v594_v15  ;;  %v597_v23 = vadd.f32 %v596_v19, %v595_v16  ;;  %386 = vst.msk [vmem:[#allocation7 + $0x60] sm:$0xff] %vm373_vm1, %v904_v17  ;;  %v910_v25 = vadd.f32 %v620_v20, %v619_v18 }
 0x131   :  { %v399_v24 = vadd.f32 %v398_v21, %v397_v8 }
 0x132   :  { %v455_v26 = vsel %vm373_vm1, %v436_v22, 0.0  ;;  %379 = vst.msk [vmem:[#allocation7 + $0x28] sm:$0xff] %vm373_vm1, %v597_v23  ;;  %v400_v27 = vsel %vm373_vm1, %v597_v23, 0.0  ;;  %v437_v28 = vmul.f32 %v597_v23, %v597_v23  ;;  %387 = vst.msk [vmem:[#allocation7 + $0x68] sm:$0xff] %vm373_vm1, %v910_v25 }
 0x133   :  { %v456_v29 = vadd.f32 %v455_v26, %v454_v12  ;;  %v401_v30 = vadd.f32 %v400_v27, %v399_v24 }
 0x134   :  { %v457_v31 = vsel %vm373_vm1, %v437_v28, 0.0  ;;  %v598_v32 = vpop.f32.mrb[12].mxu0  ;;  %v622_v33 = vpop.f32.mrb[12].mxu1 }
 0x135   :  { %v458_v34 = vadd.f32 %v457_v31, %v456_v29  ;;  %v599_v35 = vpop.f32.mrb[13].mxu0  ;;  %v623_v36 = vpop.f32.mrb[13].mxu1 }
 0x136   :  { %v600_v37 = vadd.f32 %v599_v35, %v598_v32  ;;  %v601_v38 = vpop.f32.mrb[14].mxu0  ;;  %v918_v40 = vadd.f32 %v623_v36, %v622_v33  ;;  %v625_v41 = vpop.f32.mrb[14].mxu1 }
 0x137   :  { %v602_v42 = vpop.f32.mrb[15].mxu0  ;;  %v626_v43 = vpop.f32.mrb[15].mxu1 }
 0x138   :  { %380 = vst.msk [vmem:[#allocation7 + $0x30] sm:$0xff] %vm373_vm1, %v600_v37  ;;  %v402_v44 = vsel %vm373_vm1, %v600_v37, 0.0  ;;  %v438_v46 = vmul.f32 %v600_v37, %v600_v37  ;;  %v603_v47 = vadd.f32 %v602_v42, %v601_v38  ;;  %388 = vst.msk [vmem:[#allocation7 + $0x70] sm:$0xff] %vm373_vm1, %v918_v40  ;;  %v627_v49 = vadd.f32 %v626_v43, %v625_v41 }
 0x139   :  { %v403_v48 = vadd.f32 %v402_v44, %v401_v30 }
 0x13a   :  { %v459_v51 = vsel %vm373_vm1, %v438_v46, 0.0  ;;  %381 = vst.msk [vmem:[#allocation7 + $0x38] sm:$0xff] %vm373_vm1, %v603_v47  ;;  %v404_v52 = vsel %vm373_vm1, %v603_v47, 0.0  ;;  %v439_v53 = vmul.f32 %v603_v47, %v603_v47  ;;  %389 = vst.msk [vmem:[#allocation7 + $0x78] sm:$0xff] %vm373_vm1, %v627_v49 }
 0x13b   :  { %v460_v54 = vadd.f32 %v459_v51, %v458_v34  ;;  %v405_v55 = vadd.f32 %v404_v52, %v403_v48 }
 0x13c   :  { %v461_v58 = vsel %vm373_vm1, %v439_v53, 0.0 }
 0x13d   :  { %749 = shalt.err (!%p746_p6)
}
 0x13e   :  { %s750_s20 = scalar_lea.hbm %s1017_s2, 2048 }
 0x13f   :  { %p751_p7 = scmp.ne.s32.totalorder %s1017_s2, %s750_s20  ;;  %p754_p8 = scmp.lt.u32.totalorder %s750_s20, %s1017_s2 }
 0x141   :  { %p756_p9 = pnand %p754_p8, %p751_p7 }
 0x143   :  { %759 = shalt.err (!%p756_p9)
}
 0x144   :  { %498 = dma.vmem_to_hbm [thread:$0]  %s493_s16, 2048, %s1017_s2, [#allocation4], %s813_s25, %s813_s25, %s814_s26   ;;  %v407_v39 = vadd.f32 %v406_v56, %v405_v55  ;;  %v462_v60 = vadd.f32 %v461_v58, %v460_v54  ;;  %v463_v61 = vsel %vm373_vm1, %v440_v50, 0.0  ;;  %v408_v62 = vsel %vm373_vm1, %v881_v45, 0.0  ;;  %v390_v41 = vld [vmem:[#allocation8] sm:$0x1] }
 0x145   :  { %v442_v63 = vmul.f32 %v890_v59, %v890_v59  ;;  %v465_v2 = vsel %vm373_vm1, %v441_v57, 0.0  ;;  %v410_v4 = vsel %vm373_vm1, %v890_v59, 0.0  ;;  %v443_v5 = vmul.f32 %v896_v3, %v896_v3  ;;  %s820_s2 = smov [#allocation8]   ;;  %v431_v44 = vld [vmem:[#allocation10] sm:$0x1]  ;;  %s821_s26 = smov [#allocation10]  }
 0x146   :  { %v409_v0 = vadd.f32 %v408_v62, %v407_v39  ;;  %v464_v1 = vadd.f32 %v463_v61, %v462_v60  ;;  %v412_v45 = vsel %vm373_vm1, %v896_v3, 0.0  ;;  %v444_v9 = vmul.f32 %v904_v17, %v904_v17  ;;  %s505_s25 = sshll.u32 %s820_s2, 4  ;;  %s515_s29 = sshll.u32 %s821_s26, 4  ;;  %s506_s25 = int_to_ptr.vmem [resolvable:$true] %s505_s25  ;;  %s982_s29 = int_to_ptr.vmem [resolvable:$true] %s515_s29 }
 0x147   :  { %v467_v8 = vsel %vm373_vm1, %v442_v63, 0.0  ;;  %v469_v12 = vsel %vm373_vm1, %v443_v5, 0.0  ;;  %v414_v59 = vsel %vm373_vm1, %v904_v17, 0.0  ;;  %v445_v13 = vmul.f32 %v910_v25, %v910_v25  ;;  %s760_s30 = scalar_lea.vmem %s506_s25, 16  ;;  %s764_s5 = scalar_lea.vmem %s506_s25, 32 }
 0x148   :  { %v466_v6 = vadd.f32 %v465_v2, %v464_v1  ;;  %v411_v7 = vadd.f32 %v410_v4, %v409_v0  ;;  %v446_v14 = vmul.f32 %v918_v40, %v918_v40  ;;  %v471_v3 = vsel %vm373_vm1, %v444_v9, 0.0  ;;  %p761_p10 = scmp.ne.s32.totalorder %s506_s25, %s760_s30  ;;  %p765_p11 = scmp.lt.s32.totalorder %s506_s25, %s506_s25 }
 0x149   :  { %v416_v18 = vsel %vm373_vm1, %v910_v25, 0.0  ;;  %v418_v19 = vsel %vm373_vm1, %v918_v40, 0.0  ;;  %v473_v17 = vsel %vm373_vm1, %v445_v13, 0.0  ;;  %v447_v23 = vmul.f32 %v627_v49, %v627_v49  ;;  %p766_p12 = scmp.lt.s32.totalorder %s764_s5, %s760_s30 }
 0x14a   :  { %v413_v10 = vadd.f32 %v412_v45, %v411_v7  ;;  %v468_v11 = vadd.f32 %v467_v8, %v466_v6  ;;  %v475_v22 = vsel %vm373_vm1, %v446_v14, 0.0  ;;  %v420_v27 = vsel %vm373_vm1, %v627_v49, 0.0 }
 0x14b   :  { %v477_v30 = vsel %vm373_vm1, %v447_v23, 0.0  ;;  %p767_p13 = por %p766_p12, %p765_p11 }
 0x14c   :  { %v415_v15 = vadd.f32 %v414_v59, %v413_v10  ;;  %v470_v16 = vadd.f32 %v469_v12, %v468_v11 }
 0x14d   :  { %p768_p0 = pnand %p767_p13, %p761_p10 }
 0x14e   :  { %v472_v20 = vadd.f32 %v471_v3, %v470_v16  ;;  %v417_v21 = vadd.f32 %v416_v18, %v415_v15 }
 0x150   :  { %v474_v24 = vadd.f32 %v473_v17, %v472_v20  ;;  %v419_v26 = vadd.f32 %v418_v19, %v417_v21 }
 0x152   :  { %v476_v28 = vadd.f32 %v475_v22, %v474_v24  ;;  %v421_v29 = vadd.f32 %v420_v27, %v419_v26 }
 0x154   :  { %v422_v31 = vrot.slane %v421_v29, 4  ;;  %v478_v25 = vadd.f32 %v477_v30, %v476_v28 }
 0x156   :  { %v423_v32 = vadd.f32 %v422_v31, %v421_v29  ;;  %v479_v33 = vrot.slane %v478_v25, 4 }
 0x158   :  { %v424_v34 = vrot.slane %v423_v32, 2  ;;  %v480_v35 = vadd.f32 %v479_v33, %v478_v25 }
 0x15a   :  { %v425_v36 = vadd.f32 %v424_v34, %v423_v32  ;;  %v481_v37 = vrot.slane %v480_v35, 2 }
 0x15c   :  { %v426_v38 = vrot.slane %v425_v36, 1  ;;  %v482_v40 = vadd.f32 %v481_v37, %v480_v35 }
 0x15e   :  { %v483_v42 = vrot.slane %v482_v40, 1  ;;  %v427_v43 = vadd.f32 %v426_v38, %v425_v36 }
 0x160   :  { %v428_v46 = vadd.f32 %v427_v43, %v390_v41  ;;  %v484_v47 = vadd.f32 %v483_v42, %v482_v40 }
 0x162   :  { %430 = vst.msk [vmem:[#allocation8] sm:$0x1] %vm49_vm0, %v428_v46  ;;  %v485_v48 = vadd.f32 %v484_v47, %v431_v44 }
 0x163   :  { %771 = shalt.err (!%p768_p0)
}
 0x164   :  { %s772_s8 = scalar_lea.hbm %s1018_s3, 16 }
 0x165   :  { %p773_p1 = scmp.ne.s32.totalorder %s1018_s3, %s772_s8  ;;  %p776_p2 = scmp.lt.u32.totalorder %s772_s8, %s1018_s3 }
 0x167   :  { %p778_p3 = pnand %p776_p2, %p773_p1 }
 0x169   :  { %781 = shalt.err (!%p778_p3)
}
 0x16a   :  { %508 = dma.vmem_to_hbm [thread:$0]  %s506_s25, 16, %s1018_s3, [#allocation9]   ;;  %486 = vst.msk [vmem:[#allocation10] sm:$0x1] %vm49_vm0, %v485_v48 }
 0x16b   :  { %s782_s14 = scalar_lea.vmem %s982_s29, 16  ;;  %s786_s15 = scalar_lea.vmem %s982_s29, 32 }
 0x16c   :  { %p783_p4 = scmp.ne.s32.totalorder %s982_s29, %s782_s14  ;;  %p787_p5 = scmp.lt.s32.totalorder %s982_s29, %s982_s29 }
 0x16d   :  { %p788_p6 = scmp.lt.s32.totalorder %s786_s15, %s782_s14 }
 0x16f   :  { %p789_p7 = por %p788_p6, %p787_p5 }
 0x171   :  { %p790_p8 = pnand %p789_p7, %p783_p4 }
 0x173   :  { %793 = shalt.err (!%p790_p8)
}
 0x174   :  { %s794_s17 = scalar_lea.hbm %s1019_s4, 16 }
 0x175   :  { %p795_p9 = scmp.ne.s32.totalorder %s1019_s4, %s794_s17  ;;  %p798_p10 = scmp.lt.u32.totalorder %s794_s17, %s1019_s4 }
 0x177   :  { %p800_p11 = pnand %p798_p10, %p795_p9 }
 0x179   :  { %803 = shalt.err (!%p800_p11)
}
 0x17a   :  { %518 = dma.vmem_to_hbm [thread:$0]  %s982_s29, 16, %s1019_s4, [#allocation9]  }
 0x17b   :  { %808 = dma.done.wait [#allocation4], 2048  }
 0x17c   :  { %809 = vsyncadd [#allocation4], 4294965248 }
 0x17d   :  { %810 = dma.done.wait [#allocation9], 32  }
 0x17e   :  { %811 = vsyncadd [#allocation9], 4294967264 }
 0x17f   :  { %528 = vsyncpa [#allocation3], 1 }
 0x180   :  { %529 = vsyncpa [#allocation6], 1 }
 0x181   :  { %530 = vsyncpa [#allocation4], 1 }
 0x182   :  { %531 = vsyncpa [#allocation9], 1 }

// kernel: discriminator_dc_forward.12
= control target key start
LH: loop header
LB: loop body
LE: loop exit
PB: predicated region body
PF: predicated region fallthrough
CT: control target
= control target key end

     0   :  { %8 = vsyncpa [#allocation3], 0  ;;  %s439_s0 = inlined_call_operand.hbm [shape: f32[128,32], index: 0, kind: input, shape index: {}]   ;;  %s440_s1 = inlined_call_operand.hbm [shape: f32[1,32], index: 1, kind: input, shape index: {}]   ;;  %s441_s2 = inlined_call_operand.hbm [shape: f32[1,32], index: 2, kind: input, shape index: {}]   ;;  %s442_s3 = inlined_call_operand.hbm [shape: f32[128,32], index: 3, kind: output, shape index: {}]  }
   0x1   :  { %9 = vsyncpa [#allocation6], 0 }
   0x2   :  { %10 = vsyncpa [#allocation4], 0  ;;  %s299_s12 = smov [#allocation5]   ;;  %s300_s14 = smov [#allocation2]  }
   0x3   :  { %s29_s13 = sshll.u32 %s299_s12, 4  ;;  %s16_s15 = sshll.u32 %s300_s14, 4  ;;  %s30_s13 = int_to_ptr.vmem [resolvable:$true] %s29_s13  ;;  %s325_s15 = int_to_ptr.vmem [resolvable:$true] %s16_s15 }
   0x4   :  { %s205_s18 = scalar_lea.hbm %s440_s1, 16 }
   0x5   :  { %p206_p0 = scmp.ne.s32.totalorder %s440_s1, %s205_s18  ;;  %p209_p1 = scmp.lt.u32.totalorder %s205_s18, %s440_s1 }
   0x7   :  { %p211_p2 = pnand %p209_p1, %p206_p0 }
   0x9   :  { %214 = shalt.err (!%p211_p2)
}
   0xa   :  { %s215_s23 = scalar_lea.vmem %s30_s13, 16  ;;  %s219_s24 = scalar_lea.vmem %s30_s13, 32 }
   0xb   :  { %p216_p3 = scmp.ne.s32.totalorder %s30_s13, %s215_s23  ;;  %p220_p4 = scmp.lt.s32.totalorder %s30_s13, %s30_s13 }
   0xc   :  { %p221_p5 = scmp.lt.s32.totalorder %s219_s24, %s215_s23 }
   0xe   :  { %p222_p6 = por %p221_p5, %p220_p4 }
  0x10   :  { %p223_p7 = pnand %p222_p6, %p216_p3 }
  0x12   :  { %226 = shalt.err (!%p223_p7)
}
  0x13   :  { %32 = dma.hbm_to_vmem [thread:$0]  %s440_s1, 16, %s30_s13, [#allocation6]  }
  0x14   :  { %s227_s29 = scalar_lea.hbm %s439_s0, 2048 }
  0x15   :  { %p228_p8 = scmp.ne.s32.totalorder %s439_s0, %s227_s29  ;;  %p231_p9 = scmp.lt.u32.totalorder %s227_s29, %s439_s0 }
  0x17   :  { %p233_p10 = pnand %p231_p9, %p228_p8 }
  0x19   :  { %236 = shalt.err (!%p233_p10)
}
  0x1a   :  { %s237_s7 = scalar_lea.vmem %s325_s15, 2048  ;;  %p242_p12 = scmp.lt.s32.totalorder %s325_s15, %s325_s15 }
  0x1b   :  { %p238_p11 = scmp.ne.s32.totalorder %s325_s15, %s237_s7  ;;  %p243_p13 = scmp.lt.s32.totalorder %s237_s7, %s237_s7 }
  0x1d   :  { %p244_p0 = por %p243_p13, %p242_p12 }
  0x1f   :  { %p245_p1 = pnand %p244_p0, %p238_p11 }
  0x21   :  { %248 = shalt.err (!%p245_p1)
}
  0x22   :  { %s301_s1 = smov 128   ;;  %s302_s8 = smov 8  }
  0x23   :  { %22 = dma.hbm_to_vmem [thread:$0]  %s439_s0, 2048, %s325_s15, [#allocation3], %s301_s1, %s301_s1, %s302_s8  }
  0x24   :  { %s303_s11 = smov [#allocation7]   ;;  %s249_s16 = scalar_lea.hbm %s441_s2, 16 }
  0x25   :  { %s39_s12 = sshll.u32 %s303_s11, 4  ;;  %p250_p2 = scmp.ne.s32.totalorder %s441_s2, %s249_s16  ;;  %s40_s12 = int_to_ptr.vmem [resolvable:$true] %s39_s12 }
  0x26   :  { %p253_p3 = scmp.lt.u32.totalorder %s249_s16, %s441_s2 }
  0x28   :  { %p255_p4 = pnand %p253_p3, %p250_p2 }
  0x2a   :  { %258 = shalt.err (!%p255_p4)
}
  0x2b   :  { %s259_s21 = scalar_lea.vmem %s40_s12, 16  ;;  %s263_s0 = scalar_lea.vmem %s40_s12, 32 }
  0x2c   :  { %p260_p5 = scmp.ne.s32.totalorder %s40_s12, %s259_s21  ;;  %p264_p6 = scmp.lt.s32.totalorder %s40_s12, %s40_s12 }
  0x2d   :  { %p265_p7 = scmp.lt.s32.totalorder %s263_s0, %s259_s21 }
  0x2f   :  { %p266_p8 = por %p265_p7, %p264_p6 }
  0x31   :  { %p267_p9 = pnand %p266_p8, %p260_p5 }
  0x33   :  { %270 = shalt.err (!%p267_p9)
}
  0x34   :  { %42 = dma.hbm_to_vmem [thread:$0]  %s441_s2, 16, %s40_s12, [#allocation6]  }
  0x35   :  { %293 = dma.done.wait [#allocation3], 2048  }
  0x36   :  { %294 = vsyncadd [#allocation3], 4294965248 }
  0x37   :  { %295 = dma.done.wait [#allocation6], 32  }
  0x38   :  { %296 = vsyncadd [#allocation6], 4294967264  ;;  %v52_v0 = vld [vmem:[#allocation2] sm:$0xff]  ;;  %v53_v4 = vld [vmem:[#allocation2 + $0x8] sm:$0xff]  ;;  %vm162_vm0 = vcmask 261120   ;;  %s304_s2 = smov [#allocation8]  }
  0x39   :  { %v371_v1 = vld [vmem:[#allocation5] ss:$0 sm:$0xff]  ;;  %v373_v2 = vld [vmem:[#allocation7] ss:$0 sm:$0xff]  ;;  %v54_v5 = vld [vmem:[#allocation2 + $0x10] sm:$0xff]  ;;  %s184_s23 = sshll.u32 %s304_s2, 4  ;;  %s185_s23 = int_to_ptr.vmem [resolvable:$true] %s184_s23 }
  0x3a   :  { %v75_v3 = vmul.f32 %v371_v1, %v52_v0  ;;  %v55_v6 = vld [vmem:[#allocation2 + $0x18] sm:$0xff]  ;;  %v76_v7 = vmul.f32 %v371_v1, %v53_v4  ;;  %v77_v8 = vmul.f32 %v371_v1, %v54_v5  ;;  %v56_v10 = vld [vmem:[#allocation2 + $0x20] sm:$0xff]  ;;  %v57_v11 = vld [vmem:[#allocation2 + $0x28] sm:$0xff]  ;;  %s271_s24 = scalar_lea.vmem %s185_s23, 2048  ;;  %p276_p11 = scmp.lt.s32.totalorder %s185_s23, %s185_s23 }
  0x3b   :  { %v78_v9 = vmul.f32 %v371_v1, %v55_v6  ;;  %v58_v12 = vld [vmem:[#allocation2 + $0x30] sm:$0xff]  ;;  %v79_v14 = vmul.f32 %v371_v1, %v56_v10  ;;  %v80_v15 = vmul.f32 %v371_v1, %v57_v11  ;;  %v59_v17 = vld [vmem:[#allocation2 + $0x38] sm:$0xff]  ;;  %v60_v25 = vld [vmem:[#allocation2 + $0x40] sm:$0xff]  ;;  %p272_p10 = scmp.ne.s32.totalorder %s185_s23, %s271_s24  ;;  %p277_p12 = scmp.lt.s32.totalorder %s271_s24, %s271_s24 }
  0x3c   :  { %v98_v13 = vadd.f32 %v373_v2, %v75_v3  ;;  %v81_v16 = vmul.f32 %v371_v1, %v58_v12  ;;  %v99_v18 = vadd.f32 %v373_v2, %v76_v7  ;;  %v100_v19 = vadd.f32 %v373_v2, %v77_v8  ;;  %v61_v30 = vld [vmem:[#allocation2 + $0x48] sm:$0xff]  ;;  %v62_v31 = vld [vmem:[#allocation2 + $0x50] sm:$0xff]  ;;  %v63_v43 = vld [vmem:[#allocation2 + $0x58] sm:$0xff] }
  0x3d   :  { %v101_v20 = vadd.f32 %v373_v2, %v78_v9  ;;  %v82_v21 = vmul.f32 %v371_v1, %v59_v17  ;;  %v102_v23 = vadd.f32 %v373_v2, %v79_v14  ;;  %v103_v24 = vadd.f32 %v373_v2, %v80_v15  ;;  %v64_v44 = vld [vmem:[#allocation2 + $0x60] sm:$0xff]  ;;  %v65_v45 = vld [vmem:[#allocation2 + $0x68] sm:$0xff]  ;;  %v66_v56 = vld [vmem:[#allocation2 + $0x70] sm:$0xff]  ;;  %p278_p13 = por %p277_p12, %p276_p11 }
  0x3e   :  { %vm114_vm1 = vcmp.gt.f32.partialorder %v98_v13, 0.0  ;;  %v130_v22 = vmul.f32 0.2, %v98_v13  ;;  %vm115_vm2 = vcmp.gt.f32.partialorder %v99_v18, 0.0  ;;  %v131_v26 = vmul.f32 0.2, %v99_v18 }
  0x3f   :  { %vm116_vm3 = vcmp.gt.f32.partialorder %v100_v19, 0.0  ;;  %v132_v27 = vmul.f32 0.2, %v100_v19  ;;  %vm117_vm4 = vcmp.gt.f32.partialorder %v101_v20, 0.0  ;;  %v133_v29 = vmul.f32 0.2, %v101_v20  ;;  %p279_p0 = pnand %p278_p13, %p272_p10 }
  0x40   :  { %v146_v28 = vsel %vm114_vm1, %v98_v13, %v130_v22  ;;  %vm118_vm5 = vcmp.gt.f32.partialorder %v102_v23, 0.0  ;;  %v147_v32 = vsel %vm115_vm2, %v99_v18, %v131_v26  ;;  %v134_v34 = vmul.f32 0.2, %v102_v23  ;;  %v67_v4 = vld [vmem:[#allocation2 + $0x78] sm:$0xff] }
  0x41   :  { %163 = vst.msk [vmem:[#allocation8] sm:$0xff] %vm162_vm0, %v146_v28  ;;  %v148_v33 = vsel %vm116_vm3, %v100_v19, %v132_v27  ;;  %vm119_vm6 = vcmp.gt.f32.partialorder %v103_v24, 0.0  ;;  %164 = vst.msk [vmem:[#allocation8 + $0x8] sm:$0xff] %vm162_vm0, %v147_v32  ;;  %v149_v35 = vsel %vm117_vm4, %v101_v20, %v133_v29  ;;  %v135_v36 = vmul.f32 0.2, %v103_v24 }
  0x42   :  { %165 = vst.msk [vmem:[#allocation8 + $0x10] sm:$0xff] %vm162_vm0, %v148_v33  ;;  %v104_v37 = vadd.f32 %v373_v2, %v81_v16  ;;  %v105_v38 = vadd.f32 %v373_v2, %v82_v21  ;;  %166 = vst.msk [vmem:[#allocation8 + $0x18] sm:$0xff] %vm162_vm0, %v149_v35  ;;  %v150_v39 = vsel %vm118_vm5, %v102_v23, %v134_v34 }
  0x43   :  { %v83_v40 = vmul.f32 %v371_v1, %v60_v25  ;;  %v84_v41 = vmul.f32 %v371_v1, %v61_v30  ;;  %v85_v42 = vmul.f32 %v371_v1, %v62_v31  ;;  %167 = vst.msk [vmem:[#allocation8 + $0x20] sm:$0xff] %vm162_vm0, %v150_v39  ;;  %v151_v46 = vsel %vm119_vm6, %v103_v24, %v135_v36 }
  0x44   :  { %vm120_vm7 = vcmp.gt.f32.partialorder %v104_v37, 0.0  ;;  %v136_v47 = vmul.f32 0.2, %v104_v37  ;;  %vm121_vm8 = vcmp.gt.f32.partialorder %v105_v38, 0.0  ;;  %168 = vst.msk [vmem:[#allocation8 + $0x28] sm:$0xff] %vm162_vm0, %v151_v46  ;;  %v86_v53 = vmul.f32 %v371_v1, %v63_v43 }
  0x45   :  { %v137_v48 = vmul.f32 0.2, %v105_v38  ;;  %v106_v49 = vadd.f32 %v373_v2, %v83_v40  ;;  %v107_v50 = vadd.f32 %v373_v2, %v84_v41  ;;  %v108_v51 = vadd.f32 %v373_v2, %v85_v42 }
  0x46   :  { %v152_v52 = vsel %vm120_vm7, %v104_v37, %v136_v47  ;;  %v87_v54 = vmul.f32 %v371_v1, %v64_v44  ;;  %v88_v55 = vmul.f32 %v371_v1, %v65_v45  ;;  %v109_v61 = vadd.f32 %v373_v2, %v86_v53 }
  0x47   :  { %169 = vst.msk [vmem:[#allocation8 + $0x30] sm:$0xff] %vm162_vm0, %v152_v52  ;;  %v153_v57 = vsel %vm121_vm8, %v105_v38, %v137_v48  ;;  %vm122_vm9 = vcmp.gt.f32.partialorder %v106_v49, 0.0  ;;  %v138_v58 = vmul.f32 0.2, %v106_v49  ;;  %vm123_vm10 = vcmp.gt.f32.partialorder %v107_v50, 0.0 }
  0x48   :  { %170 = vst.msk [vmem:[#allocation8 + $0x38] sm:$0xff] %vm162_vm0, %v153_v57  ;;  %v139_v59 = vmul.f32 0.2, %v107_v50  ;;  %vm124_vm11 = vcmp.gt.f32.partialorder %v108_v51, 0.0  ;;  %v140_v60 = vmul.f32 0.2, %v108_v51  ;;  %v110_v63 = vadd.f32 %v373_v2, %v87_v54 }
  0x49   :  { %v154_v62 = vsel %vm122_vm9, %v106_v49, %v138_v58  ;;  %v111_v0 = vadd.f32 %v373_v2, %v88_v55  ;;  %v89_v3 = vmul.f32 %v371_v1, %v66_v56  ;;  %vm125_vm12 = vcmp.gt.f32.partialorder %v109_v61, 0.0 }
  0x4a   :  { %171 = vst.msk [vmem:[#allocation8 + $0x40] sm:$0xff] %vm162_vm0, %v154_v62  ;;  %v155_v5 = vsel %vm123_vm10, %v107_v50, %v139_v59  ;;  %v156_v6 = vsel %vm124_vm11, %v108_v51, %v140_v60  ;;  %v141_v7 = vmul.f32 0.2, %v109_v61  ;;  %vm126_vm13 = vcmp.gt.f32.partialorder %v110_v63, 0.0 }
  0x4b   :  { %172 = vst.msk [vmem:[#allocation8 + $0x48] sm:$0xff] %vm162_vm0, %v155_v5  ;;  %173 = vst.msk [vmem:[#allocation8 + $0x50] sm:$0xff] %vm162_vm0, %v156_v6  ;;  %v142_v8 = vmul.f32 0.2, %v110_v63  ;;  %vm127_vm14 = vcmp.gt.f32.partialorder %v111_v0, 0.0  ;;  %v112_v11 = vadd.f32 %v373_v2, %v89_v3  ;;  %v90_v12 = vmul.f32 %v371_v1, %v67_v4 }
  0x4c   :  { %v143_v9 = vmul.f32 0.2, %v111_v0  ;;  %v157_v10 = vsel %vm125_vm12, %v109_v61, %v141_v7 }
  0x4d   :  { %174 = vst.msk [vmem:[#allocation8 + $0x58] sm:$0xff] %vm162_vm0, %v157_v10  ;;  %v158_v13 = vsel %vm126_vm13, %v110_v63, %v142_v8  ;;  %vm128_vm15 = vcmp.gt.f32.partialorder %v112_v11, 0.0  ;;  %v144_v15 = vmul.f32 0.2, %v112_v11  ;;  %v113_v16 = vadd.f32 %v373_v2, %v90_v12 }
  0x4e   :  { %v159_v14 = vsel %vm127_vm14, %v111_v0, %v143_v9  ;;  %175 = vst.msk [vmem:[#allocation8 + $0x60] sm:$0xff] %vm162_vm0, %v158_v13 }
  0x4f   :  { %176 = vst.msk [vmem:[#allocation8 + $0x68] sm:$0xff] %vm162_vm0, %v159_v14  ;;  %v160_v17 = vsel %vm128_vm15, %v112_v11, %v144_v15  ;;  %vm129_vm1 = vcmp.gt.f32.partialorder %v113_v16, 0.0  ;;  %v145_v18 = vmul.f32 0.2, %v113_v16 }
  0x50   :  { %177 = vst.msk [vmem:[#allocation8 + $0x70] sm:$0xff] %vm162_vm0, %v160_v17 }
  0x51   :  { %v161_v1 = vsel %vm129_vm1, %v113_v16, %v145_v18 }
  0x52   :  { %178 = vst.msk [vmem:[#allocation8 + $0x78] sm:$0xff] %vm162_vm0, %v161_v1 }
  0x53   :  { %282 = shalt.err (!%p279_p0)
}
  0x54   :  { %s283_s27 = scalar_lea.hbm %s442_s3, 2048 }
  0x55   :  { %p284_p1 = scmp.ne.s32.totalorder %s442_s3, %s283_s27  ;;  %p287_p2 = scmp.lt.u32.totalorder %s283_s27, %s442_s3 }
  0x57   :  { %p289_p3 = pnand %p287_p2, %p284_p1 }
  0x59   :  { %292 = shalt.err (!%p289_p3)
}
  0x5a   :  { %190 = dma.vmem_to_hbm [thread:$0]  %s185_s23, 2048, %s442_s3, [#allocation4], %s301_s1, %s301_s1, %s302_s8  }
  0x5b   :  { %297 = dma.done.wait [#allocation4], 2048  }
  0x5c   :  { %298 = vsyncadd [#allocation4], 4294965248 }
  0x5d   :  { %194 = vsyncpa [#allocation3], 1 }
  0x5e   :  { %195 = vsyncpa [#allocation6], 1 }
  0x5f   :  { %196 = vsyncpa [#allocation4], 1 }

// kernel: discriminator_dc_forward.13
= control target key start
LH: loop header
LB: loop body
LE: loop exit
PB: predicated region body
PF: predicated region fallthrough
CT: control target
= control target key end

     0   :  { %10 = vsyncpa [#allocation3], 0  ;;  %s939_s0 = inlined_call_operand.hbm [shape: bf16[32,512], index: 0, kind: input, shape index: {}]   ;;  %s940_s1 = inlined_call_operand.hbm [shape: bf16[512,64], index: 1, kind: input, shape index: {}]   ;;  %s941_s2 = inlined_call_operand.hbm [shape: f32[32,64], index: 2, kind: output, shape index: {0}]   ;;  %s942_s3 = inlined_call_operand.hbm [shape: f32[1,64], index: 3, kind: output, shape index: {1}]   ;;  %s943_s4 = inlined_call_operand.hbm [shape: f32[1,64], index: 4, kind: output, shape index: {2}]  }
   0x1   :  { %11 = vsyncpa [#allocation6], 0 }
   0x2   :  { %12 = vsyncpa [#allocation4], 0 }
   0x3   :  { %13 = vsyncpa [#allocation9], 0  ;;  %s811_s15 = smov [#allocation2]   ;;  %s693_s19 = scalar_lea.hbm %s939_s0, 1024 }
   0x4   :  { %s19_s16 = sshll.u32 %s811_s15, 4  ;;  %p694_p0 = scmp.ne.s32.totalorder %s939_s0, %s693_s19  ;;  %s20_s16 = int_to_ptr.vmem [resolvable:$true] %s19_s16 }
   0x5   :  { %p697_p1 = scmp.lt.u32.totalorder %s693_s19, %s939_s0 }
   0x7   :  { %p699_p2 = pnand %p697_p1, %p694_p0 }
   0x9   :  { %702 = shalt.err (!%p699_p2)
}
   0xa   :  { %s703_s24 = scalar_lea.vmem %s20_s16, 1024  ;;  %p708_p4 = scmp.lt.s32.totalorder %s20_s16, %s20_s16 }
   0xb   :  { %p704_p3 = scmp.ne.s32.totalorder %s20_s16, %s703_s24  ;;  %p709_p5 = scmp.lt.s32.totalorder %s703_s24, %s703_s24 }
   0xd   :  { %p710_p6 = por %p709_p5, %p708_p4 }
   0xf   :  { %p711_p7 = pnand %p710_p6, %p704_p3 }
  0x11   :  { %714 = shalt.err (!%p711_p7)
}
  0x12   :  { %s812_s25 = smov 256   ;;  %s813_s26 = smov 16  }
  0x13   :  { %25 = dma.hbm_to_vmem [thread:$0]  %s939_s0, 1024, %s20_s16, [#allocation3], %s812_s25, %s812_s25, %s813_s26  }
  0x14   :  { %s814_s29 = smov [#allocation5]   ;;  %s715_s7 = scalar_lea.hbm %s940_s1, 4096 }
  0x15   :  { %s31_s30 = sshll.u32 %s814_s29, 4  ;;  %p716_p8 = scmp.ne.s32.totalorder %s940_s1, %s715_s7  ;;  %s32_s30 = int_to_ptr.vmem [resolvable:$true] %s31_s30 }
  0x16   :  { %p719_p9 = scmp.lt.u32.totalorder %s715_s7, %s940_s1 }
  0x18   :  { %p721_p10 = pnand %p719_p9, %p716_p8 }
  0x1a   :  { %724 = shalt.err (!%p721_p10)
}
  0x1b   :  { %s725_s12 = scalar_lea.vmem %s32_s30, 4096  ;;  %p730_p12 = scmp.lt.s32.totalorder %s32_s30, %s32_s30 }
  0x1c   :  { %p726_p11 = scmp.ne.s32.totalorder %s32_s30, %s725_s12  ;;  %p731_p13 = scmp.lt.s32.totalorder %s725_s12, %s725_s12 }
  0x1e   :  { %p732_p0 = por %p731_p13, %p730_p12 }
  0x20   :  { %p733_p1 = pnand %p732_p0, %p726_p11 }
  0x22   :  { %736 = shalt.err (!%p733_p1)
}
  0x23   :  { %s815_s0 = smov 64   ;;  %s816_s13 = smov 4  }
  0x24   :  { %37 = dma.hbm_to_vmem [thread:$0]  %s940_s1, 4096, %s32_s30, [#allocation6], %s815_s0, %s815_s0, %s816_s13  }
  0x25   :  { %803 = dma.done.wait [#allocation3], 1024  }
  0x26   :  { %804 = vsyncadd [#allocation3], 4294966272 }
  0x27   :  { %805 = dma.done.wait [#allocation6], 4096  }
  0x28   :  { %806 = vsyncadd [#allocation6], 4294963200  ;;  %v649_v0 = vld [vmem:[#allocation5 + $0x40] sm:$0xff]   ;;  %v653_v4 = vld [vmem:[#allocation5 + $0x48] sm:$0xff]   ;;  %vm49_vm0 = vcmask 516096   ;;  %v817_v40 = vmov 0.0  }
  0x29   :  { %v650_v1 = vld [vmem:[#allocation5 + $0xc0] sm:$0xff]   ;;  %581 = vmatprep.subr.bf16.mxu0 %v649_v0  ;;  %v654_v5 = vld [vmem:[#allocation5 + $0xc8] sm:$0xff]   ;;  %v657_v8 = vld [vmem:[#allocation5 + $0x50] sm:$0xff]   ;;  %50 = vst.msk [vmem:[#allocation8] sm:$0x1] %vm49_vm0, %v817_v40  ;;  %vm454_vm1 = vcmask 523264  }
  0x2a   :  { %v651_v2 = vld [vmem:[#allocation5] sm:$0xff]   ;;  %609 = vmatprep.subr.bf16.mxu1 %v650_v1  ;;  %v655_v6 = vld [vmem:[#allocation5 + $0x8] sm:$0xff]   ;;  %v658_v9 = vld [vmem:[#allocation5 + $0xd0] sm:$0xff]   ;;  %51 = vst.msk [vmem:[#allocation10] sm:$0x1] %vm49_vm0, %v817_v40  ;;  %s818_s1 = smov [#allocation7]  }
  0x2b   :  { %v652_v3 = vld [vmem:[#allocation5 + $0x80] sm:$0xff]   ;;  %582 = vmatpush3.bf16.msra.mxu0 %v651_v2  ;;  %v656_v7 = vld [vmem:[#allocation5 + $0x88] sm:$0xff]   ;;  %v659_v10 = vld [vmem:[#allocation5 + $0x10] sm:$0xff]   ;;  %s501_s16 = sshll.u32 %s818_s1, 4  ;;  %s880_s16 = int_to_ptr.vmem [resolvable:$true] %s501_s16 }
  0x2c   :  { %610 = vmatpush3.bf16.msra.mxu1 %v652_v3  ;;  %583 = vmatprep.subr.bf16.mxu0 %v653_v4  ;;  %v660_v11 = vld [vmem:[#allocation5 + $0x90] sm:$0xff]   ;;  %v661_v12 = vld [vmem:[#allocation5 + $0x58] sm:$0xff]   ;;  %v665_v16 = vld [vmem:[#allocation5 + $0x60] sm:$0xff]   ;;  %s737_s17 = scalar_lea.vmem %s880_s16, 512  ;;  %p742_p3 = scmp.lt.s32.totalorder %s880_s16, %s880_s16 }
  0x2d   :  { %611 = vmatprep.subr.bf16.mxu1 %v654_v5  ;;  %v662_v13 = vld [vmem:[#allocation5 + $0xd8] sm:$0xff]   ;;  %v666_v17 = vld [vmem:[#allocation5 + $0xe0] sm:$0xff]   ;;  %v669_v20 = vld [vmem:[#allocation5 + $0x68] sm:$0xff]   ;;  %p738_p2 = scmp.ne.s32.totalorder %s880_s16, %s737_s17  ;;  %p743_p4 = scmp.lt.s32.totalorder %s737_s17, %s737_s17 }
  0x2e   :  { %v663_v14 = vld [vmem:[#allocation5 + $0x18] sm:$0xff]   ;;  %v667_v18 = vld [vmem:[#allocation5 + $0x20] sm:$0xff]   ;;  %v670_v21 = vld [vmem:[#allocation5 + $0xe8] sm:$0xff]  }
  0x2f   :  { %584 = vmatpush3.bf16.msra.mxu0 %v655_v6  ;;  %v664_v15 = vld [vmem:[#allocation5 + $0x98] sm:$0xff]   ;;  %v668_v19 = vld [vmem:[#allocation5 + $0xa0] sm:$0xff]   ;;  %v671_v22 = vld [vmem:[#allocation5 + $0x28] sm:$0xff]   ;;  %p744_p5 = por %p743_p4, %p742_p3 }
  0x30   :  { %612 = vmatpush3.bf16.msra.mxu1 %v656_v7  ;;  %585 = vmatprep.subr.bf16.mxu0 %v657_v8  ;;  %v672_v23 = vld [vmem:[#allocation5 + $0xa8] sm:$0xff]   ;;  %v673_v24 = vld [vmem:[#allocation5 + $0x70] sm:$0xff]   ;;  %v677_v28 = vld [vmem:[#allocation5 + $0x78] sm:$0xff]  }
  0x31   :  { %613 = vmatprep.subr.bf16.mxu1 %v658_v9  ;;  %v674_v25 = vld [vmem:[#allocation5 + $0xf0] sm:$0xff]   ;;  %v678_v29 = vld [vmem:[#allocation5 + $0xf8] sm:$0xff]   ;;  %p745_p6 = pnand %p744_p5, %p738_p2 }
  0x32   :  { %v675_v26 = vld [vmem:[#allocation5 + $0x30] sm:$0xff]   ;;  %v679_v30 = vld [vmem:[#allocation5 + $0x38] sm:$0xff]  }
  0x33   :  { %586 = vmatpush3.bf16.msra.mxu0 %v659_v10  ;;  %v676_v27 = vld [vmem:[#allocation5 + $0xb0] sm:$0xff]   ;;  %v680_v31 = vld [vmem:[#allocation5 + $0xb8] sm:$0xff]  }
  0x34   :  { %614 = vmatpush3.bf16.msra.mxu1 %v660_v11  ;;  %587 = vmatprep.subr.bf16.mxu0 %v661_v12  ;;  %v681_v32 = vld [vmem:[#allocation2] ss:$16 sps:$4 sm:$0xff]   ;;  %v683_v33 = vld [vmem:[#allocation2 + $0x4] ss:$16 sps:$4 sm:$0xff]   ;;  %v684_v34 = vld [vmem:[#allocation2 + $0x8] ss:$16 sps:$4 sm:$0xff]  }
  0x35   :  { %615 = vmatprep.subr.bf16.mxu1 %v662_v13  ;;  %v686_v35 = vld [vmem:[#allocation2 + $0xc] ss:$16 sps:$4 sm:$0xff]   ;;  %388 = vmatprep.mubr.bf16.mxu0 %v683_v33  ;;  %v687_v36 = vld [vmem:[#allocation2 + $0x24] ss:$16 sps:$4 sm:$0xff]   ;;  %v691_v38 = vld [vmem:[#allocation2 + $0x20] ss:$16 sps:$4 sm:$0xff]  }
  0x36   :  { %437 = vmatprep.mubr.bf16.mxu1 %v686_v35  ;;  %v689_v37 = vld [vmem:[#allocation2 + $0x2c] ss:$16 sps:$4 sm:$0xff]   ;;  %v692_v39 = vld [vmem:[#allocation2 + $0x28] ss:$16 sps:$4 sm:$0xff]  }
  0x37   :  { %588 = vmatpush3.bf16.msra.mxu0 %v663_v14 }
  0x38   :  { %616 = vmatpush3.bf16.msra.mxu1 %v664_v15  ;;  %589 = vmatprep.subr.bf16.mxu0 %v665_v16 }
  0x39   :  { %617 = vmatprep.subr.bf16.mxu1 %v666_v17 }
  0x3b   :  { %590 = vmatpush3.bf16.msra.mxu0 %v667_v18 }
  0x3c   :  { %618 = vmatpush3.bf16.msra.mxu1 %v668_v19  ;;  %591 = vmatprep.subr.bf16.mxu0 %v669_v20 }
  0x3d   :  { %619 = vmatprep.subr.bf16.mxu1 %v670_v21 }
  0x3f   :  { %592 = vmatpush3.bf16.msra.mxu0 %v671_v22 }
  0x40   :  { %620 = vmatpush3.bf16.msra.mxu1 %v672_v23  ;;  %593 = vmatprep.subr.bf16.mxu0 %v673_v24 }
  0x41   :  { %621 = vmatprep.subr.bf16.mxu1 %v674_v25 }
  0x43   :  { %594 = vmatpush3.bf16.msra.mxu0 %v675_v26 }
  0x44   :  { %622 = vmatpush3.bf16.msra.mxu1 %v676_v27  ;;  %595 = vmatprep.subr.bf16.mxu0 %v677_v28 }
  0x45   :  { %623 = vmatprep.subr.bf16.mxu1 %v678_v29 }
  0x47   :  { %596 = vmatpush3.bf16.msra.mxu0 %v679_v30 }
  0x48   :  { %624 = vmatpush3.bf16.msra.mxu1 %v680_v31 }
  0x4a   :  { %389 = vmatmul.mubr.bf16.vlgmr.msra.gmra.mrb[0].mxu0 %v681_v32 }
  0x4b   :  { %438 = vmatmul.mubr.bf16.vlgmr.msra.gmra.mrb[0].mxu1 %v684_v34  ;;  %396 = vmatprep.mubr.bf16.mxu0 %v687_v36 }
  0x4c   :  { %445 = vmatprep.mubr.bf16.mxu1 %v689_v37 }
  0x52   :  { %397 = vmatmul.mubr.bf16.gmra.mrb[4].mxu0 %v691_v38 }
  0x53   :  { %446 = vmatmul.mubr.bf16.gmra.mrb[4].mxu1 %v692_v39 }
 0x11d   :  { %v597_v41 = vpop.f32.mrb[0].mxu0 }
 0x11e   :  { %v625_v42 = vpop.f32.mrb[0].mxu1  ;;  %v598_v43 = vpop.f32.mrb[1].mxu0 }
 0x11f   :  { %v599_v44 = vadd.f32 %v598_v43, %v597_v41  ;;  %v626_v45 = vpop.f32.mrb[1].mxu1  ;;  %v600_v46 = vpop.f32.mrb[2].mxu0 }
 0x120   :  { %v627_v47 = vadd.f32 %v626_v45, %v625_v42  ;;  %v628_v48 = vpop.f32.mrb[2].mxu1  ;;  %v601_v49 = vpop.f32.mrb[3].mxu0 }
 0x121   :  { %v602_v50 = vadd.f32 %v601_v49, %v600_v46  ;;  %v629_v51 = vpop.f32.mrb[3].mxu1 }
 0x122   :  { %v440_v52 = vadd.f32 %v627_v47, %v599_v44  ;;  %v630_v53 = vadd.f32 %v629_v51, %v628_v48 }
 0x124   :  { %455 = vst.msk [vmem:[#allocation7] sm:$0xff] %vm454_vm1, %v440_v52  ;;  %v477_v54 = vmul.f32 %v440_v52, %v440_v52  ;;  %v443_v55 = vadd.f32 %v630_v53, %v602_v50  ;;  %v460_v57 = vsel %vm454_vm1, %v440_v52, 0.0 }
 0x125   :  { %v603_v56 = vpop.f32.mrb[4].mxu0 }
 0x126   :  { %456 = vst.msk [vmem:[#allocation7 + $0x8] sm:$0xff] %vm454_vm1, %v443_v55  ;;  %v461_v58 = vsel %vm454_vm1, %v443_v55, 0.0  ;;  %v478_v59 = vmul.f32 %v443_v55, %v443_v55  ;;  %v631_v60 = vpop.f32.mrb[4].mxu1  ;;  %v604_v61 = vpop.f32.mrb[5].mxu0  ;;  %v481_v2 = vsel %vm454_vm1, %v477_v54, 0.0 }
 0x127   :  { %v462_v62 = vadd.f32 %v461_v58, %v460_v57  ;;  %v605_v63 = vadd.f32 %v604_v61, %v603_v56  ;;  %v632_v0 = vpop.f32.mrb[5].mxu1  ;;  %v606_v1 = vpop.f32.mrb[6].mxu0 }
 0x128   :  { %v482_v3 = vsel %vm454_vm1, %v478_v59, 0.0  ;;  %v633_v4 = vadd.f32 %v632_v0, %v631_v60  ;;  %v634_v5 = vpop.f32.mrb[6].mxu1  ;;  %v607_v6 = vpop.f32.mrb[7].mxu0 }
 0x129   :  { %v483_v7 = vadd.f32 %v482_v3, %v481_v2  ;;  %v608_v8 = vadd.f32 %v607_v6, %v606_v1  ;;  %v635_v9 = vpop.f32.mrb[7].mxu1 }
 0x12a   :  { %v448_v10 = vadd.f32 %v633_v4, %v605_v63  ;;  %v636_v11 = vadd.f32 %v635_v9, %v634_v5 }
 0x12c   :  { %457 = vst.msk [vmem:[#allocation7 + $0x10] sm:$0xff] %vm454_vm1, %v448_v10  ;;  %v463_v12 = vsel %vm454_vm1, %v448_v10, 0.0  ;;  %v479_v13 = vmul.f32 %v448_v10, %v448_v10  ;;  %v451_v14 = vadd.f32 %v636_v11, %v608_v8 }
 0x12d   :  { %v464_v15 = vadd.f32 %v463_v12, %v462_v62 }
 0x12e   :  { %v484_v16 = vsel %vm454_vm1, %v479_v13, 0.0  ;;  %458 = vst.msk [vmem:[#allocation7 + $0x18] sm:$0xff] %vm454_vm1, %v451_v14  ;;  %v465_v17 = vsel %vm454_vm1, %v451_v14, 0.0  ;;  %v480_v18 = vmul.f32 %v451_v14, %v451_v14 }
 0x12f   :  { %v485_v19 = vadd.f32 %v484_v16, %v483_v7  ;;  %v466_v20 = vadd.f32 %v465_v17, %v464_v15 }
 0x130   :  { %748 = shalt.err (!%p745_p6)
}
 0x131   :  { %s749_s20 = scalar_lea.hbm %s941_s2, 512 }
 0x132   :  { %p750_p7 = scmp.ne.s32.totalorder %s941_s2, %s749_s20  ;;  %p753_p8 = scmp.lt.u32.totalorder %s749_s20, %s941_s2 }
 0x134   :  { %p755_p9 = pnand %p753_p8, %p750_p7 }
 0x136   :  { %758 = shalt.err (!%p755_p9)
}
 0x137   :  { %s819_s25 = smov 128   ;;  %s820_s26 = smov 8   ;;  %v486_v21 = vsel %vm454_vm1, %v480_v18, 0.0  ;;  %v467_v22 = vrot.slane %v466_v20, 4  ;;  %v459_v32 = vld [vmem:[#allocation8] sm:$0x1] }
 0x138   :  { %507 = dma.vmem_to_hbm [thread:$0]  %s880_s16, 512, %s941_s2, [#allocation4], %s819_s25, %s819_s25, %s820_s26   ;;  %v487_v23 = vadd.f32 %v486_v21, %v485_v19  ;;  %v476_v35 = vld [vmem:[#allocation10] sm:$0x1] }
 0x139   :  { %v468_v24 = vadd.f32 %v467_v22, %v466_v20  ;;  %s821_s29 = smov [#allocation8]   ;;  %s822_s5 = smov [#allocation10]  }
 0x13a   :  { %v488_v25 = vrot.slane %v487_v23, 4  ;;  %s514_s30 = sshll.u32 %s821_s29, 4  ;;  %s524_s2 = sshll.u32 %s822_s5, 4  ;;  %s515_s30 = int_to_ptr.vmem [resolvable:$true] %s514_s30  ;;  %s906_s2 = int_to_ptr.vmem [resolvable:$true] %s524_s2 }
 0x13b   :  { %v469_v26 = vrot.slane %v468_v24, 2  ;;  %s759_s6 = scalar_lea.vmem %s515_s30, 16  ;;  %s763_s7 = scalar_lea.vmem %s515_s30, 32 }
 0x13c   :  { %v489_v27 = vadd.f32 %v488_v25, %v487_v23  ;;  %p760_p10 = scmp.ne.s32.totalorder %s515_s30, %s759_s6  ;;  %p764_p11 = scmp.lt.s32.totalorder %s515_s30, %s515_s30 }
 0x13d   :  { %v470_v28 = vadd.f32 %v469_v26, %v468_v24  ;;  %p765_p12 = scmp.lt.s32.totalorder %s763_s7, %s759_s6 }
 0x13e   :  { %v490_v29 = vrot.slane %v489_v27, 2 }
 0x13f   :  { %v471_v31 = vrot.slane %v470_v28, 1  ;;  %p766_p13 = por %p765_p12, %p764_p11 }
 0x140   :  { %v491_v30 = vadd.f32 %v490_v29, %v489_v27 }
 0x141   :  { %v472_v33 = vadd.f32 %v471_v31, %v470_v28  ;;  %p767_p0 = pnand %p766_p13, %p760_p10 }
 0x142   :  { %v492_v34 = vrot.slane %v491_v30, 1 }
 0x143   :  { %v473_v36 = vadd.f32 %v472_v33, %v459_v32 }
 0x144   :  { %v493_v37 = vadd.f32 %v492_v34, %v491_v30 }
 0x145   :  { %475 = vst.msk [vmem:[#allocation8] sm:$0x1] %vm49_vm0, %v473_v36 }
 0x146   :  { %v494_v38 = vadd.f32 %v493_v37, %v476_v35 }
 0x147   :  { %770 = shalt.err (!%p767_p0)
}
 0x148   :  { %s771_s10 = scalar_lea.hbm %s942_s3, 16 }
 0x149   :  { %p772_p1 = scmp.ne.s32.totalorder %s942_s3, %s771_s10  ;;  %p775_p2 = scmp.lt.u32.totalorder %s771_s10, %s942_s3 }
 0x14b   :  { %p777_p3 = pnand %p775_p2, %p772_p1 }
 0x14d   :  { %780 = shalt.err (!%p777_p3)
}
 0x14e   :  { %517 = dma.vmem_to_hbm [thread:$0]  %s515_s30, 16, %s942_s3, [#allocation9]   ;;  %495 = vst.msk [vmem:[#allocation10] sm:$0x1] %vm49_vm0, %v494_v38 }
 0x14f   :  { %s781_s1 = scalar_lea.vmem %s906_s2, 16  ;;  %s785_s16 = scalar_lea.vmem %s906_s2, 32 }
 0x150   :  { %p782_p4 = scmp.ne.s32.totalorder %s906_s2, %s781_s1  ;;  %p786_p5 = scmp.lt.s32.totalorder %s906_s2, %s906_s2 }
 0x151   :  { %p787_p6 = scmp.lt.s32.totalorder %s785_s16, %s781_s1 }
 0x153   :  { %p788_p7 = por %p787_p6, %p786_p5 }
 0x155   :  { %p789_p8 = pnand %p788_p7, %p782_p4 }
 0x157   :  { %792 = shalt.err (!%p789_p8)
}
 0x158   :  { %s793_s19 = scalar_lea.hbm %s943_s4, 16 }
 0x159   :  { %p794_p9 = scmp.ne.s32.totalorder %s943_s4, %s793_s19  ;;  %p797_p10 = scmp.lt.u32.totalorder %s793_s19, %s943_s4 }
 0x15b   :  { %p799_p11 = pnand %p797_p10, %p794_p9 }
 0x15d   :  { %802 = shalt.err (!%p799_p11)
}
 0x15e   :  { %527 = dma.vmem_to_hbm [thread:$0]  %s906_s2, 16, %s943_s4, [#allocation9]  }
 0x15f   :  { %807 = dma.done.wait [#allocation4], 512  }
 0x160   :  { %808 = vsyncadd [#allocation4], 4294966784 }
 0x161   :  { %809 = dma.done.wait [#allocation9], 32  }
 0x162   :  { %810 = vsyncadd [#allocation9], 4294967264 }
 0x163   :  { %537 = vsyncpa [#allocation3], 1 }
 0x164   :  { %538 = vsyncpa [#allocation6], 1 }
 0x165   :  { %539 = vsyncpa [#allocation4], 1 }
 0x166   :  { %540 = vsyncpa [#allocation9], 1 }

// kernel: discriminator_dc_forward.14
= control target key start
LH: loop header
LB: loop body
LE: loop exit
PB: predicated region body
PF: predicated region fallthrough
CT: control target
= control target key end

     0   :  { %8 = vsyncpa [#allocation3], 0  ;;  %s306_s0 = inlined_call_operand.hbm [shape: f32[32,64], index: 0, kind: input, shape index: {}]   ;;  %s307_s1 = inlined_call_operand.hbm [shape: f32[1,64], index: 1, kind: input, shape index: {}]   ;;  %s308_s2 = inlined_call_operand.hbm [shape: f32[1,64], index: 2, kind: input, shape index: {}]   ;;  %s309_s3 = inlined_call_operand.hbm [shape: f32[32,64], index: 3, kind: output, shape index: {}]  }
   0x1   :  { %9 = vsyncpa [#allocation6], 0 }
   0x2   :  { %10 = vsyncpa [#allocation4], 0  ;;  %s215_s12 = smov [#allocation5]   ;;  %s216_s14 = smov [#allocation2]  }
   0x3   :  { %s29_s13 = sshll.u32 %s215_s12, 4  ;;  %s16_s15 = sshll.u32 %s216_s14, 4  ;;  %s30_s13 = int_to_ptr.vmem [resolvable:$true] %s29_s13  ;;  %s241_s15 = int_to_ptr.vmem [resolvable:$true] %s16_s15 }
   0x4   :  { %s121_s18 = scalar_lea.hbm %s307_s1, 16 }
   0x5   :  { %p122_p0 = scmp.ne.s32.totalorder %s307_s1, %s121_s18  ;;  %p125_p1 = scmp.lt.u32.totalorder %s121_s18, %s307_s1 }
   0x7   :  { %p127_p2 = pnand %p125_p1, %p122_p0 }
   0x9   :  { %130 = shalt.err (!%p127_p2)
}
   0xa   :  { %s131_s23 = scalar_lea.vmem %s30_s13, 16  ;;  %s135_s24 = scalar_lea.vmem %s30_s13, 32 }
   0xb   :  { %p132_p3 = scmp.ne.s32.totalorder %s30_s13, %s131_s23  ;;  %p136_p4 = scmp.lt.s32.totalorder %s30_s13, %s30_s13 }
   0xc   :  { %p137_p5 = scmp.lt.s32.totalorder %s135_s24, %s131_s23 }
   0xe   :  { %p138_p6 = por %p137_p5, %p136_p4 }
  0x10   :  { %p139_p7 = pnand %p138_p6, %p132_p3 }
  0x12   :  { %142 = shalt.err (!%p139_p7)
}
  0x13   :  { %32 = dma.hbm_to_vmem [thread:$0]  %s307_s1, 16, %s30_s13, [#allocation6]  }
  0x14   :  { %s143_s29 = scalar_lea.hbm %s306_s0, 512 }
  0x15   :  { %p144_p8 = scmp.ne.s32.totalorder %s306_s0, %s143_s29  ;;  %p147_p9 = scmp.lt.u32.totalorder %s143_s29, %s306_s0 }
  0x17   :  { %p149_p10 = pnand %p147_p9, %p144_p8 }
  0x19   :  { %152 = shalt.err (!%p149_p10)
}
  0x1a   :  { %s153_s7 = scalar_lea.vmem %s241_s15, 512  ;;  %p158_p12 = scmp.lt.s32.totalorder %s241_s15, %s241_s15 }
  0x1b   :  { %p154_p11 = scmp.ne.s32.totalorder %s241_s15, %s153_s7  ;;  %p159_p13 = scmp.lt.s32.totalorder %s153_s7, %s153_s7 }
  0x1d   :  { %p160_p0 = por %p159_p13, %p158_p12 }
  0x1f   :  { %p161_p1 = pnand %p160_p0, %p154_p11 }
  0x21   :  { %164 = shalt.err (!%p161_p1)
}
  0x22   :  { %s217_s1 = smov 128   ;;  %s218_s8 = smov 8  }
  0x23   :  { %22 = dma.hbm_to_vmem [thread:$0]  %s306_s0, 512, %s241_s15, [#allocation3], %s217_s1, %s217_s1, %s218_s8  }
  0x24   :  { %s219_s11 = smov [#allocation7]   ;;  %s165_s16 = scalar_lea.hbm %s308_s2, 16 }
  0x25   :  { %s39_s12 = sshll.u32 %s219_s11, 4  ;;  %p166_p2 = scmp.ne.s32.totalorder %s308_s2, %s165_s16  ;;  %s40_s12 = int_to_ptr.vmem [resolvable:$true] %s39_s12 }
  0x26   :  { %p169_p3 = scmp.lt.u32.totalorder %s165_s16, %s308_s2 }
  0x28   :  { %p171_p4 = pnand %p169_p3, %p166_p2 }
  0x2a   :  { %174 = shalt.err (!%p171_p4)
}
  0x2b   :  { %s175_s21 = scalar_lea.vmem %s40_s12, 16  ;;  %s179_s0 = scalar_lea.vmem %s40_s12, 32 }
  0x2c   :  { %p176_p5 = scmp.ne.s32.totalorder %s40_s12, %s175_s21  ;;  %p180_p6 = scmp.lt.s32.totalorder %s40_s12, %s40_s12 }
  0x2d   :  { %p181_p7 = scmp.lt.s32.totalorder %s179_s0, %s175_s21 }
  0x2f   :  { %p182_p8 = por %p181_p7, %p180_p6 }
  0x31   :  { %p183_p9 = pnand %p182_p8, %p176_p5 }
  0x33   :  { %186 = shalt.err (!%p183_p9)
}
  0x34   :  { %42 = dma.hbm_to_vmem [thread:$0]  %s308_s2, 16, %s40_s12, [#allocation6]  }
  0x35   :  { %209 = dma.done.wait [#allocation3], 512  }
  0x36   :  { %210 = vsyncadd [#allocation3], 4294966784 }
  0x37   :  { %211 = dma.done.wait [#allocation6], 32  }
  0x38   :  { %212 = vsyncadd [#allocation6], 4294967264  ;;  %v52_v0 = vld [vmem:[#allocation2] sm:$0xff]  ;;  %v53_v4 = vld [vmem:[#allocation2 + $0x8] sm:$0xff]  ;;  %vm90_vm1 = vcmask 523264   ;;  %s220_s2 = smov [#allocation8]  }
  0x39   :  { %v113_v1 = vld [vmem:[#allocation5] ss:$0 sm:$0xff]  ;;  %v114_v2 = vld [vmem:[#allocation7] ss:$0 sm:$0xff]  ;;  %v54_v5 = vld [vmem:[#allocation2 + $0x10] sm:$0xff]  ;;  %s100_s23 = sshll.u32 %s220_s2, 4  ;;  %s101_s23 = int_to_ptr.vmem [resolvable:$true] %s100_s23 }
  0x3a   :  { %v63_v3 = vmul.f32 %v113_v1, %v52_v0  ;;  %v55_v6 = vld [vmem:[#allocation2 + $0x18] sm:$0xff]  ;;  %v64_v7 = vmul.f32 %v113_v1, %v53_v4  ;;  %v65_v8 = vmul.f32 %v113_v1, %v54_v5  ;;  %s187_s24 = scalar_lea.vmem %s101_s23, 512  ;;  %p192_p11 = scmp.lt.s32.totalorder %s101_s23, %s101_s23 }
  0x3b   :  { %v66_v9 = vmul.f32 %v113_v1, %v55_v6  ;;  %p188_p10 = scmp.ne.s32.totalorder %s101_s23, %s187_s24  ;;  %p193_p12 = scmp.lt.s32.totalorder %s187_s24, %s187_s24 }
  0x3c   :  { %v74_v10 = vadd.f32 %v114_v2, %v63_v3  ;;  %v75_v11 = vadd.f32 %v114_v2, %v64_v7  ;;  %v76_v12 = vadd.f32 %v114_v2, %v65_v8 }
  0x3d   :  { %v77_v13 = vadd.f32 %v114_v2, %v66_v9  ;;  %p194_p13 = por %p193_p12, %p192_p11 }
  0x3e   :  { %vm78_vm0 = vcmp.gt.f32.partialorder %v74_v10, 0.0  ;;  %v82_v14 = vmul.f32 0.2, %v74_v10  ;;  %vm79_vm2 = vcmp.gt.f32.partialorder %v75_v11, 0.0  ;;  %v83_v15 = vmul.f32 0.2, %v75_v11 }
  0x3f   :  { %vm80_vm3 = vcmp.gt.f32.partialorder %v76_v12, 0.0  ;;  %v84_v16 = vmul.f32 0.2, %v76_v12  ;;  %vm81_vm4 = vcmp.gt.f32.partialorder %v77_v13, 0.0  ;;  %v85_v18 = vmul.f32 0.2, %v77_v13  ;;  %p195_p0 = pnand %p194_p13, %p188_p10 }
  0x40   :  { %v86_v17 = vsel %vm78_vm0, %v74_v10, %v82_v14  ;;  %v87_v19 = vsel %vm79_vm2, %v75_v11, %v83_v15 }
  0x41   :  { %91 = vst.msk [vmem:[#allocation8] sm:$0xff] %vm90_vm1, %v86_v17  ;;  %v88_v20 = vsel %vm80_vm3, %v76_v12, %v84_v16  ;;  %92 = vst.msk [vmem:[#allocation8 + $0x8] sm:$0xff] %vm90_vm1, %v87_v19  ;;  %v89_v21 = vsel %vm81_vm4, %v77_v13, %v85_v18 }
  0x42   :  { %93 = vst.msk [vmem:[#allocation8 + $0x10] sm:$0xff] %vm90_vm1, %v88_v20  ;;  %94 = vst.msk [vmem:[#allocation8 + $0x18] sm:$0xff] %vm90_vm1, %v89_v21 }
  0x43   :  { %198 = shalt.err (!%p195_p0)
}
  0x44   :  { %s199_s27 = scalar_lea.hbm %s309_s3, 512 }
  0x45   :  { %p200_p1 = scmp.ne.s32.totalorder %s309_s3, %s199_s27  ;;  %p203_p2 = scmp.lt.u32.totalorder %s199_s27, %s309_s3 }
  0x47   :  { %p205_p3 = pnand %p203_p2, %p200_p1 }
  0x49   :  { %208 = shalt.err (!%p205_p3)
}
  0x4a   :  { %106 = dma.vmem_to_hbm [thread:$0]  %s101_s23, 512, %s309_s3, [#allocation4], %s217_s1, %s217_s1, %s218_s8  }
  0x4b   :  { %213 = dma.done.wait [#allocation4], 512  }
  0x4c   :  { %214 = vsyncadd [#allocation4], 4294966784 }
  0x4d   :  { %110 = vsyncpa [#allocation3], 1 }
  0x4e   :  { %111 = vsyncpa [#allocation6], 1 }
  0x4f   :  { %112 = vsyncpa [#allocation4], 1 }

// kernel: discriminator_dc_forward.15
= control target key start
LH: loop header
LB: loop body
LE: loop exit
PB: predicated region body
PF: predicated region fallthrough
CT: control target
= control target key end

     0   :  { %s1154_s0 = inlined_call_operand.hbm [shape: bf16[8,1024], index: 0, kind: input, shape index: {}]   ;;  %s1155_s1 = inlined_call_operand.hbm [shape: bf16[1024,1], index: 1, kind: input, shape index: {}]   ;;  %s1156_s2 = inlined_call_operand.<no memory space> [shape: f32[1,1], index: 2, kind: input, shape index: {}]   ;;  %s1157_s3 = inlined_call_operand.hbm [shape: f32[8,1], index: 3, kind: output, shape index: {}]  }
   0x1   :  { %v8_v0 = vstv %s1156_s2 }
   0x2   :  { %9 = vst [vmem:[#allocation2] sm:$0x1] %v8_v0 }
   0x3   :  { %10 = vsyncpa [#allocation4], 0 }
   0x4   :  { %11 = vsyncpa [#allocation7], 0 }
   0x5   :  { %12 = vsyncpa [#allocation5], 0  ;;  %s1083_s14 = smov [#allocation3]   ;;  %s1084_s16 = smov [#allocation6]  }
   0x6   :  { %s19_s15 = sshll.u32 %s1083_s14, 4  ;;  %s28_s17 = sshll.u32 %s1084_s16, 4  ;;  %s20_s15 = int_to_ptr.vmem [resolvable:$true] %s19_s15  ;;  %s1111_s17 = int_to_ptr.vmem [resolvable:$true] %s28_s17 }
   0x7   :  { %s1011_s20 = scalar_lea.hbm %s1154_s0, 512 }
   0x8   :  { %p1012_p0 = scmp.ne.s32.totalorder %s1154_s0, %s1011_s20  ;;  %p1015_p1 = scmp.lt.u32.totalorder %s1011_s20, %s1154_s0 }
   0xa   :  { %p1017_p2 = pnand %p1015_p1, %p1012_p0 }
   0xc   :  { %1020 = shalt.err (!%p1017_p2)
}
   0xd   :  { %s1021_s24 = scalar_lea.vmem %s20_s15, 512  ;;  %p1026_p4 = scmp.lt.s32.totalorder %s20_s15, %s20_s15 }
   0xe   :  { %p1022_p3 = scmp.ne.s32.totalorder %s20_s15, %s1021_s24  ;;  %p1027_p5 = scmp.lt.s32.totalorder %s1021_s24, %s1021_s24 }
  0x10   :  { %p1028_p6 = por %p1027_p5, %p1026_p4 }
  0x12   :  { %p1029_p7 = pnand %p1028_p6, %p1022_p3 }
  0x14   :  { %1032 = shalt.err (!%p1029_p7)
}
  0x15   :  { %22 = dma.hbm_to_vmem [thread:$0]  %s1154_s0, 512, %s20_s15, [#allocation4]  }
  0x16   :  { %s1033_s29 = scalar_lea.hbm %s1155_s1, 8192 }
  0x17   :  { %p1034_p8 = scmp.ne.s32.totalorder %s1155_s1, %s1033_s29  ;;  %p1037_p9 = scmp.lt.u32.totalorder %s1033_s29, %s1155_s1 }
  0x19   :  { %p1039_p10 = pnand %p1037_p9, %p1034_p8 }
  0x1b   :  { %1042 = shalt.err (!%p1039_p10)
}
  0x1c   :  { %s1043_s7 = scalar_lea.vmem %s1111_s17, 8192  ;;  %p1048_p12 = scmp.lt.s32.totalorder %s1111_s17, %s1111_s17 }
  0x1d   :  { %p1044_p11 = scmp.ne.s32.totalorder %s1111_s17, %s1043_s7  ;;  %p1049_p13 = scmp.lt.s32.totalorder %s1043_s7, %s1043_s7 }
  0x1f   :  { %p1050_p0 = por %p1049_p13, %p1048_p12 }
  0x21   :  { %p1051_p1 = pnand %p1050_p0, %p1044_p11 }
  0x23   :  { %1054 = shalt.err (!%p1051_p1)
}
  0x24   :  { %s1085_s0 = smov 64   ;;  %s1086_s8 = smov 4  }
  0x25   :  { %34 = dma.hbm_to_vmem [thread:$0]  %s1155_s1, 8192, %s1111_s17, [#allocation7], %s1085_s0, %s1085_s0, %s1086_s8  }
  0x26   :  { %1077 = dma.done.wait [#allocation4], 512  }
  0x27   :  { %1078 = vsyncadd [#allocation4], 4294966784 }
  0x28   :  { %1079 = dma.done.wait [#allocation7], 8192  }
  0x29   :  { %1080 = vsyncadd [#allocation7], 4294959104  ;;  %v939_v1 = vld [vmem:[#allocation6 + $0x40] sm:$0xff]   ;;  %v943_v5 = vld [vmem:[#allocation6 + $0x48] sm:$0xff]   ;;  %s1087_s1 = smov [#allocation8]   ;;  %vm755_vm0 = vcmask 7168  }
  0x2a   :  { %v940_v2 = vld [vmem:[#allocation6 + $0xc0] sm:$0xff]   ;;  %846 = vmatprep.subr.bf16.mxu0 %v939_v1  ;;  %v944_v6 = vld [vmem:[#allocation6 + $0xc8] sm:$0xff]   ;;  %v947_v9 = vld [vmem:[#allocation6 + $0x50] sm:$0xff]   ;;  %s763_s11 = sshll.u32 %s1087_s1, 4  ;;  %s764_s11 = int_to_ptr.vmem [resolvable:$true] %s763_s11 }
  0x2b   :  { %v941_v3 = vld [vmem:[#allocation6] sm:$0xff]   ;;  %868 = vmatprep.subr.bf16.mxu1 %v940_v2  ;;  %v945_v7 = vld [vmem:[#allocation6 + $0x8] sm:$0xff]   ;;  %v948_v10 = vld [vmem:[#allocation6 + $0xd0] sm:$0xff]   ;;  %s1055_s12 = scalar_lea.vmem %s764_s11, 128  ;;  %p1060_p3 = scmp.lt.s32.totalorder %s764_s11, %s764_s11 }
  0x2c   :  { %v942_v4 = vld [vmem:[#allocation6 + $0x80] sm:$0xff]   ;;  %847 = vmatpush3.bf16.msra.mxu0 %v941_v3  ;;  %v946_v8 = vld [vmem:[#allocation6 + $0x88] sm:$0xff]   ;;  %v949_v11 = vld [vmem:[#allocation6 + $0x10] sm:$0xff]   ;;  %p1056_p2 = scmp.ne.s32.totalorder %s764_s11, %s1055_s12  ;;  %p1061_p4 = scmp.lt.s32.totalorder %s1055_s12, %s1055_s12 }
  0x2d   :  { %869 = vmatpush3.bf16.msra.mxu1 %v942_v4  ;;  %848 = vmatprep.subr.bf16.mxu0 %v943_v5  ;;  %v950_v12 = vld [vmem:[#allocation6 + $0x90] sm:$0xff]   ;;  %v951_v13 = vld [vmem:[#allocation6 + $0x58] sm:$0xff]   ;;  %v955_v17 = vld [vmem:[#allocation6 + $0x60] sm:$0xff]  }
  0x2e   :  { %870 = vmatprep.subr.bf16.mxu1 %v944_v6  ;;  %v952_v14 = vld [vmem:[#allocation6 + $0xd8] sm:$0xff]   ;;  %v956_v18 = vld [vmem:[#allocation6 + $0xe0] sm:$0xff]   ;;  %v959_v21 = vld [vmem:[#allocation6 + $0x68] sm:$0xff]   ;;  %p1062_p5 = por %p1061_p4, %p1060_p3 }
  0x2f   :  { %v953_v15 = vld [vmem:[#allocation6 + $0x18] sm:$0xff]   ;;  %v957_v19 = vld [vmem:[#allocation6 + $0x20] sm:$0xff]   ;;  %v960_v22 = vld [vmem:[#allocation6 + $0xe8] sm:$0xff]  }
  0x30   :  { %849 = vmatpush3.bf16.msra.mxu0 %v945_v7  ;;  %v954_v16 = vld [vmem:[#allocation6 + $0x98] sm:$0xff]   ;;  %v958_v20 = vld [vmem:[#allocation6 + $0xa0] sm:$0xff]   ;;  %v961_v23 = vld [vmem:[#allocation6 + $0x28] sm:$0xff]   ;;  %p1063_p6 = pnand %p1062_p5, %p1056_p2 }
  0x31   :  { %871 = vmatpush3.bf16.msra.mxu1 %v946_v8  ;;  %850 = vmatprep.subr.bf16.mxu0 %v947_v9  ;;  %v962_v24 = vld [vmem:[#allocation6 + $0xa8] sm:$0xff]   ;;  %v963_v25 = vld [vmem:[#allocation6 + $0x70] sm:$0xff]   ;;  %v967_v29 = vld [vmem:[#allocation6 + $0x78] sm:$0xff]  }
  0x32   :  { %872 = vmatprep.subr.bf16.mxu1 %v948_v10  ;;  %v964_v26 = vld [vmem:[#allocation6 + $0xf0] sm:$0xff]   ;;  %v968_v30 = vld [vmem:[#allocation6 + $0xf8] sm:$0xff]   ;;  %v44_v33 = vld [vmem:[#allocation3] sm:$0xff] }
  0x33   :  { %v965_v27 = vld [vmem:[#allocation6 + $0x30] sm:$0xff]   ;;  %v969_v31 = vld [vmem:[#allocation6 + $0x38] sm:$0xff]   ;;  %v45_v34 = vld [vmem:[#allocation3 + $0x8] sm:$0xff]  ;;  %v774_v35 = vcombine.low %v44_v33, %v44_v33  ;;  %v775_v36 = vcombine.high %v44_v33, %v44_v33 }
  0x34   :  { %851 = vmatpush3.bf16.msra.mxu0 %v949_v11  ;;  %v966_v28 = vld [vmem:[#allocation6 + $0xb0] sm:$0xff]   ;;  %v970_v32 = vld [vmem:[#allocation6 + $0xb8] sm:$0xff]   ;;  %v776_v37 = vcombine.low %v45_v34, %v45_v34  ;;  %v777_v38 = vcombine.high %v45_v34, %v45_v34  ;;  %v975_v39 = vld [vmem:[#allocation6 + $0x140] sm:$0xff]  }
  0x35   :  { %873 = vmatpush3.bf16.msra.mxu1 %v950_v12  ;;  %852 = vmatprep.subr.bf16.mxu0 %v951_v13  ;;  %v976_v40 = vld [vmem:[#allocation6 + $0x1c0] sm:$0xff]   ;;  %v979_v43 = vld [vmem:[#allocation6 + $0x148] sm:$0xff]   ;;  %v983_v47 = vld [vmem:[#allocation6 + $0x150] sm:$0xff]  }
  0x36   :  { %874 = vmatprep.subr.bf16.mxu1 %v952_v14  ;;  %627 = vmatprep.mubr.bf16.mxu0 %v775_v36  ;;  %v977_v41 = vld [vmem:[#allocation6 + $0x100] sm:$0xff]   ;;  %v980_v44 = vld [vmem:[#allocation6 + $0x1c8] sm:$0xff]   ;;  %v984_v48 = vld [vmem:[#allocation6 + $0x1d0] sm:$0xff]  }
  0x37   :  { %667 = vmatprep.mubr.bf16.mxu1 %v777_v38  ;;  %v978_v42 = vld [vmem:[#allocation6 + $0x180] sm:$0xff]   ;;  %v981_v45 = vld [vmem:[#allocation6 + $0x108] sm:$0xff]   ;;  %v985_v49 = vld [vmem:[#allocation6 + $0x110] sm:$0xff]  }
  0x38   :  { %853 = vmatpush3.bf16.msra.mxu0 %v953_v15  ;;  %v982_v46 = vld [vmem:[#allocation6 + $0x188] sm:$0xff]   ;;  %v986_v50 = vld [vmem:[#allocation6 + $0x190] sm:$0xff]   ;;  %v987_v51 = vld [vmem:[#allocation6 + $0x158] sm:$0xff]  }
  0x39   :  { %875 = vmatpush3.bf16.msra.mxu1 %v954_v16  ;;  %854 = vmatprep.subr.bf16.mxu0 %v955_v17  ;;  %v988_v52 = vld [vmem:[#allocation6 + $0x1d8] sm:$0xff]   ;;  %v991_v55 = vld [vmem:[#allocation6 + $0x160] sm:$0xff]   ;;  %v995_v59 = vld [vmem:[#allocation6 + $0x168] sm:$0xff]  }
  0x3a   :  { %876 = vmatprep.subr.bf16.mxu1 %v956_v18  ;;  %v989_v53 = vld [vmem:[#allocation6 + $0x118] sm:$0xff]   ;;  %v992_v56 = vld [vmem:[#allocation6 + $0x1e0] sm:$0xff]   ;;  %v996_v60 = vld [vmem:[#allocation6 + $0x1e8] sm:$0xff]  }
  0x3b   :  { %v990_v54 = vld [vmem:[#allocation6 + $0x198] sm:$0xff]   ;;  %v993_v57 = vld [vmem:[#allocation6 + $0x120] sm:$0xff]   ;;  %v997_v61 = vld [vmem:[#allocation6 + $0x128] sm:$0xff]  }
  0x3c   :  { %855 = vmatpush3.bf16.msra.mxu0 %v957_v19  ;;  %v994_v58 = vld [vmem:[#allocation6 + $0x1a0] sm:$0xff]   ;;  %v998_v62 = vld [vmem:[#allocation6 + $0x1a8] sm:$0xff]   ;;  %v999_v63 = vld [vmem:[#allocation6 + $0x170] sm:$0xff]  }
  0x3d   :  { %877 = vmatpush3.bf16.msra.mxu1 %v958_v20  ;;  %856 = vmatprep.subr.bf16.mxu0 %v959_v21  ;;  %v1000_v0 = vld [vmem:[#allocation6 + $0x1f0] sm:$0xff]   ;;  %v1003_v3 = vld [vmem:[#allocation6 + $0x178] sm:$0xff]  }
  0x3e   :  { %878 = vmatprep.subr.bf16.mxu1 %v960_v22  ;;  %v1001_v1 = vld [vmem:[#allocation6 + $0x130] sm:$0xff]   ;;  %v1004_v4 = vld [vmem:[#allocation6 + $0x1f8] sm:$0xff]  }
  0x3f   :  { %v1002_v2 = vld [vmem:[#allocation6 + $0x1b0] sm:$0xff]   ;;  %v1005_v5 = vld [vmem:[#allocation6 + $0x138] sm:$0xff]  }
  0x40   :  { %857 = vmatpush3.bf16.msra.mxu0 %v961_v23  ;;  %v1006_v6 = vld [vmem:[#allocation6 + $0x1b8] sm:$0xff]   ;;  %v46_v7 = vld [vmem:[#allocation3 + $0x10] sm:$0xff] }
  0x41   :  { %879 = vmatpush3.bf16.msra.mxu1 %v962_v24  ;;  %858 = vmatprep.subr.bf16.mxu0 %v963_v25  ;;  %v778_v8 = vcombine.low %v46_v7, %v46_v7  ;;  %v779_v9 = vcombine.high %v46_v7, %v46_v7  ;;  %v47_v10 = vld [vmem:[#allocation3 + $0x18] sm:$0xff] }
  0x42   :  { %880 = vmatprep.subr.bf16.mxu1 %v964_v26  ;;  %v780_v11 = vcombine.low %v47_v10, %v47_v10  ;;  %v781_v12 = vcombine.high %v47_v10, %v47_v10  ;;  %v773_v15 = vld [vmem:[#allocation2] ss:$0 sm:$0xff] }
  0x44   :  { %859 = vmatpush3.bf16.msra.mxu0 %v965_v27 }
  0x45   :  { %881 = vmatpush3.bf16.msra.mxu1 %v966_v28  ;;  %860 = vmatprep.subr.bf16.mxu0 %v967_v29 }
  0x46   :  { %882 = vmatprep.subr.bf16.mxu1 %v968_v30 }
  0x48   :  { %861 = vmatpush3.bf16.msra.mxu0 %v969_v31 }
  0x49   :  { %883 = vmatpush3.bf16.msra.mxu1 %v970_v32  ;;  %890 = vmatprep.subr.bf16.mxu0 %v975_v39 }
  0x4a   :  { %912 = vmatprep.subr.bf16.mxu1 %v976_v40 }
  0x4b   :  { %628 = vmatmul.mubr.bf16.vlgmr.msra.gmra.mrb[0].mxu0 %v774_v35 }
  0x4c   :  { %668 = vmatmul.mubr.bf16.vlgmr.msra.gmra.mrb[0].mxu1 %v776_v37  ;;  %891 = vmatpush3.bf16.msra.mxu0 %v977_v41 }
  0x4d   :  { %913 = vmatpush3.bf16.msra.mxu1 %v978_v42  ;;  %892 = vmatprep.subr.bf16.mxu0 %v979_v43 }
  0x4e   :  { %914 = vmatprep.subr.bf16.mxu1 %v980_v44  ;;  %707 = vmatprep.mubr.bf16.mxu0 %v779_v9 }
  0x4f   :  { %747 = vmatprep.mubr.bf16.mxu1 %v781_v12 }
  0x50   :  { %893 = vmatpush3.bf16.msra.mxu0 %v981_v45 }
  0x51   :  { %915 = vmatpush3.bf16.msra.mxu1 %v982_v46  ;;  %894 = vmatprep.subr.bf16.mxu0 %v983_v47 }
  0x52   :  { %916 = vmatprep.subr.bf16.mxu1 %v984_v48 }
  0x54   :  { %895 = vmatpush3.bf16.msra.mxu0 %v985_v49 }
  0x55   :  { %917 = vmatpush3.bf16.msra.mxu1 %v986_v50  ;;  %896 = vmatprep.subr.bf16.mxu0 %v987_v51 }
  0x56   :  { %918 = vmatprep.subr.bf16.mxu1 %v988_v52 }
  0x58   :  { %897 = vmatpush3.bf16.msra.mxu0 %v989_v53 }
  0x59   :  { %919 = vmatpush3.bf16.msra.mxu1 %v990_v54  ;;  %898 = vmatprep.subr.bf16.mxu0 %v991_v55 }
  0x5a   :  { %920 = vmatprep.subr.bf16.mxu1 %v992_v56 }
  0x5c   :  { %899 = vmatpush3.bf16.msra.mxu0 %v993_v57 }
  0x5d   :  { %921 = vmatpush3.bf16.msra.mxu1 %v994_v58  ;;  %900 = vmatprep.subr.bf16.mxu0 %v995_v59 }
  0x5e   :  { %922 = vmatprep.subr.bf16.mxu1 %v996_v60 }
  0x60   :  { %901 = vmatpush3.bf16.msra.mxu0 %v997_v61 }
  0x61   :  { %923 = vmatpush3.bf16.msra.mxu1 %v998_v62  ;;  %902 = vmatprep.subr.bf16.mxu0 %v999_v63 }
  0x62   :  { %924 = vmatprep.subr.bf16.mxu1 %v1000_v0 }
  0x64   :  { %903 = vmatpush3.bf16.msra.mxu0 %v1001_v1 }
  0x65   :  { %925 = vmatpush3.bf16.msra.mxu1 %v1002_v2  ;;  %904 = vmatprep.subr.bf16.mxu0 %v1003_v3 }
  0x66   :  { %926 = vmatprep.subr.bf16.mxu1 %v1004_v4 }
  0x68   :  { %905 = vmatpush3.bf16.msra.mxu0 %v1005_v5 }
  0x69   :  { %927 = vmatpush3.bf16.msra.mxu1 %v1006_v6 }
  0x6b   :  { %708 = vmatmul.mubr.bf16.vlgmr.msra.gmra.mrb[4].mxu0 %v778_v8 }
  0x6c   :  { %748 = vmatmul.mubr.bf16.vlgmr.msra.gmra.mrb[4].mxu1 %v780_v11 }
 0x11e   :  { %v862_v13 = vpop.f32.mrb[0].mxu0 }
 0x11f   :  { %v884_v14 = vpop.f32.mrb[0].mxu1  ;;  %v863_v16 = vpop.f32.mrb[1].mxu0 }
 0x120   :  { %v885_v17 = vpop.f32.mrb[1].mxu1  ;;  %v864_v18 = vadd.f32 %v863_v16, %v862_v13  ;;  %v865_v20 = vpop.f32.mrb[2].mxu0 }
 0x121   :  { %v886_v19 = vadd.f32 %v885_v17, %v884_v14  ;;  %v887_v21 = vpop.f32.mrb[2].mxu1  ;;  %v866_v22 = vpop.f32.mrb[3].mxu0 }
 0x122   :  { %v888_v23 = vpop.f32.mrb[3].mxu1  ;;  %v630_v24 = vadd.f32 %v864_v18, %v773_v15 }
 0x124   :  { %v670_v25 = vadd.f32 %v886_v19, %v630_v24 }
 0x13e   :  { %v906_v26 = vpop.f32.mrb[4].mxu0 }
 0x13f   :  { %v928_v27 = vpop.f32.mrb[4].mxu1  ;;  %v907_v28 = vpop.f32.mrb[5].mxu0 }
 0x140   :  { %v929_v29 = vpop.f32.mrb[5].mxu1  ;;  %v908_v30 = vadd.f32 %v907_v28, %v906_v26  ;;  %v909_v32 = vpop.f32.mrb[6].mxu0 }
 0x141   :  { %v930_v31 = vadd.f32 %v929_v29, %v928_v27  ;;  %v931_v33 = vpop.f32.mrb[6].mxu1  ;;  %v910_v34 = vpop.f32.mrb[7].mxu0 }
 0x142   :  { %v932_v35 = vpop.f32.mrb[7].mxu1  ;;  %v710_v36 = vadd.f32 %v908_v30, %v670_v25 }
 0x144   :  { %v750_v37 = vadd.f32 %v930_v31, %v710_v36 }
 0x146   :  { %756 = vst.msk [vmem:[#allocation8] sm:$0xff] %vm755_vm0, %v750_v37 }
 0x147   :  { %1066 = shalt.err (!%p1063_p6)
}
 0x148   :  { %s1067_s15 = scalar_lea.hbm %s1157_s3, 128 }
 0x149   :  { %p1068_p7 = scmp.ne.s32.totalorder %s1157_s3, %s1067_s15  ;;  %p1071_p8 = scmp.lt.u32.totalorder %s1067_s15, %s1157_s3 }
 0x14b   :  { %p1073_p9 = pnand %p1071_p8, %p1068_p7 }
 0x14d   :  { %1076 = shalt.err (!%p1073_p9)
}
 0x14e   :  { %766 = dma.vmem_to_hbm [thread:$0]  %s764_s11, 128, %s1157_s3, [#allocation5]  }
 0x14f   :  { %1081 = dma.done.wait [#allocation5], 128  }
 0x150   :  { %1082 = vsyncadd [#allocation5], 4294967168 }
 0x151   :  { %770 = vsyncpa [#allocation4], 1 }
 0x152   :  { %771 = vsyncpa [#allocation7], 1 }
 0x153   :  { %772 = vsyncpa [#allocation5], 1 }

</bundles_post_ra>
